<compile_context>
chip_gen: v6e
topology: v6e:2x2x1
jax: 0.10.0
libtpu: 0.0.40
codegen_flags: <defaults>
</compile_context>

<pallas_src>
import functools

import jax
import jax.numpy as jnp
from jax import lax
from jax.experimental import pallas as pl
from jax.experimental.pallas import tpu as pltpu

BN_EPS = 1e-5
_VMEM_BUDGET_BYTES = 24 * 1024 * 1024   # budget for the fused single-pass path


def _round_up(x, m):
    return (x + m - 1) // m * m


# =============================== Pallas kernels ===============================

def _fused_conv_bn_kernel(*refs, m_inv, apply_relu, has_residual):
    """Single pass: conv -> batch-stat BN -> (+ residual) -> (ReLU), slab in VMEM."""
    if has_residual:
        patches_ref, w_ref, gamma_ref, beta_ref, res_ref, out_ref = refs
    else:
        patches_ref, w_ref, gamma_ref, beta_ref, out_ref = refs
        res_ref = None

    conv = jnp.dot(patches_ref[...], w_ref[...],
                   preferred_element_type=jnp.float32)           # (Mp, Cp) f32
    # Per-channel batch statistics; zero-padded rows contribute nothing and the
    # true row count is applied through m_inv.
    psum = jnp.sum(conv, axis=0, keepdims=True)                  # (1, Cp)
    psq = jnp.sum(conv * conv, axis=0, keepdims=True)            # (1, Cp)
    mean = psum * m_inv
    var = jnp.maximum(psq * m_inv - mean * mean, 0.0)
    inv_std = lax.rsqrt(var + BN_EPS)
    scale = gamma_ref[...] * inv_std                             # folded BN affine
    shift = beta_ref[...] - mean * scale
    y = conv * scale + shift
    if has_residual:
        y = y + res_ref[...]
    if apply_relu:
        y = jnp.maximum(y, 0.0)
    out_ref[...] = y.astype(out_ref.dtype)


def _conv_stats_kernel(patches_ref, w_ref, stats_ref):
    """Tiled pass 1: conv tile + per-tile partial sum / sum-of-squares (per channel)."""
    conv = jnp.dot(patches_ref[...], w_ref[...],
                   preferred_element_type=jnp.float32)           # (TM, Cp)
    tm = conv.shape[0]
    ones = jnp.ones((8, tm), dtype=jnp.float32)                  # MXU reduction
    psum = jnp.dot(ones, conv, preferred_element_type=jnp.float32)
    psq = jnp.dot(ones, conv * conv, preferred_element_type=jnp.float32)
    stats_ref[0, 0:1, :] = psum[0:1, :]
    stats_ref[0, 1:2, :] = psq[0:1, :]


def _conv_apply_kernel(*refs, apply_relu, has_residual):
    """Tiled pass 2: conv tile + folded BN affine (+ residual) (+ ReLU)."""
    if has_residual:
        patches_ref, w_ref, scale_ref, shift_ref, res_ref, out_ref = refs
    else:
        patches_ref, w_ref, scale_ref, shift_ref, out_ref = refs
        res_ref = None
    conv = jnp.dot(patches_ref[...], w_ref[...],
                   preferred_element_type=jnp.float32)
    y = conv * scale_ref[...] + shift_ref[...]
    if has_residual:
        y = y + res_ref[...]
    if apply_relu:
        y = jnp.maximum(y, 0.0)
    out_ref[...] = y.astype(out_ref.dtype)


def _max_over_taps_kernel(x_ref, o_ref):
    # x_ref: (9, M, C) stacked 3x3 window taps; o_ref: (M, C).
    o_ref[...] = jnp.max(x_ref[...], axis=0)


def _linear_kernel(x_ref, w_ref, b_ref, o_ref):
    o_ref[...] = (jnp.dot(x_ref[...], w_ref[...],
                          preferred_element_type=jnp.float32)
                  + b_ref[...]).astype(o_ref.dtype)


# =============================== Op wrappers ===============================

def _im2col_nhwc(x, k, stride, padding):
    """x: (N, H, W, C) -> patches (N*OH*OW, k*k*C), feature order (kh, kw, c)."""
    n, h, w, c = x.shape
    oh = (h + 2 * padding - k) // stride + 1
    ow = (w + 2 * padding - k) // stride + 1
    xp = jnp.pad(x, ((0, 0), (padding, padding), (padding, padding), (0, 0)))
    cols = []
    for kh in range(k):
        for kw in range(k):
            cols.append(xp[:, kh: kh + stride * (oh - 1) + 1: stride,
                            kw: kw + stride * (ow - 1) + 1: stride, :])
    patches = jnp.concatenate(cols, axis=-1)          # (N, OH, OW, k*k*C)
    return patches.reshape(n * oh * ow, k * k * c), oh, ow


def conv_bn_act(x, weight, gamma, beta, *, stride=1, padding=0, relu=True,
                residual=None, block_m=512, matmul_dtype=jnp.float32,
                vmem_budget_bytes=_VMEM_BUDGET_BYTES):
    """Fused Conv2d(bias=False) -> BatchNorm2d (batch stats) [-> +residual] [-> ReLU].

    x:        (N, H, W, C_in) NHWC float32
    weight:   (C_out, C_in, KH, KW)   (PyTorch Conv2d layout)
    gamma, beta: (C_out,)
    residual: optional (N, OH, OW, C_out) added before the activation
    returns   (N, OH, OW, C_out) float32
    """
    x = x.astype(jnp.float32)
    n, h, w, c_in = x.shape
    c_out, c_in_w, kh_, kw_ = weight.shape
    assert kh_ == kw_ and c_in_w == c_in
    patches, oh, ow = _im2col_nhwc(x, kh_, stride, padding)
    m, kf = patches.shape

    kp = _round_up(kf, 128)
    cp = _round_up(c_out, 128)
    mp = _round_up(m, 8)
    itemsize = jnp.dtype(matmul_dtype).itemsize

    w2d = jnp.transpose(weight.astype(jnp.float32), (2, 3, 1, 0)).reshape(kf, c_out)
    w_p = jnp.pad(w2d, ((0, kp - kf), (0, cp - c_out))).astype(matmul_dtype)
    gamma_p = jnp.pad(gamma.astype(jnp.float32), (0, cp - c_out)).reshape(1, cp)
    beta_p = jnp.pad(beta.astype(jnp.float32), (0, cp - c_out)).reshape(1, cp)

    has_res = residual is not None
    if has_res:
        assert residual.shape == (n, oh, ow, c_out), (residual.shape, (n, oh, ow, c_out))
        res2d = residual.astype(jnp.float32).reshape(m, c_out)

    fused_bytes = (2 * mp * kp * itemsize + 2 * kp * cp * itemsize
                   + (3 + 2 * int(has_res)) * mp * cp * 4 + 8 * cp * 4)

    if fused_bytes <= vmem_budget_bytes:
        # ---------- single-pass fused path (used by all CustomNetwork_Q4 layers) ----------
        patches_p = jnp.pad(patches, ((0, mp - m), (0, kp - kf))).astype(matmul_dtype)
        inputs = [patches_p, w_p, gamma_p, beta_p]
        in_specs = [
            pl.BlockSpec((mp, kp), lambda i: (0, 0)),
            pl.BlockSpec((kp, cp), lambda i: (0, 0)),
            pl.BlockSpec((1, cp), lambda i: (0, 0)),
            pl.BlockSpec((1, cp), lambda i: (0, 0)),
        ]
        if has_res:
            inputs.append(jnp.pad(res2d, ((0, mp - m), (0, cp - c_out))))
            in_specs.append(pl.BlockSpec((mp, cp), lambda i: (0, 0)))
        kernel = functools.partial(_fused_conv_bn_kernel, m_inv=1.0 / m,
                                   apply_relu=relu, has_residual=has_res)
        out_p = pl.pallas_call(
            kernel,
            out_shape=jax.ShapeDtypeStruct((mp, cp), jnp.float32),
            grid=(1,),
            in_specs=in_specs,
            out_specs=pl.BlockSpec((mp, cp), lambda i: (0, 0)),
            compiler_params=pltpu.CompilerParams(
                dimension_semantics=("arbitrary",),
                vmem_limit_bytes=32 * 1024 * 1024),
            cost_estimate=pl.CostEstimate(
                flops=2 * mp * kp * cp + 6 * mp * cp,
                transcendentals=0,
                bytes_accessed=mp * kp * itemsize + kp * cp * itemsize
                + (1 + int(has_res)) * mp * cp * 4),
        )(*inputs)
    else:
        # ---------- two-pass tiled pipeline for large feature maps ----------
        tm = min(_round_up(block_m, 8), mp)
        mpad = _round_up(m, tm)
        num_tiles = mpad // tm
        patches_p = jnp.pad(patches, ((0, mpad - m), (0, kp - kf))).astype(matmul_dtype)
        conv_flops = 2 * mpad * kp * cp
        compiler_params = pltpu.CompilerParams(
            dimension_semantics=("parallel",),
            vmem_limit_bytes=32 * 1024 * 1024)

        stats = pl.pallas_call(
            _conv_stats_kernel,
            out_shape=jax.ShapeDtypeStruct((num_tiles, 2, cp), jnp.float32),
            grid=(num_tiles,),
            in_specs=[pl.BlockSpec((tm, kp), lambda i: (i, 0)),
                      pl.BlockSpec((kp, cp), lambda i: (0, 0))],
            out_specs=pl.BlockSpec((1, 2, cp), lambda i: (i, 0, 0)),
            compiler_params=compiler_params,
            cost_estimate=pl.CostEstimate(
                flops=conv_flops + 2 * (2 * 8 * mpad * cp),
                transcendentals=0,
                bytes_accessed=mpad * kp * itemsize + kp * cp * itemsize
                + num_tiles * 2 * cp * 4),
        )(patches_p, w_p)

        total = jnp.sum(stats, axis=0)                          # (2, cp)
        mean = total[0] / jnp.float32(m)
        var = jnp.maximum(total[1] / jnp.float32(m) - mean * mean, 0.0)
        inv_std = lax.rsqrt(var + BN_EPS)
        scale = (gamma_p[0] * inv_std).reshape(1, cp)
        shift = (beta_p[0] - mean * gamma_p[0] * inv_std).reshape(1, cp)

        inputs = [patches_p, w_p, scale, shift]
        in_specs = [pl.BlockSpec((tm, kp), lambda i: (i, 0)),
                    pl.BlockSpec((kp, cp), lambda i: (0, 0)),
                    pl.BlockSpec((1, cp), lambda i: (0, 0)),
                    pl.BlockSpec((1, cp), lambda i: (0, 0))]
        if has_res:
            inputs.append(jnp.pad(res2d, ((0, mpad - m), (0, cp - c_out))))
            in_specs.append(pl.BlockSpec((tm, cp), lambda i: (i, 0)))
        kernel = functools.partial(_conv_apply_kernel, apply_relu=relu,
                                   has_residual=has_res)
        out_p = pl.pallas_call(
            kernel,
            out_shape=jax.ShapeDtypeStruct((mpad, cp), jnp.float32),
            grid=(num_tiles,),
            in_specs=in_specs,
            out_specs=pl.BlockSpec((tm, cp), lambda i: (i, 0)),
            compiler_params=compiler_params,
            cost_estimate=pl.CostEstimate(
                flops=conv_flops + 4 * mpad * cp,
                transcendentals=0,
                bytes_accessed=mpad * kp * itemsize + kp * cp * itemsize
                + (1 + int(has_res)) * mpad * cp * 4),
        )(*inputs)

    return out_p[:m, :c_out].reshape(n, oh, ow, c_out)


def maxpool3_same(x):
    """nn.MaxPool2d(3, stride=1, padding=1) on an NHWC tensor via a Pallas kernel."""
    n, h, w, c = x.shape
    xp = jnp.pad(x, ((0, 0), (1, 1), (1, 1), (0, 0)), constant_values=-jnp.inf)
    taps = jnp.stack([xp[:, kh:kh + h, kw:kw + w, :]
                      for kh in range(3) for kw in range(3)], axis=0)    # (9,N,H,W,C)
    slab = taps.reshape(9, n * h * w, c)
    out = pl.pallas_call(
        _max_over_taps_kernel,
        out_shape=jax.ShapeDtypeStruct((n * h * w, c), x.dtype),
        grid=(1,),
        in_specs=[pl.BlockSpec((9, n * h * w, c), lambda i: (0, 0, 0))],
        out_specs=pl.BlockSpec((n * h * w, c), lambda i: (0, 0)),
    )(slab)
    return out.reshape(n, h, w, c)


def linear(x, weight, bias):
    """nn.Linear: y = x @ weight.T + bias, as a Pallas matmul kernel."""
    n, f = x.shape
    o = weight.shape[0]
    return pl.pallas_call(
        _linear_kernel,
        out_shape=jax.ShapeDtypeStruct((n, o), jnp.float32),
        grid=(1,),
        in_specs=[pl.BlockSpec((n, f), lambda i: (0, 0)),
                  pl.BlockSpec((f, o), lambda i: (0, 0)),
                  pl.BlockSpec((1, o), lambda i: (0, 0))],
        out_specs=pl.BlockSpec((n, o), lambda i: (0, 0)),
    )(x.astype(jnp.float32), weight.astype(jnp.float32).T,
      bias.astype(jnp.float32).reshape(1, o))


# =========================== parameters & network ===========================

def _init_cna(key, cin, cout, k):
    kw, kg, kb = jax.random.split(key, 3)
    return dict(w=jax.random.normal(kw, (cout, cin, k, k), dtype=jnp.float32),
                gamma=1.0 + 0.1 * jax.random.normal(kg, (cout,), dtype=jnp.float32),
                beta=0.1 * jax.random.normal(kb, (cout,), dtype=jnp.float32))


def _init_residual(key, cin, cout):
    k1, k2, k3 = jax.random.split(key, 3)
    return dict(cna1=_init_cna(k1, cin, cout, 3),
                conv2=_init_cna(k2, cout, cout, 3),
                res=_init_cna(k3, cin, cout, 1))


def _init_inception(key, cin, out1, out5a, out5b):
    k1, k2a, k2b, k3a, k3b = jax.random.split(key, 5)
    return dict(b1=_init_cna(k1, cin, out1, 1),
                b2a=_init_cna(k2a, cin, out5a, 3), b2b=_init_cna(k2b, out5a, out5a, 5),
                b3a=_init_cna(k3a, cin, out5b, 3), b3b=_init_cna(k3b, out5b, out5b, 5))


def init_network_2d(key):
    ks = jax.random.split(key, 12)
    return dict(
        rb1=_init_residual(ks[0], 3, 2),
        rb2=_init_residual(ks[1], 2, 2),
        inc1=_init_inception(ks[2], 2, 3, 2, 3),
        inc2=_init_inception(ks[3], 10, 2, 1, 2),
        rb3=_init_residual(ks[4], 15, 10),
        inc3=_init_inception(ks[5], 10, 2, 1, 2),
        rb4=_init_residual(ks[6], 15, 10),
        inc4=_init_inception(ks[7], 10, 2, 1, 2),
        rb5=_init_residual(ks[8], 15, 10),
        inc5=_init_inception(ks[9], 10, 2, 1, 2),
        fc=dict(w=0.3 * jax.random.normal(ks[10], (10, 15), dtype=jnp.float32),
                b=0.1 * jax.random.normal(ks[11], (10,), dtype=jnp.float32)),
    )


def _cna_fwd(p, x, *, stride=1, padding=0, relu=True, residual=None):
    return conv_bn_act(x, p["w"], p["gamma"], p["beta"], stride=stride,
                       padding=padding, relu=relu, residual=residual)


def _residual_fwd(p, x, *, stride):
    h = _cna_fwd(p["cna1"], x, stride=stride, padding=1, relu=True)
    res = _cna_fwd(p["res"], x, stride=stride, padding=0, relu=False)     # 1x1 conv+BN
    # second conv+BN with the residual add and the block's final ReLU fused in-kernel
    return _cna_fwd(p["conv2"], h, stride=1, padding=1, relu=True, residual=res)


def _inception_fwd(p, x):
    b1 = _cna_fwd(p["b1"], x, stride=1, padding=0)
    b2 = _cna_fwd(p["b2b"], _cna_fwd(p["b2a"], x, stride=1, padding=2),
                  stride=1, padding=1)
    b3 = _cna_fwd(p["b3b"], _cna_fwd(p["b3a"], x, stride=1, padding=2),
                  stride=1, padding=1)
    b4 = maxpool3_same(x)
    return jnp.concatenate([b1, b2, b3, b4], axis=-1)


def _network_2d_fwd(params, x_nchw):
    x = jnp.transpose(x_nchw.astype(jnp.float32), (0, 2, 3, 1))   # NCHW -> NHWC once
    x = _residual_fwd(params["rb1"], x, stride=2)
    x = _residual_fwd(params["rb2"], x, stride=2)
    x = _inception_fwd(params["inc1"], x)
    x = _inception_fwd(params["inc2"], x)
    x = _residual_fwd(params["rb3"], x, stride=2)
    x = _inception_fwd(params["inc3"], x)
    x = _residual_fwd(params["rb4"], x, stride=2)
    x = _inception_fwd(params["inc4"], x)
    x = _residual_fwd(params["rb5"], x, stride=2)
    x = _inception_fwd(params["inc5"], x)
    # final spatial extent is 1x1, so NHWC flatten == PyTorch's NCHW Flatten
    flat = x.reshape(x.shape[0], -1)
    return linear(flat, params["fc"]["w"], params["fc"]["b"])


def custom_network_q4_forward(params, x):
    """Dispatch like the PyTorch forward: x.shape[1]==20 -> 1-D path, else 2-D path."""
    if x.shape[1] == 20:
        # TODO(synk): layers_1d (1-D path) not instantiated here.
        raise NotImplementedError("only the 2-D path (layers_2d) is implemented")
    return _network_2d_fwd(params, x)


# ============================ pure-JAX reference ============================

def _ref_conv_bn_act(p, x, *, stride=1, padding=0, relu=True):
    w = jnp.transpose(p["w"], (2, 3, 1, 0))                 # OIHW -> HWIO
    conv = lax.conv_general_dilated(
        x, w, window_strides=(stride, stride),
        padding=[(padding, padding), (padding, padding)],
        dimension_numbers=("NHWC", "HWIO", "NHWC"))
    mean = conv.mean(axis=(0, 1, 2), keepdims=True)
    var = ((conv - mean) ** 2).mean(axis=(0, 1, 2), keepdims=True)
    y = (conv - mean) / jnp.sqrt(var + BN_EPS)
    y = y * p["gamma"].reshape(1, 1, 1, -1) + p["beta"].reshape(1, 1, 1, -1)
    return jnp.maximum(y, 0.0) if relu else y


def _ref_residual(p, x, *, stride):
    h = _ref_conv_bn_act(p["cna1"], x, stride=stride, padding=1)
    out = _ref_conv_bn_act(p["conv2"], h, stride=1, padding=1, relu=False)
    res = _ref_conv_bn_act(p["res"], x, stride=stride, padding=0, relu=False)
    return jnp.maximum(out + res, 0.0)


def _ref_maxpool(x):
    return lax.reduce_window(x, -jnp.inf, lax.max, (1, 3, 3, 1), (1, 1, 1, 1),
                             padding=[(0, 0), (1, 1), (1, 1), (0, 0)])


def _ref_inception(p, x):
    b1 = _ref_conv_bn_act(p["b1"], x, stride=1, padding=0)
    b2 = _ref_conv_bn_act(p["b2b"], _ref_conv_bn_act(p["b2a"], x, stride=1, padding=2),
                          stride=1, padding=1)
    b3 = _ref_conv_bn_act(p["b3b"], _ref_conv_bn_act(p["b3a"], x, stride=1, padding=2),
                          stride=1, padding=1)
    b4 = _ref_maxpool(x)
    return jnp.concatenate([b1, b2, b3, b4], axis=-1)


def _ref_network_2d(params, x_nchw):
    x = jnp.transpose(x_nchw.astype(jnp.float32), (0, 2, 3, 1))
    x = _ref_residual(params["rb1"], x, stride=2)
    x = _ref_residual(params["rb2"], x, stride=2)
    x = _ref_inception(params["inc1"], x)
    x = _ref_inception(params["inc2"], x)
    x = _ref_residual(params["rb3"], x, stride=2)
    x = _ref_inception(params["inc3"], x)
    x = _ref_residual(params["rb4"], x, stride=2)
    x = _ref_inception(params["inc4"], x)
    x = _ref_residual(params["rb5"], x, stride=2)
    x = _ref_inception(params["inc5"], x)
    flat = x.reshape(x.shape[0], -1)
    return flat @ params["fc"]["w"].T + params["fc"]["b"]


# ==================================== main ====================================

if __name__ == "__main__":
    root = jax.random.PRNGKey(0)
    kparams, kx, kcna = jax.random.split(root, 3)

    # CustomNetwork_Q4, 2-D path: input (N=2, C=3, H=16, W=16) -> logits (2, 10).
    params = init_network_2d(kparams)
    x = jax.random.normal(kx, (2, 3, 16, 16), dtype=jnp.float32)

    out = jax.block_until_ready(jax.jit(custom_network_q4_forward)(params, x))
    assert out.shape == (2, 10), out.shape

    ref = jax.block_until_ready(jax.jit(_ref_network_2d)(params, x))
    max_err = float(jnp.max(jnp.abs(out - ref)))
    assert jnp.allclose(out, ref, atol=2e-2, rtol=2e-2), max_err

    # Exercise the tiled two-pass fallback once on a larger standalone CNA
    # (forced by setting the fused-path VMEM budget to zero).
    k1, k2, k3, k4 = jax.random.split(kcna, 4)
    xc = jax.random.normal(k1, (2, 16, 16, 4), dtype=jnp.float32)
    wc = jax.random.normal(k2, (8, 4, 3, 3), dtype=jnp.float32)
    gc = 1.0 + 0.1 * jax.random.normal(k3, (8,), dtype=jnp.float32)
    bc = 0.1 * jax.random.normal(k4, (8,), dtype=jnp.float32)
    cna_tiled = conv_bn_act(xc, wc, gc, bc, stride=1, padding=1,
                            block_m=128, vmem_budget_bytes=0)
    cna_tiled = jax.block_until_ready(cna_tiled)
    cna_ref = _ref_conv_bn_act(dict(w=wc, gamma=gc, beta=bc), xc, stride=1, padding=1)
    assert jnp.allclose(cna_tiled, cna_ref, atol=1e-4, rtol=1e-4)

    print("KERNEL_OK")
</pallas_src>

<mosaic_0001>
module attributes {stable_mosaic.version = 11 : i64} {
  func.func @_fused_conv_bn_kernel(%arg0: i32, %arg1: memref<128x128xf32, #tpu.memory_space<vmem>>, %arg2: memref<128x128xf32, #tpu.memory_space<vmem>>, %arg3: memref<1x128xf32, #tpu.memory_space<vmem>>, %arg4: memref<1x128xf32, #tpu.memory_space<vmem>>, %arg5: memref<128x128xf32, #tpu.memory_space<vmem>>) attributes {dimension_semantics = [#tpu.dimension_semantics<arbitrary>], iteration_bounds = array<i64: 1>, scalar_prefetch = 0 : i64, scratch_operands = 0 : i64, tpu.core_type = #tpu.core_type<tc>, window_params = [{pipeline_mode = #tpu.pipeline_mode<synchronous>, transform_indices = @transform_0, window_bounds = array<i64: 128, 128>}, {pipeline_mode = #tpu.pipeline_mode<synchronous>, transform_indices = @transform_1, window_bounds = array<i64: 128, 128>}, {pipeline_mode = #tpu.pipeline_mode<synchronous>, transform_indices = @transform_2, window_bounds = array<i64: 1, 128>}, {pipeline_mode = #tpu.pipeline_mode<synchronous>, transform_indices = @transform_3, window_bounds = array<i64: 1, 128>}, {pipeline_mode = #tpu.pipeline_mode<synchronous>, transform_indices = @transform_4, window_bounds = array<i64: 128, 128>}]} {
    %c0 = arith.constant 0 : index
    %c0_0 = arith.constant 0 : index
    %0 = vector.load %arg1[%c0, %c0_0] : memref<128x128xf32, #tpu.memory_space<vmem>>, vector<128x128xf32>
    %c0_1 = arith.constant 0 : index
    %c0_2 = arith.constant 0 : index
    %1 = vector.load %arg2[%c0_1, %c0_2] : memref<128x128xf32, #tpu.memory_space<vmem>>, vector<128x128xf32>
    %cst = arith.constant dense<0.000000e+00> : vector<128x128xf32>
    %2 = tpu.matmul %0, %1, %cst {dimension_numbers = #tpu.dot_dimension_numbers<[1], [0], [0], [1], [0, 0, 1, 1], [], []>} : vector<128x128xf32>, vector<128x128xf32>, vector<128x128xf32> -> vector<128x128xf32>
    %cst_3 = arith.constant dense<0.000000e+00> : vector<128xf32>
    %3 = vector.multi_reduction <add>, %2, %cst_3 [0] : vector<128x128xf32> to vector<128xf32>
    %4 = vector.shape_cast %3 : vector<128xf32> to vector<1x128xf32>
    %5 = arith.mulf %2, %2 : vector<128x128xf32>
    %cst_4 = arith.constant dense<0.000000e+00> : vector<128xf32>
    %6 = vector.multi_reduction <add>, %5, %cst_4 [0] : vector<128x128xf32> to vector<128xf32>
    %7 = vector.shape_cast %6 : vector<128xf32> to vector<1x128xf32>
    %cst_5 = arith.constant 7.812500e-03 : f32
    %8 = vector.broadcast %cst_5 : f32 to vector<1x128xf32>
    %9 = arith.mulf %4, %8 : vector<1x128xf32>
    %cst_6 = arith.constant 7.812500e-03 : f32
    %10 = vector.broadcast %cst_6 : f32 to vector<1x128xf32>
    %11 = arith.mulf %7, %10 : vector<1x128xf32>
    %12 = arith.mulf %9, %9 : vector<1x128xf32>
    %13 = arith.subf %11, %12 : vector<1x128xf32>
    %cst_7 = arith.constant 0.000000e+00 : f32
    %14 = vector.broadcast %cst_7 : f32 to vector<1x128xf32>
    %15 = arith.maximumf %13, %14 : vector<1x128xf32>
    %cst_8 = arith.constant 9.99999974E-6 : f32
    %16 = vector.broadcast %cst_8 : f32 to vector<1x128xf32>
    %17 = arith.addf %15, %16 : vector<1x128xf32>
    %18 = math.rsqrt %17 : vector<1x128xf32>
    %c0_9 = arith.constant 0 : index
    %c0_10 = arith.constant 0 : index
    %19 = vector.load %arg3[%c0_9, %c0_10] : memref<1x128xf32, #tpu.memory_space<vmem>>, vector<1x128xf32>
    %20 = arith.mulf %19, %18 : vector<1x128xf32>
    %c0_11 = arith.constant 0 : index
    %c0_12 = arith.constant 0 : index
    %21 = vector.load %arg4[%c0_11, %c0_12] : memref<1x128xf32, #tpu.memory_space<vmem>>, vector<1x128xf32>
    %22 = arith.mulf %9, %20 : vector<1x128xf32>
    %23 = arith.subf %21, %22 : vector<1x128xf32>
    %24 = vector.broadcast %20 : vector<1x128xf32> to vector<128x128xf32>
    %25 = arith.mulf %2, %24 : vector<128x128xf32>
    %26 = vector.broadcast %23 : vector<1x128xf32> to vector<128x128xf32>
    %27 = arith.addf %25, %26 : vector<128x128xf32>
    %cst_13 = arith.constant 0.000000e+00 : f32
    %28 = vector.broadcast %cst_13 : f32 to vector<128x128xf32>
    %29 = arith.maximumf %27, %28 : vector<128x128xf32>
    %c0_14 = arith.constant 0 : index
    %c0_15 = arith.constant 0 : index
    %30 = vector.load %arg5[%c0_14, %c0_15] : memref<128x128xf32, #tpu.memory_space<vmem>>, vector<128x128xf32>
    tpu.vector_store %arg5[%c0_14, %c0_15], %29 {strides = array<i32>} : memref<128x128xf32, #tpu.memory_space<vmem>>, vector<128x128xf32>,
    return
  }
  func.func @transform_0(%arg0: i32) -> (i32, i32) {
    %c0_i32 = arith.constant 0 : i32
    %c0_i32_0 = arith.constant 0 : i32
    %c0_i32_1 = arith.constant 0 : i32
    return %c0_i32, %c0_i32_0 : i32, i32
  }
  func.func @transform_1(%arg0: i32) -> (i32, i32) {
    %c0_i32 = arith.constant 0 : i32
    %c0_i32_0 = arith.constant 0 : i32
    %c0_i32_1 = arith.constant 0 : i32
    return %c0_i32, %c0_i32_0 : i32, i32
  }
  func.func @transform_2(%arg0: i32) -> (i32, i32) {
    %c0_i32 = arith.constant 0 : i32
    %c0_i32_0 = arith.constant 0 : i32
    %c0_i32_1 = arith.constant 0 : i32
    return %c0_i32, %c0_i32_0 : i32, i32
  }
  func.func @transform_3(%arg0: i32) -> (i32, i32) {
    %c0_i32 = arith.constant 0 : i32
    %c0_i32_0 = arith.constant 0 : i32
    %c0_i32_1 = arith.constant 0 : i32
    return %c0_i32, %c0_i32_0 : i32, i32
  }
  func.func @transform_4(%arg0: i32) -> (i32, i32) {
    %c0_i32 = arith.constant 0 : i32
    %c0_i32_0 = arith.constant 0 : i32
    %c0_i32_1 = arith.constant 0 : i32
    return %c0_i32, %c0_i32_0 : i32, i32
  }
}

module attributes {stable_mosaic.version = 11 : i64} {
  func.func @_fused_conv_bn_kernel(%arg0: i32, %arg1: memref<128x128xf32, #tpu.memory_space<vmem>>, %arg2: memref<128x128xf32, #tpu.memory_space<vmem>>, %arg3: memref<1x128xf32, #tpu.memory_space<vmem>>, %arg4: memref<1x128xf32, #tpu.memory_space<vmem>>, %arg5: memref<128x128xf32, #tpu.memory_space<vmem>>) attributes {dimension_semantics = [#tpu.dimension_semantics<arbitrary>], iteration_bounds = array<i64: 1>, scalar_prefetch = 0 : i64, scratch_operands = 0 : i64, tpu.core_type = #tpu.core_type<tc>, window_params = [{pipeline_mode = #tpu.pipeline_mode<synchronous>, transform_indices = @transform_0, window_bounds = array<i64: 128, 128>}, {pipeline_mode = #tpu.pipeline_mode<synchronous>, transform_indices = @transform_1, window_bounds = array<i64: 128, 128>}, {pipeline_mode = #tpu.pipeline_mode<synchronous>, transform_indices = @transform_2, window_bounds = array<i64: 1, 128>}, {pipeline_mode = #tpu.pipeline_mode<synchronous>, transform_indices = @transform_3, window_bounds = array<i64: 1, 128>}, {pipeline_mode = #tpu.pipeline_mode<synchronous>, transform_indices = @transform_4, window_bounds = array<i64: 128, 128>}]} {
    %c0 = arith.constant 0 : index
    %c0_0 = arith.constant 0 : index
    %0 = vector.load %arg1[%c0, %c0_0] : memref<128x128xf32, #tpu.memory_space<vmem>>, vector<128x128xf32>
    %c0_1 = arith.constant 0 : index
    %c0_2 = arith.constant 0 : index
    %1 = vector.load %arg2[%c0_1, %c0_2] : memref<128x128xf32, #tpu.memory_space<vmem>>, vector<128x128xf32>
    %cst = arith.constant dense<0.000000e+00> : vector<128x128xf32>
    %2 = tpu.matmul %0, %1, %cst {dimension_numbers = #tpu.dot_dimension_numbers<[1], [0], [0], [1], [0, 0, 1, 1], [], []>} : vector<128x128xf32>, vector<128x128xf32>, vector<128x128xf32> -> vector<128x128xf32>
    %cst_3 = arith.constant dense<0.000000e+00> : vector<128xf32>
    %3 = vector.multi_reduction <add>, %2, %cst_3 [0] : vector<128x128xf32> to vector<128xf32>
    %4 = vector.shape_cast %3 : vector<128xf32> to vector<1x128xf32>
    %5 = arith.mulf %2, %2 : vector<128x128xf32>
    %cst_4 = arith.constant dense<0.000000e+00> : vector<128xf32>
    %6 = vector.multi_reduction <add>, %5, %cst_4 [0] : vector<128x128xf32> to vector<128xf32>
    %7 = vector.shape_cast %6 : vector<128xf32> to vector<1x128xf32>
    %cst_5 = arith.constant 7.812500e-03 : f32
    %8 = vector.broadcast %cst_5 : f32 to vector<1x128xf32>
    %9 = arith.mulf %4, %8 : vector<1x128xf32>
    %cst_6 = arith.constant 7.812500e-03 : f32
    %10 = vector.broadcast %cst_6 : f32 to vector<1x128xf32>
    %11 = arith.mulf %7, %10 : vector<1x128xf32>
    %12 = arith.mulf %9, %9 : vector<1x128xf32>
    %13 = arith.subf %11, %12 : vector<1x128xf32>
    %cst_7 = arith.constant 0.000000e+00 : f32
    %14 = vector.broadcast %cst_7 : f32 to vector<1x128xf32>
    %15 = arith.maximumf %13, %14 : vector<1x128xf32>
    %cst_8 = arith.constant 9.99999974E-6 : f32
    %16 = vector.broadcast %cst_8 : f32 to vector<1x128xf32>
    %17 = arith.addf %15, %16 : vector<1x128xf32>
    %18 = math.rsqrt %17 : vector<1x128xf32>
    %c0_9 = arith.constant 0 : index
    %c0_10 = arith.constant 0 : index
    %19 = vector.load %arg3[%c0_9, %c0_10] : memref<1x128xf32, #tpu.memory_space<vmem>>, vector<1x128xf32>
    %20 = arith.mulf %19, %18 : vector<1x128xf32>
    %c0_11 = arith.constant 0 : index
    %c0_12 = arith.constant 0 : index
    %21 = vector.load %arg4[%c0_11, %c0_12] : memref<1x128xf32, #tpu.memory_space<vmem>>, vector<1x128xf32>
    %22 = arith.mulf %9, %20 : vector<1x128xf32>
    %23 = arith.subf %21, %22 : vector<1x128xf32>
    %24 = vector.broadcast %20 : vector<1x128xf32> to vector<128x128xf32>
    %25 = arith.mulf %2, %24 : vector<128x128xf32>
    %26 = vector.broadcast %23 : vector<1x128xf32> to vector<128x128xf32>
    %27 = arith.addf %25, %26 : vector<128x128xf32>
    %c0_13 = arith.constant 0 : index
    %c0_14 = arith.constant 0 : index
    %28 = vector.load %arg5[%c0_13, %c0_14] : memref<128x128xf32, #tpu.memory_space<vmem>>, vector<128x128xf32>
    tpu.vector_store %arg5[%c0_13, %c0_14], %27 {strides = array<i32>} : memref<128x128xf32, #tpu.memory_space<vmem>>, vector<128x128xf32>,
    return
  }
  func.func @transform_0(%arg0: i32) -> (i32, i32) {
    %c0_i32 = arith.constant 0 : i32
    %c0_i32_0 = arith.constant 0 : i32
    %c0_i32_1 = arith.constant 0 : i32
    return %c0_i32, %c0_i32_0 : i32, i32
  }
  func.func @transform_1(%arg0: i32) -> (i32, i32) {
    %c0_i32 = arith.constant 0 : i32
    %c0_i32_0 = arith.constant 0 : i32
    %c0_i32_1 = arith.constant 0 : i32
    return %c0_i32, %c0_i32_0 : i32, i32
  }
  func.func @transform_2(%arg0: i32) -> (i32, i32) {
    %c0_i32 = arith.constant 0 : i32
    %c0_i32_0 = arith.constant 0 : i32
    %c0_i32_1 = arith.constant 0 : i32
    return %c0_i32, %c0_i32_0 : i32, i32
  }
  func.func @transform_3(%arg0: i32) -> (i32, i32) {
    %c0_i32 = arith.constant 0 : i32
    %c0_i32_0 = arith.constant 0 : i32
    %c0_i32_1 = arith.constant 0 : i32
    return %c0_i32, %c0_i32_0 : i32, i32
  }
  func.func @transform_4(%arg0: i32) -> (i32, i32) {
    %c0_i32 = arith.constant 0 : i32
    %c0_i32_0 = arith.constant 0 : i32
    %c0_i32_1 = arith.constant 0 : i32
    return %c0_i32, %c0_i32_0 : i32, i32
  }
}

module attributes {stable_mosaic.version = 11 : i64} {
  func.func @_fused_conv_bn_kernel(%arg0: i32, %arg1: memref<128x128xf32, #tpu.memory_space<vmem>>, %arg2: memref<128x128xf32, #tpu.memory_space<vmem>>, %arg3: memref<1x128xf32, #tpu.memory_space<vmem>>, %arg4: memref<1x128xf32, #tpu.memory_space<vmem>>, %arg5: memref<128x128xf32, #tpu.memory_space<vmem>>, %arg6: memref<128x128xf32, #tpu.memory_space<vmem>>) attributes {dimension_semantics = [#tpu.dimension_semantics<arbitrary>], iteration_bounds = array<i64: 1>, scalar_prefetch = 0 : i64, scratch_operands = 0 : i64, tpu.core_type = #tpu.core_type<tc>, window_params = [{pipeline_mode = #tpu.pipeline_mode<synchronous>, transform_indices = @transform_0, window_bounds = array<i64: 128, 128>}, {pipeline_mode = #tpu.pipeline_mode<synchronous>, transform_indices = @transform_1, window_bounds = array<i64: 128, 128>}, {pipeline_mode = #tpu.pipeline_mode<synchronous>, transform_indices = @transform_2, window_bounds = array<i64: 1, 128>}, {pipeline_mode = #tpu.pipeline_mode<synchronous>, transform_indices = @transform_3, window_bounds = array<i64: 1, 128>}, {pipeline_mode = #tpu.pipeline_mode<synchronous>, transform_indices = @transform_4, window_bounds = array<i64: 128, 128>}, {pipeline_mode = #tpu.pipeline_mode<synchronous>, transform_indices = @transform_5, window_bounds = array<i64: 128, 128>}]} {
    %c0 = arith.constant 0 : index
    %c0_0 = arith.constant 0 : index
    %0 = vector.load %arg1[%c0, %c0_0] : memref<128x128xf32, #tpu.memory_space<vmem>>, vector<128x128xf32>
    %c0_1 = arith.constant 0 : index
    %c0_2 = arith.constant 0 : index
    %1 = vector.load %arg2[%c0_1, %c0_2] : memref<128x128xf32, #tpu.memory_space<vmem>>, vector<128x128xf32>
    %cst = arith.constant dense<0.000000e+00> : vector<128x128xf32>
    %2 = tpu.matmul %0, %1, %cst {dimension_numbers = #tpu.dot_dimension_numbers<[1], [0], [0], [1], [0, 0, 1, 1], [], []>} : vector<128x128xf32>, vector<128x128xf32>, vector<128x128xf32> -> vector<128x128xf32>
    %cst_3 = arith.constant dense<0.000000e+00> : vector<128xf32>
    %3 = vector.multi_reduction <add>, %2, %cst_3 [0] : vector<128x128xf32> to vector<128xf32>
    %4 = vector.shape_cast %3 : vector<128xf32> to vector<1x128xf32>
    %5 = arith.mulf %2, %2 : vector<128x128xf32>
    %cst_4 = arith.constant dense<0.000000e+00> : vector<128xf32>
    %6 = vector.multi_reduction <add>, %5, %cst_4 [0] : vector<128x128xf32> to vector<128xf32>
    %7 = vector.shape_cast %6 : vector<128xf32> to vector<1x128xf32>
    %cst_5 = arith.constant 7.812500e-03 : f32
    %8 = vector.broadcast %cst_5 : f32 to vector<1x128xf32>
    %9 = arith.mulf %4, %8 : vector<1x128xf32>
    %cst_6 = arith.constant 7.812500e-03 : f32
    %10 = vector.broadcast %cst_6 : f32 to vector<1x128xf32>
    %11 = arith.mulf %7, %10 : vector<1x128xf32>
    %12 = arith.mulf %9, %9 : vector<1x128xf32>
    %13 = arith.subf %11, %12 : vector<1x128xf32>
    %cst_7 = arith.constant 0.000000e+00 : f32
    %14 = vector.broadcast %cst_7 : f32 to vector<1x128xf32>
    %15 = arith.maximumf %13, %14 : vector<1x128xf32>
    %cst_8 = arith.constant 9.99999974E-6 : f32
    %16 = vector.broadcast %cst_8 : f32 to vector<1x128xf32>
    %17 = arith.addf %15, %16 : vector<1x128xf32>
    %18 = math.rsqrt %17 : vector<1x128xf32>
    %c0_9 = arith.constant 0 : index
    %c0_10 = arith.constant 0 : index
    %19 = vector.load %arg3[%c0_9, %c0_10] : memref<1x128xf32, #tpu.memory_space<vmem>>, vector<1x128xf32>
    %20 = arith.mulf %19, %18 : vector<1x128xf32>
    %c0_11 = arith.constant 0 : index
    %c0_12 = arith.constant 0 : index
    %21 = vector.load %arg4[%c0_11, %c0_12] : memref<1x128xf32, #tpu.memory_space<vmem>>, vector<1x128xf32>
    %22 = arith.mulf %9, %20 : vector<1x128xf32>
    %23 = arith.subf %21, %22 : vector<1x128xf32>
    %24 = vector.broadcast %20 : vector<1x128xf32> to vector<128x128xf32>
    %25 = arith.mulf %2, %24 : vector<128x128xf32>
    %26 = vector.broadcast %23 : vector<1x128xf32> to vector<128x128xf32>
    %27 = arith.addf %25, %26 : vector<128x128xf32>
    %c0_13 = arith.constant 0 : index
    %c0_14 = arith.constant 0 : index
    %28 = vector.load %arg5[%c0_13, %c0_14] : memref<128x128xf32, #tpu.memory_space<vmem>>, vector<128x128xf32>
    %29 = arith.addf %27, %28 : vector<128x128xf32>
    %cst_15 = arith.constant 0.000000e+00 : f32
    %30 = vector.broadcast %cst_15 : f32 to vector<128x128xf32>
    %31 = arith.maximumf %29, %30 : vector<128x128xf32>
    %c0_16 = arith.constant 0 : index
    %c0_17 = arith.constant 0 : index
    %32 = vector.load %arg6[%c0_16, %c0_17] : memref<128x128xf32, #tpu.memory_space<vmem>>, vector<128x128xf32>
    tpu.vector_store %arg6[%c0_16, %c0_17], %31 {strides = array<i32>} : memref<128x128xf32, #tpu.memory_space<vmem>>, vector<128x128xf32>,
    return
  }
  func.func @transform_0(%arg0: i32) -> (i32, i32) {
    %c0_i32 = arith.constant 0 : i32
    %c0_i32_0 = arith.constant 0 : i32
    %c0_i32_1 = arith.constant 0 : i32
    return %c0_i32, %c0_i32_0 : i32, i32
  }
  func.func @transform_1(%arg0: i32) -> (i32, i32) {
    %c0_i32 = arith.constant 0 : i32
    %c0_i32_0 = arith.constant 0 : i32
    %c0_i32_1 = arith.constant 0 : i32
    return %c0_i32, %c0_i32_0 : i32, i32
  }
  func.func @transform_2(%arg0: i32) -> (i32, i32) {
    %c0_i32 = arith.constant 0 : i32
    %c0_i32_0 = arith.constant 0 : i32
    %c0_i32_1 = arith.constant 0 : i32
    return %c0_i32, %c0_i32_0 : i32, i32
  }
  func.func @transform_3(%arg0: i32) -> (i32, i32) {
    %c0_i32 = arith.constant 0 : i32
    %c0_i32_0 = arith.constant 0 : i32
    %c0_i32_1 = arith.constant 0 : i32
    return %c0_i32, %c0_i32_0 : i32, i32
  }
  func.func @transform_4(%arg0: i32) -> (i32, i32) {
    %c0_i32 = arith.constant 0 : i32
    %c0_i32_0 = arith.constant 0 : i32
    %c0_i32_1 = arith.constant 0 : i32
    return %c0_i32, %c0_i32_0 : i32, i32
  }
  func.func @transform_5(%arg0: i32) -> (i32, i32) {
    %c0_i32 = arith.constant 0 : i32
    %c0_i32_0 = arith.constant 0 : i32
    %c0_i32_1 = arith.constant 0 : i32
    return %c0_i32, %c0_i32_0 : i32, i32
  }
}

module attributes {stable_mosaic.version = 11 : i64} {
  func.func @_fused_conv_bn_kernel(%arg0: i32, %arg1: memref<32x128xf32, #tpu.memory_space<vmem>>, %arg2: memref<128x128xf32, #tpu.memory_space<vmem>>, %arg3: memref<1x128xf32, #tpu.memory_space<vmem>>, %arg4: memref<1x128xf32, #tpu.memory_space<vmem>>, %arg5: memref<32x128xf32, #tpu.memory_space<vmem>>) attributes {dimension_semantics = [#tpu.dimension_semantics<arbitrary>], iteration_bounds = array<i64: 1>, scalar_prefetch = 0 : i64, scratch_operands = 0 : i64, tpu.core_type = #tpu.core_type<tc>, window_params = [{pipeline_mode = #tpu.pipeline_mode<synchronous>, transform_indices = @transform_0, window_bounds = array<i64: 32, 128>}, {pipeline_mode = #tpu.pipeline_mode<synchronous>, transform_indices = @transform_1, window_bounds = array<i64: 128, 128>}, {pipeline_mode = #tpu.pipeline_mode<synchronous>, transform_indices = @transform_2, window_bounds = array<i64: 1, 128>}, {pipeline_mode = #tpu.pipeline_mode<synchronous>, transform_indices = @transform_3, window_bounds = array<i64: 1, 128>}, {pipeline_mode = #tpu.pipeline_mode<synchronous>, transform_indices = @transform_4, window_bounds = array<i64: 32, 128>}]} {
    %c0 = arith.constant 0 : index
    %c0_0 = arith.constant 0 : index
    %0 = vector.load %arg1[%c0, %c0_0] : memref<32x128xf32, #tpu.memory_space<vmem>>, vector<32x128xf32>
    %c0_1 = arith.constant 0 : index
    %c0_2 = arith.constant 0 : index
    %1 = vector.load %arg2[%c0_1, %c0_2] : memref<128x128xf32, #tpu.memory_space<vmem>>, vector<128x128xf32>
    %cst = arith.constant dense<0.000000e+00> : vector<32x128xf32>
    %2 = tpu.matmul %0, %1, %cst {dimension_numbers = #tpu.dot_dimension_numbers<[1], [0], [0], [1], [0, 0, 1, 1], [], []>} : vector<32x128xf32>, vector<128x128xf32>, vector<32x128xf32> -> vector<32x128xf32>
    %cst_3 = arith.constant dense<0.000000e+00> : vector<128xf32>
    %3 = vector.multi_reduction <add>, %2, %cst_3 [0] : vector<32x128xf32> to vector<128xf32>
    %4 = vector.shape_cast %3 : vector<128xf32> to vector<1x128xf32>
    %5 = arith.mulf %2, %2 : vector<32x128xf32>
    %cst_4 = arith.constant dense<0.000000e+00> : vector<128xf32>
    %6 = vector.multi_reduction <add>, %5, %cst_4 [0] : vector<32x128xf32> to vector<128xf32>
    %7 = vector.shape_cast %6 : vector<128xf32> to vector<1x128xf32>
    %cst_5 = arith.constant 3.125000e-02 : f32
    %8 = vector.broadcast %cst_5 : f32 to vector<1x128xf32>
    %9 = arith.mulf %4, %8 : vector<1x128xf32>
    %cst_6 = arith.constant 3.125000e-02 : f32
    %10 = vector.broadcast %cst_6 : f32 to vector<1x128xf32>
    %11 = arith.mulf %7, %10 : vector<1x128xf32>
    %12 = arith.mulf %9, %9 : vector<1x128xf32>
    %13 = arith.subf %11, %12 : vector<1x128xf32>
    %cst_7 = arith.constant 0.000000e+00 : f32
    %14 = vector.broadcast %cst_7 : f32 to vector<1x128xf32>
    %15 = arith.maximumf %13, %14 : vector<1x128xf32>
    %cst_8 = arith.constant 9.99999974E-6 : f32
    %16 = vector.broadcast %cst_8 : f32 to vector<1x128xf32>
    %17 = arith.addf %15, %16 : vector<1x128xf32>
    %18 = math.rsqrt %17 : vector<1x128xf32>
    %c0_9 = arith.constant 0 : index
    %c0_10 = arith.constant 0 : index
    %19 = vector.load %arg3[%c0_9, %c0_10] : memref<1x128xf32, #tpu.memory_space<vmem>>, vector<1x128xf32>
    %20 = arith.mulf %19, %18 : vector<1x128xf32>
    %c0_11 = arith.constant 0 : index
    %c0_12 = arith.constant 0 : index
    %21 = vector.load %arg4[%c0_11, %c0_12] : memref<1x128xf32, #tpu.memory_space<vmem>>, vector<1x128xf32>
    %22 = arith.mulf %9, %20 : vector<1x128xf32>
    %23 = arith.subf %21, %22 : vector<1x128xf32>
    %24 = vector.broadcast %20 : vector<1x128xf32> to vector<32x128xf32>
    %25 = arith.mulf %2, %24 : vector<32x128xf32>
    %26 = vector.broadcast %23 : vector<1x128xf32> to vector<32x128xf32>
    %27 = arith.addf %25, %26 : vector<32x128xf32>
    %cst_13 = arith.constant 0.000000e+00 : f32
    %28 = vector.broadcast %cst_13 : f32 to vector<32x128xf32>
    %29 = arith.maximumf %27, %28 : vector<32x128xf32>
    %c0_14 = arith.constant 0 : index
    %c0_15 = arith.constant 0 : index
    %30 = vector.load %arg5[%c0_14, %c0_15] : memref<32x128xf32, #tpu.memory_space<vmem>>, vector<32x128xf32>
    tpu.vector_store %arg5[%c0_14, %c0_15], %29 {strides = array<i32>} : memref<32x128xf32, #tpu.memory_space<vmem>>, vector<32x128xf32>,
    return
  }
  func.func @transform_0(%arg0: i32) -> (i32, i32) {
    %c0_i32 = arith.constant 0 : i32
    %c0_i32_0 = arith.constant 0 : i32
    %c0_i32_1 = arith.constant 0 : i32
    return %c0_i32, %c0_i32_0 : i32, i32
  }
  func.func @transform_1(%arg0: i32) -> (i32, i32) {
    %c0_i32 = arith.constant 0 : i32
    %c0_i32_0 = arith.constant 0 : i32
    %c0_i32_1 = arith.constant 0 : i32
    return %c0_i32, %c0_i32_0 : i32, i32
  }
  func.func @transform_2(%arg0: i32) -> (i32, i32) {
    %c0_i32 = arith.constant 0 : i32
    %c0_i32_0 = arith.constant 0 : i32
    %c0_i32_1 = arith.constant 0 : i32
    return %c0_i32, %c0_i32_0 : i32, i32
  }
  func.func @transform_3(%arg0: i32) -> (i32, i32) {
    %c0_i32 = arith.constant 0 : i32
    %c0_i32_0 = arith.constant 0 : i32
    %c0_i32_1 = arith.constant 0 : i32
    return %c0_i32, %c0_i32_0 : i32, i32
  }
  func.func @transform_4(%arg0: i32) -> (i32, i32) {
    %c0_i32 = arith.constant 0 : i32
    %c0_i32_0 = arith.constant 0 : i32
    %c0_i32_1 = arith.constant 0 : i32
    return %c0_i32, %c0_i32_0 : i32, i32
  }
}

module attributes {stable_mosaic.version = 11 : i64} {
  func.func @_fused_conv_bn_kernel(%arg0: i32, %arg1: memref<32x128xf32, #tpu.memory_space<vmem>>, %arg2: memref<128x128xf32, #tpu.memory_space<vmem>>, %arg3: memref<1x128xf32, #tpu.memory_space<vmem>>, %arg4: memref<1x128xf32, #tpu.memory_space<vmem>>, %arg5: memref<32x128xf32, #tpu.memory_space<vmem>>) attributes {dimension_semantics = [#tpu.dimension_semantics<arbitrary>], iteration_bounds = array<i64: 1>, scalar_prefetch = 0 : i64, scratch_operands = 0 : i64, tpu.core_type = #tpu.core_type<tc>, window_params = [{pipeline_mode = #tpu.pipeline_mode<synchronous>, transform_indices = @transform_0, window_bounds = array<i64: 32, 128>}, {pipeline_mode = #tpu.pipeline_mode<synchronous>, transform_indices = @transform_1, window_bounds = array<i64: 128, 128>}, {pipeline_mode = #tpu.pipeline_mode<synchronous>, transform_indices = @transform_2, window_bounds = array<i64: 1, 128>}, {pipeline_mode = #tpu.pipeline_mode<synchronous>, transform_indices = @transform_3, window_bounds = array<i64: 1, 128>}, {pipeline_mode = #tpu.pipeline_mode<synchronous>, transform_indices = @transform_4, window_bounds = array<i64: 32, 128>}]} {
    %c0 = arith.constant 0 : index
    %c0_0 = arith.constant 0 : index
    %0 = vector.load %arg1[%c0, %c0_0] : memref<32x128xf32, #tpu.memory_space<vmem>>, vector<32x128xf32>
    %c0_1 = arith.constant 0 : index
    %c0_2 = arith.constant 0 : index
    %1 = vector.load %arg2[%c0_1, %c0_2] : memref<128x128xf32, #tpu.memory_space<vmem>>, vector<128x128xf32>
    %cst = arith.constant dense<0.000000e+00> : vector<32x128xf32>
    %2 = tpu.matmul %0, %1, %cst {dimension_numbers = #tpu.dot_dimension_numbers<[1], [0], [0], [1], [0, 0, 1, 1], [], []>} : vector<32x128xf32>, vector<128x128xf32>, vector<32x128xf32> -> vector<32x128xf32>
    %cst_3 = arith.constant dense<0.000000e+00> : vector<128xf32>
    %3 = vector.multi_reduction <add>, %2, %cst_3 [0] : vector<32x128xf32> to vector<128xf32>
    %4 = vector.shape_cast %3 : vector<128xf32> to vector<1x128xf32>
    %5 = arith.mulf %2, %2 : vector<32x128xf32>
    %cst_4 = arith.constant dense<0.000000e+00> : vector<128xf32>
    %6 = vector.multi_reduction <add>, %5, %cst_4 [0] : vector<32x128xf32> to vector<128xf32>
    %7 = vector.shape_cast %6 : vector<128xf32> to vector<1x128xf32>
    %cst_5 = arith.constant 3.125000e-02 : f32
    %8 = vector.broadcast %cst_5 : f32 to vector<1x128xf32>
    %9 = arith.mulf %4, %8 : vector<1x128xf32>
    %cst_6 = arith.constant 3.125000e-02 : f32
    %10 = vector.broadcast %cst_6 : f32 to vector<1x128xf32>
    %11 = arith.mulf %7, %10 : vector<1x128xf32>
    %12 = arith.mulf %9, %9 : vector<1x128xf32>
    %13 = arith.subf %11, %12 : vector<1x128xf32>
    %cst_7 = arith.constant 0.000000e+00 : f32
    %14 = vector.broadcast %cst_7 : f32 to vector<1x128xf32>
    %15 = arith.maximumf %13, %14 : vector<1x128xf32>
    %cst_8 = arith.constant 9.99999974E-6 : f32
    %16 = vector.broadcast %cst_8 : f32 to vector<1x128xf32>
    %17 = arith.addf %15, %16 : vector<1x128xf32>
    %18 = math.rsqrt %17 : vector<1x128xf32>
    %c0_9 = arith.constant 0 : index
    %c0_10 = arith.constant 0 : index
    %19 = vector.load %arg3[%c0_9, %c0_10] : memref<1x128xf32, #tpu.memory_space<vmem>>, vector<1x128xf32>
    %20 = arith.mulf %19, %18 : vector<1x128xf32>
    %c0_11 = arith.constant 0 : index
    %c0_12 = arith.constant 0 : index
    %21 = vector.load %arg4[%c0_11, %c0_12] : memref<1x128xf32, #tpu.memory_space<vmem>>, vector<1x128xf32>
    %22 = arith.mulf %9, %20 : vector<1x128xf32>
    %23 = arith.subf %21, %22 : vector<1x128xf32>
    %24 = vector.broadcast %20 : vector<1x128xf32> to vector<32x128xf32>
    %25 = arith.mulf %2, %24 : vector<32x128xf32>
    %26 = vector.broadcast %23 : vector<1x128xf32> to vector<32x128xf32>
    %27 = arith.addf %25, %26 : vector<32x128xf32>
    %c0_13 = arith.constant 0 : index
    %c0_14 = arith.constant 0 : index
    %28 = vector.load %arg5[%c0_13, %c0_14] : memref<32x128xf32, #tpu.memory_space<vmem>>, vector<32x128xf32>
    tpu.vector_store %arg5[%c0_13, %c0_14], %27 {strides = array<i32>} : memref<32x128xf32, #tpu.memory_space<vmem>>, vector<32x128xf32>,
    return
  }
  func.func @transform_0(%arg0: i32) -> (i32, i32) {
    %c0_i32 = arith.constant 0 : i32
    %c0_i32_0 = arith.constant 0 : i32
    %c0_i32_1 = arith.constant 0 : i32
    return %c0_i32, %c0_i32_0 : i32, i32
  }
  func.func @transform_1(%arg0: i32) -> (i32, i32) {
    %c0_i32 = arith.constant 0 : i32
    %c0_i32_0 = arith.constant 0 : i32
    %c0_i32_1 = arith.constant 0 : i32
    return %c0_i32, %c0_i32_0 : i32, i32
  }
  func.func @transform_2(%arg0: i32) -> (i32, i32) {
    %c0_i32 = arith.constant 0 : i32
    %c0_i32_0 = arith.constant 0 : i32
    %c0_i32_1 = arith.constant 0 : i32
    return %c0_i32, %c0_i32_0 : i32, i32
  }
  func.func @transform_3(%arg0: i32) -> (i32, i32) {
    %c0_i32 = arith.constant 0 : i32
    %c0_i32_0 = arith.constant 0 : i32
    %c0_i32_1 = arith.constant 0 : i32
    return %c0_i32, %c0_i32_0 : i32, i32
  }
  func.func @transform_4(%arg0: i32) -> (i32, i32) {
    %c0_i32 = arith.constant 0 : i32
    %c0_i32_0 = arith.constant 0 : i32
    %c0_i32_1 = arith.constant 0 : i32
    return %c0_i32, %c0_i32_0 : i32, i32
  }
}

module attributes {stable_mosaic.version = 11 : i64} {
  func.func @_fused_conv_bn_kernel(%arg0: i32, %arg1: memref<32x128xf32, #tpu.memory_space<vmem>>, %arg2: memref<128x128xf32, #tpu.memory_space<vmem>>, %arg3: memref<1x128xf32, #tpu.memory_space<vmem>>, %arg4: memref<1x128xf32, #tpu.memory_space<vmem>>, %arg5: memref<32x128xf32, #tpu.memory_space<vmem>>, %arg6: memref<32x128xf32, #tpu.memory_space<vmem>>) attributes {dimension_semantics = [#tpu.dimension_semantics<arbitrary>], iteration_bounds = array<i64: 1>, scalar_prefetch = 0 : i64, scratch_operands = 0 : i64, tpu.core_type = #tpu.core_type<tc>, window_params = [{pipeline_mode = #tpu.pipeline_mode<synchronous>, transform_indices = @transform_0, window_bounds = array<i64: 32, 128>}, {pipeline_mode = #tpu.pipeline_mode<synchronous>, transform_indices = @transform_1, window_bounds = array<i64: 128, 128>}, {pipeline_mode = #tpu.pipeline_mode<synchronous>, transform_indices = @transform_2, window_bounds = array<i64: 1, 128>}, {pipeline_mode = #tpu.pipeline_mode<synchronous>, transform_indices = @transform_3, window_bounds = array<i64: 1, 128>}, {pipeline_mode = #tpu.pipeline_mode<synchronous>, transform_indices = @transform_4, window_bounds = array<i64: 32, 128>}, {pipeline_mode = #tpu.pipeline_mode<synchronous>, transform_indices = @transform_5, window_bounds = array<i64: 32, 128>}]} {
    %c0 = arith.constant 0 : index
    %c0_0 = arith.constant 0 : index
    %0 = vector.load %arg1[%c0, %c0_0] : memref<32x128xf32, #tpu.memory_space<vmem>>, vector<32x128xf32>
    %c0_1 = arith.constant 0 : index
    %c0_2 = arith.constant 0 : index
    %1 = vector.load %arg2[%c0_1, %c0_2] : memref<128x128xf32, #tpu.memory_space<vmem>>, vector<128x128xf32>
    %cst = arith.constant dense<0.000000e+00> : vector<32x128xf32>
    %2 = tpu.matmul %0, %1, %cst {dimension_numbers = #tpu.dot_dimension_numbers<[1], [0], [0], [1], [0, 0, 1, 1], [], []>} : vector<32x128xf32>, vector<128x128xf32>, vector<32x128xf32> -> vector<32x128xf32>
    %cst_3 = arith.constant dense<0.000000e+00> : vector<128xf32>
    %3 = vector.multi_reduction <add>, %2, %cst_3 [0] : vector<32x128xf32> to vector<128xf32>
    %4 = vector.shape_cast %3 : vector<128xf32> to vector<1x128xf32>
    %5 = arith.mulf %2, %2 : vector<32x128xf32>
    %cst_4 = arith.constant dense<0.000000e+00> : vector<128xf32>
    %6 = vector.multi_reduction <add>, %5, %cst_4 [0] : vector<32x128xf32> to vector<128xf32>
    %7 = vector.shape_cast %6 : vector<128xf32> to vector<1x128xf32>
    %cst_5 = arith.constant 3.125000e-02 : f32
    %8 = vector.broadcast %cst_5 : f32 to vector<1x128xf32>
    %9 = arith.mulf %4, %8 : vector<1x128xf32>
    %cst_6 = arith.constant 3.125000e-02 : f32
    %10 = vector.broadcast %cst_6 : f32 to vector<1x128xf32>
    %11 = arith.mulf %7, %10 : vector<1x128xf32>
    %12 = arith.mulf %9, %9 : vector<1x128xf32>
    %13 = arith.subf %11, %12 : vector<1x128xf32>
    %cst_7 = arith.constant 0.000000e+00 : f32
    %14 = vector.broadcast %cst_7 : f32 to vector<1x128xf32>
    %15 = arith.maximumf %13, %14 : vector<1x128xf32>
    %cst_8 = arith.constant 9.99999974E-6 : f32
    %16 = vector.broadcast %cst_8 : f32 to vector<1x128xf32>
    %17 = arith.addf %15, %16 : vector<1x128xf32>
    %18 = math.rsqrt %17 : vector<1x128xf32>
    %c0_9 = arith.constant 0 : index
    %c0_10 = arith.constant 0 : index
    %19 = vector.load %arg3[%c0_9, %c0_10] : memref<1x128xf32, #tpu.memory_space<vmem>>, vector<1x128xf32>
    %20 = arith.mulf %19, %18 : vector<1x128xf32>
    %c0_11 = arith.constant 0 : index
    %c0_12 = arith.constant 0 : index
    %21 = vector.load %arg4[%c0_11, %c0_12] : memref<1x128xf32, #tpu.memory_space<vmem>>, vector<1x128xf32>
    %22 = arith.mulf %9, %20 : vector<1x128xf32>
    %23 = arith.subf %21, %22 : vector<1x128xf32>
    %24 = vector.broadcast %20 : vector<1x128xf32> to vector<32x128xf32>
    %25 = arith.mulf %2, %24 : vector<32x128xf32>
    %26 = vector.broadcast %23 : vector<1x128xf32> to vector<32x128xf32>
    %27 = arith.addf %25, %26 : vector<32x128xf32>
    %c0_13 = arith.constant 0 : index
    %c0_14 = arith.constant 0 : index
    %28 = vector.load %arg5[%c0_13, %c0_14] : memref<32x128xf32, #tpu.memory_space<vmem>>, vector<32x128xf32>
    %29 = arith.addf %27, %28 : vector<32x128xf32>
    %cst_15 = arith.constant 0.000000e+00 : f32
    %30 = vector.broadcast %cst_15 : f32 to vector<32x128xf32>
    %31 = arith.maximumf %29, %30 : vector<32x128xf32>
    %c0_16 = arith.constant 0 : index
    %c0_17 = arith.constant 0 : index
    %32 = vector.load %arg6[%c0_16, %c0_17] : memref<32x128xf32, #tpu.memory_space<vmem>>, vector<32x128xf32>
    tpu.vector_store %arg6[%c0_16, %c0_17], %31 {strides = array<i32>} : memref<32x128xf32, #tpu.memory_space<vmem>>, vector<32x128xf32>,
    return
  }
  func.func @transform_0(%arg0: i32) -> (i32, i32) {
    %c0_i32 = arith.constant 0 : i32
    %c0_i32_0 = arith.constant 0 : i32
    %c0_i32_1 = arith.constant 0 : i32
    return %c0_i32, %c0_i32_0 : i32, i32
  }
  func.func @transform_1(%arg0: i32) -> (i32, i32) {
    %c0_i32 = arith.constant 0 : i32
    %c0_i32_0 = arith.constant 0 : i32
    %c0_i32_1 = arith.constant 0 : i32
    return %c0_i32, %c0_i32_0 : i32, i32
  }
  func.func @transform_2(%arg0: i32) -> (i32, i32) {
    %c0_i32 = arith.constant 0 : i32
    %c0_i32_0 = arith.constant 0 : i32
    %c0_i32_1 = arith.constant 0 : i32
    return %c0_i32, %c0_i32_0 : i32, i32
  }
  func.func @transform_3(%arg0: i32) -> (i32, i32) {
    %c0_i32 = arith.constant 0 : i32
    %c0_i32_0 = arith.constant 0 : i32
    %c0_i32_1 = arith.constant 0 : i32
    return %c0_i32, %c0_i32_0 : i32, i32
  }
  func.func @transform_4(%arg0: i32) -> (i32, i32) {
    %c0_i32 = arith.constant 0 : i32
    %c0_i32_0 = arith.constant 0 : i32
    %c0_i32_1 = arith.constant 0 : i32
    return %c0_i32, %c0_i32_0 : i32, i32
  }
  func.func @transform_5(%arg0: i32) -> (i32, i32) {
    %c0_i32 = arith.constant 0 : i32
    %c0_i32_0 = arith.constant 0 : i32
    %c0_i32_1 = arith.constant 0 : i32
    return %c0_i32, %c0_i32_0 : i32, i32
  }
}

module attributes {stable_mosaic.version = 11 : i64} {
  func.func @_fused_conv_bn_kernel(%arg0: i32, %arg1: memref<72x128xf32, #tpu.memory_space<vmem>>, %arg2: memref<128x128xf32, #tpu.memory_space<vmem>>, %arg3: memref<1x128xf32, #tpu.memory_space<vmem>>, %arg4: memref<1x128xf32, #tpu.memory_space<vmem>>, %arg5: memref<72x128xf32, #tpu.memory_space<vmem>>) attributes {dimension_semantics = [#tpu.dimension_semantics<arbitrary>], iteration_bounds = array<i64: 1>, scalar_prefetch = 0 : i64, scratch_operands = 0 : i64, tpu.core_type = #tpu.core_type<tc>, window_params = [{pipeline_mode = #tpu.pipeline_mode<synchronous>, transform_indices = @transform_0, window_bounds = array<i64: 72, 128>}, {pipeline_mode = #tpu.pipeline_mode<synchronous>, transform_indices = @transform_1, window_bounds = array<i64: 128, 128>}, {pipeline_mode = #tpu.pipeline_mode<synchronous>, transform_indices = @transform_2, window_bounds = array<i64: 1, 128>}, {pipeline_mode = #tpu.pipeline_mode<synchronous>, transform_indices = @transform_3, window_bounds = array<i64: 1, 128>}, {pipeline_mode = #tpu.pipeline_mode<synchronous>, transform_indices = @transform_4, window_bounds = array<i64: 72, 128>}]} {
    %c0 = arith.constant 0 : index
    %c0_0 = arith.constant 0 : index
    %0 = vector.load %arg1[%c0, %c0_0] : memref<72x128xf32, #tpu.memory_space<vmem>>, vector<72x128xf32>
    %c0_1 = arith.constant 0 : index
    %c0_2 = arith.constant 0 : index
    %1 = vector.load %arg2[%c0_1, %c0_2] : memref<128x128xf32, #tpu.memory_space<vmem>>, vector<128x128xf32>
    %cst = arith.constant dense<0.000000e+00> : vector<72x128xf32>
    %2 = tpu.matmul %0, %1, %cst {dimension_numbers = #tpu.dot_dimension_numbers<[1], [0], [0], [1], [0, 0, 1, 1], [], []>} : vector<72x128xf32>, vector<128x128xf32>, vector<72x128xf32> -> vector<72x128xf32>
    %cst_3 = arith.constant dense<0.000000e+00> : vector<128xf32>
    %3 = vector.multi_reduction <add>, %2, %cst_3 [0] : vector<72x128xf32> to vector<128xf32>
    %4 = vector.shape_cast %3 : vector<128xf32> to vector<1x128xf32>
    %5 = arith.mulf %2, %2 : vector<72x128xf32>
    %cst_4 = arith.constant dense<0.000000e+00> : vector<128xf32>
    %6 = vector.multi_reduction <add>, %5, %cst_4 [0] : vector<72x128xf32> to vector<128xf32>
    %7 = vector.shape_cast %6 : vector<128xf32> to vector<1x128xf32>
    %cst_5 = arith.constant 0.013888889 : f32
    %8 = vector.broadcast %cst_5 : f32 to vector<1x128xf32>
    %9 = arith.mulf %4, %8 : vector<1x128xf32>
    %cst_6 = arith.constant 0.013888889 : f32
    %10 = vector.broadcast %cst_6 : f32 to vector<1x128xf32>
    %11 = arith.mulf %7, %10 : vector<1x128xf32>
    %12 = arith.mulf %9, %9 : vector<1x128xf32>
    %13 = arith.subf %11, %12 : vector<1x128xf32>
    %cst_7 = arith.constant 0.000000e+00 : f32
    %14 = vector.broadcast %cst_7 : f32 to vector<1x128xf32>
    %15 = arith.maximumf %13, %14 : vector<1x128xf32>
    %cst_8 = arith.constant 9.99999974E-6 : f32
    %16 = vector.broadcast %cst_8 : f32 to vector<1x128xf32>
    %17 = arith.addf %15, %16 : vector<1x128xf32>
    %18 = math.rsqrt %17 : vector<1x128xf32>
    %c0_9 = arith.constant 0 : index
    %c0_10 = arith.constant 0 : index
    %19 = vector.load %arg3[%c0_9, %c0_10] : memref<1x128xf32, #tpu.memory_space<vmem>>, vector<1x128xf32>
    %20 = arith.mulf %19, %18 : vector<1x128xf32>
    %c0_11 = arith.constant 0 : index
    %c0_12 = arith.constant 0 : index
    %21 = vector.load %arg4[%c0_11, %c0_12] : memref<1x128xf32, #tpu.memory_space<vmem>>, vector<1x128xf32>
    %22 = arith.mulf %9, %20 : vector<1x128xf32>
    %23 = arith.subf %21, %22 : vector<1x128xf32>
    %24 = vector.broadcast %20 : vector<1x128xf32> to vector<72x128xf32>
    %25 = arith.mulf %2, %24 : vector<72x128xf32>
    %26 = vector.broadcast %23 : vector<1x128xf32> to vector<72x128xf32>
    %27 = arith.addf %25, %26 : vector<72x128xf32>
    %cst_13 = arith.constant 0.000000e+00 : f32
    %28 = vector.broadcast %cst_13 : f32 to vector<72x128xf32>
    %29 = arith.maximumf %27, %28 : vector<72x128xf32>
    %c0_14 = arith.constant 0 : index
    %c0_15 = arith.constant 0 : index
    %30 = vector.load %arg5[%c0_14, %c0_15] : memref<72x128xf32, #tpu.memory_space<vmem>>, vector<72x128xf32>
    tpu.vector_store %arg5[%c0_14, %c0_15], %29 {strides = array<i32>} : memref<72x128xf32, #tpu.memory_space<vmem>>, vector<72x128xf32>,
    return
  }
  func.func @transform_0(%arg0: i32) -> (i32, i32) {
    %c0_i32 = arith.constant 0 : i32
    %c0_i32_0 = arith.constant 0 : i32
    %c0_i32_1 = arith.constant 0 : i32
    return %c0_i32, %c0_i32_0 : i32, i32
  }
  func.func @transform_1(%arg0: i32) -> (i32, i32) {
    %c0_i32 = arith.constant 0 : i32
    %c0_i32_0 = arith.constant 0 : i32
    %c0_i32_1 = arith.constant 0 : i32
    return %c0_i32, %c0_i32_0 : i32, i32
  }
  func.func @transform_2(%arg0: i32) -> (i32, i32) {
    %c0_i32 = arith.constant 0 : i32
    %c0_i32_0 = arith.constant 0 : i32
    %c0_i32_1 = arith.constant 0 : i32
    return %c0_i32, %c0_i32_0 : i32, i32
  }
  func.func @transform_3(%arg0: i32) -> (i32, i32) {
    %c0_i32 = arith.constant 0 : i32
    %c0_i32_0 = arith.constant 0 : i32
    %c0_i32_1 = arith.constant 0 : i32
    return %c0_i32, %c0_i32_0 : i32, i32
  }
  func.func @transform_4(%arg0: i32) -> (i32, i32) {
    %c0_i32 = arith.constant 0 : i32
    %c0_i32_0 = arith.constant 0 : i32
    %c0_i32_1 = arith.constant 0 : i32
    return %c0_i32, %c0_i32_0 : i32, i32
  }
}

module attributes {stable_mosaic.version = 11 : i64} {
  func.func @_max_over_taps_kernel(%arg0: i32, %arg1: memref<9x32x2xf32, #tpu.memory_space<vmem>>, %arg2: memref<32x2xf32, #tpu.memory_space<vmem>>) attributes {dimension_semantics = [#tpu.dimension_semantics<arbitrary>], iteration_bounds = array<i64: 1>, scalar_prefetch = 0 : i64, scratch_operands = 0 : i64, tpu.core_type = #tpu.core_type<tc>, window_params = [{pipeline_mode = #tpu.pipeline_mode<synchronous>, transform_indices = @transform_0, window_bounds = array<i64: 9, 32, 2>}, {pipeline_mode = #tpu.pipeline_mode<synchronous>, transform_indices = @transform_1, window_bounds = array<i64: 32, 2>}]} {
    %c0 = arith.constant 0 : index
    %c0_0 = arith.constant 0 : index
    %c0_1 = arith.constant 0 : index
    %0 = vector.load %arg1[%c0, %c0_0, %c0_1] : memref<9x32x2xf32, #tpu.memory_space<vmem>>, vector<9x32x2xf32>
    %cst = arith.constant dense<0xFF800000> : vector<32x2xf32>
    %1 = vector.multi_reduction <maximumf>, %0, %cst [0] : vector<9x32x2xf32> to vector<32x2xf32>
    %c0_2 = arith.constant 0 : index
    %c0_3 = arith.constant 0 : index
    %2 = vector.load %arg2[%c0_2, %c0_3] : memref<32x2xf32, #tpu.memory_space<vmem>>, vector<32x2xf32>
    tpu.vector_store %arg2[%c0_2, %c0_3], %1 {strides = array<i32>} : memref<32x2xf32, #tpu.memory_space<vmem>>, vector<32x2xf32>,
    return
  }
  func.func @transform_0(%arg0: i32) -> (i32, i32, i32) {
    %c0_i32 = arith.constant 0 : i32
    %c0_i32_0 = arith.constant 0 : i32
    %c0_i32_1 = arith.constant 0 : i32
    %c0_i32_2 = arith.constant 0 : i32
    return %c0_i32, %c0_i32_0, %c0_i32_1 : i32, i32, i32
  }
  func.func @transform_1(%arg0: i32) -> (i32, i32) {
    %c0_i32 = arith.constant 0 : i32
    %c0_i32_0 = arith.constant 0 : i32
    %c0_i32_1 = arith.constant 0 : i32
    return %c0_i32, %c0_i32_0 : i32, i32
  }
}

module attributes {stable_mosaic.version = 11 : i64} {
  func.func @_max_over_taps_kernel(%arg0: i32, %arg1: memref<9x32x10xf32, #tpu.memory_space<vmem>>, %arg2: memref<32x10xf32, #tpu.memory_space<vmem>>) attributes {dimension_semantics = [#tpu.dimension_semantics<arbitrary>], iteration_bounds = array<i64: 1>, scalar_prefetch = 0 : i64, scratch_operands = 0 : i64, tpu.core_type = #tpu.core_type<tc>, window_params = [{pipeline_mode = #tpu.pipeline_mode<synchronous>, transform_indices = @transform_0, window_bounds = array<i64: 9, 32, 10>}, {pipeline_mode = #tpu.pipeline_mode<synchronous>, transform_indices = @transform_1, window_bounds = array<i64: 32, 10>}]} {
    %c0 = arith.constant 0 : index
    %c0_0 = arith.constant 0 : index
    %c0_1 = arith.constant 0 : index
    %0 = vector.load %arg1[%c0, %c0_0, %c0_1] : memref<9x32x10xf32, #tpu.memory_space<vmem>>, vector<9x32x10xf32>
    %cst = arith.constant dense<0xFF800000> : vector<32x10xf32>
    %1 = vector.multi_reduction <maximumf>, %0, %cst [0] : vector<9x32x10xf32> to vector<32x10xf32>
    %c0_2 = arith.constant 0 : index
    %c0_3 = arith.constant 0 : index
    %2 = vector.load %arg2[%c0_2, %c0_3] : memref<32x10xf32, #tpu.memory_space<vmem>>, vector<32x10xf32>
    tpu.vector_store %arg2[%c0_2, %c0_3], %1 {strides = array<i32>} : memref<32x10xf32, #tpu.memory_space<vmem>>, vector<32x10xf32>,
    return
  }
  func.func @transform_0(%arg0: i32) -> (i32, i32, i32) {
    %c0_i32 = arith.constant 0 : i32
    %c0_i32_0 = arith.constant 0 : i32
    %c0_i32_1 = arith.constant 0 : i32
    %c0_i32_2 = arith.constant 0 : i32
    return %c0_i32, %c0_i32_0, %c0_i32_1 : i32, i32, i32
  }
  func.func @transform_1(%arg0: i32) -> (i32, i32) {
    %c0_i32 = arith.constant 0 : i32
    %c0_i32_0 = arith.constant 0 : i32
    %c0_i32_1 = arith.constant 0 : i32
    return %c0_i32, %c0_i32_0 : i32, i32
  }
}

module attributes {stable_mosaic.version = 11 : i64} {
  func.func @_fused_conv_bn_kernel(%arg0: i32, %arg1: memref<8x256xf32, #tpu.memory_space<vmem>>, %arg2: memref<256x128xf32, #tpu.memory_space<vmem>>, %arg3: memref<1x128xf32, #tpu.memory_space<vmem>>, %arg4: memref<1x128xf32, #tpu.memory_space<vmem>>, %arg5: memref<8x128xf32, #tpu.memory_space<vmem>>) attributes {dimension_semantics = [#tpu.dimension_semantics<arbitrary>], iteration_bounds = array<i64: 1>, scalar_prefetch = 0 : i64, scratch_operands = 0 : i64, tpu.core_type = #tpu.core_type<tc>, window_params = [{pipeline_mode = #tpu.pipeline_mode<synchronous>, transform_indices = @transform_0, window_bounds = array<i64: 8, 256>}, {pipeline_mode = #tpu.pipeline_mode<synchronous>, transform_indices = @transform_1, window_bounds = array<i64: 256, 128>}, {pipeline_mode = #tpu.pipeline_mode<synchronous>, transform_indices = @transform_2, window_bounds = array<i64: 1, 128>}, {pipeline_mode = #tpu.pipeline_mode<synchronous>, transform_indices = @transform_3, window_bounds = array<i64: 1, 128>}, {pipeline_mode = #tpu.pipeline_mode<synchronous>, transform_indices = @transform_4, window_bounds = array<i64: 8, 128>}]} {
    %c0 = arith.constant 0 : index
    %c0_0 = arith.constant 0 : index
    %0 = vector.load %arg1[%c0, %c0_0] : memref<8x256xf32, #tpu.memory_space<vmem>>, vector<8x256xf32>
    %c0_1 = arith.constant 0 : index
    %c0_2 = arith.constant 0 : index
    %1 = vector.load %arg2[%c0_1, %c0_2] : memref<256x128xf32, #tpu.memory_space<vmem>>, vector<256x128xf32>
    %cst = arith.constant dense<0.000000e+00> : vector<8x128xf32>
    %2 = tpu.matmul %0, %1, %cst {dimension_numbers = #tpu.dot_dimension_numbers<[1], [0], [0], [1], [0, 0, 1, 1], [], []>} : vector<8x256xf32>, vector<256x128xf32>, vector<8x128xf32> -> vector<8x128xf32>
    %cst_3 = arith.constant dense<0.000000e+00> : vector<128xf32>
    %3 = vector.multi_reduction <add>, %2, %cst_3 [0] : vector<8x128xf32> to vector<128xf32>
    %4 = vector.shape_cast %3 : vector<128xf32> to vector<1x128xf32>
    %5 = arith.mulf %2, %2 : vector<8x128xf32>
    %cst_4 = arith.constant dense<0.000000e+00> : vector<128xf32>
    %6 = vector.multi_reduction <add>, %5, %cst_4 [0] : vector<8x128xf32> to vector<128xf32>
    %7 = vector.shape_cast %6 : vector<128xf32> to vector<1x128xf32>
    %cst_5 = arith.constant 1.250000e-01 : f32
    %8 = vector.broadcast %cst_5 : f32 to vector<1x128xf32>
    %9 = arith.mulf %4, %8 : vector<1x128xf32>
    %cst_6 = arith.constant 1.250000e-01 : f32
    %10 = vector.broadcast %cst_6 : f32 to vector<1x128xf32>
    %11 = arith.mulf %7, %10 : vector<1x128xf32>
    %12 = arith.mulf %9, %9 : vector<1x128xf32>
    %13 = arith.subf %11, %12 : vector<1x128xf32>
    %cst_7 = arith.constant 0.000000e+00 : f32
    %14 = vector.broadcast %cst_7 : f32 to vector<1x128xf32>
    %15 = arith.maximumf %13, %14 : vector<1x128xf32>
    %cst_8 = arith.constant 9.99999974E-6 : f32
    %16 = vector.broadcast %cst_8 : f32 to vector<1x128xf32>
    %17 = arith.addf %15, %16 : vector<1x128xf32>
    %18 = math.rsqrt %17 : vector<1x128xf32>
    %c0_9 = arith.constant 0 : index
    %c0_10 = arith.constant 0 : index
    %19 = vector.load %arg3[%c0_9, %c0_10] : memref<1x128xf32, #tpu.memory_space<vmem>>, vector<1x128xf32>
    %20 = arith.mulf %19, %18 : vector<1x128xf32>
    %c0_11 = arith.constant 0 : index
    %c0_12 = arith.constant 0 : index
    %21 = vector.load %arg4[%c0_11, %c0_12] : memref<1x128xf32, #tpu.memory_space<vmem>>, vector<1x128xf32>
    %22 = arith.mulf %9, %20 : vector<1x128xf32>
    %23 = arith.subf %21, %22 : vector<1x128xf32>
    %24 = vector.broadcast %20 : vector<1x128xf32> to vector<8x128xf32>
    %25 = arith.mulf %2, %24 : vector<8x128xf32>
    %26 = vector.broadcast %23 : vector<1x128xf32> to vector<8x128xf32>
    %27 = arith.addf %25, %26 : vector<8x128xf32>
    %cst_13 = arith.constant 0.000000e+00 : f32
    %28 = vector.broadcast %cst_13 : f32 to vector<8x128xf32>
    %29 = arith.maximumf %27, %28 : vector<8x128xf32>
    %c0_14 = arith.constant 0 : index
    %c0_15 = arith.constant 0 : index
    %30 = vector.load %arg5[%c0_14, %c0_15] : memref<8x128xf32, #tpu.memory_space<vmem>>, vector<8x128xf32>
    tpu.vector_store %arg5[%c0_14, %c0_15], %29 {strides = array<i32>} : memref<8x128xf32, #tpu.memory_space<vmem>>, vector<8x128xf32>,
    return
  }
  func.func @transform_0(%arg0: i32) -> (i32, i32) {
    %c0_i32 = arith.constant 0 : i32
    %c0_i32_0 = arith.constant 0 : i32
    %c0_i32_1 = arith.constant 0 : i32
    return %c0_i32, %c0_i32_0 : i32, i32
  }
  func.func @transform_1(%arg0: i32) -> (i32, i32) {
    %c0_i32 = arith.constant 0 : i32
    %c0_i32_0 = arith.constant 0 : i32
    %c0_i32_1 = arith.constant 0 : i32
    return %c0_i32, %c0_i32_0 : i32, i32
  }
  func.func @transform_2(%arg0: i32) -> (i32, i32) {
    %c0_i32 = arith.constant 0 : i32
    %c0_i32_0 = arith.constant 0 : i32
    %c0_i32_1 = arith.constant 0 : i32
    return %c0_i32, %c0_i32_0 : i32, i32
  }
  func.func @transform_3(%arg0: i32) -> (i32, i32) {
    %c0_i32 = arith.constant 0 : i32
    %c0_i32_0 = arith.constant 0 : i32
    %c0_i32_1 = arith.constant 0 : i32
    return %c0_i32, %c0_i32_0 : i32, i32
  }
  func.func @transform_4(%arg0: i32) -> (i32, i32) {
    %c0_i32 = arith.constant 0 : i32
    %c0_i32_0 = arith.constant 0 : i32
    %c0_i32_1 = arith.constant 0 : i32
    return %c0_i32, %c0_i32_0 : i32, i32
  }
}

module attributes {stable_mosaic.version = 11 : i64} {
  func.func @_fused_conv_bn_kernel(%arg0: i32, %arg1: memref<8x128xf32, #tpu.memory_space<vmem>>, %arg2: memref<128x128xf32, #tpu.memory_space<vmem>>, %arg3: memref<1x128xf32, #tpu.memory_space<vmem>>, %arg4: memref<1x128xf32, #tpu.memory_space<vmem>>, %arg5: memref<8x128xf32, #tpu.memory_space<vmem>>) attributes {dimension_semantics = [#tpu.dimension_semantics<arbitrary>], iteration_bounds = array<i64: 1>, scalar_prefetch = 0 : i64, scratch_operands = 0 : i64, tpu.core_type = #tpu.core_type<tc>, window_params = [{pipeline_mode = #tpu.pipeline_mode<synchronous>, transform_indices = @transform_0, window_bounds = array<i64: 8, 128>}, {pipeline_mode = #tpu.pipeline_mode<synchronous>, transform_indices = @transform_1, window_bounds = array<i64: 128, 128>}, {pipeline_mode = #tpu.pipeline_mode<synchronous>, transform_indices = @transform_2, window_bounds = array<i64: 1, 128>}, {pipeline_mode = #tpu.pipeline_mode<synchronous>, transform_indices = @transform_3, window_bounds = array<i64: 1, 128>}, {pipeline_mode = #tpu.pipeline_mode<synchronous>, transform_indices = @transform_4, window_bounds = array<i64: 8, 128>}]} {
    %c0 = arith.constant 0 : index
    %c0_0 = arith.constant 0 : index
    %0 = vector.load %arg1[%c0, %c0_0] : memref<8x128xf32, #tpu.memory_space<vmem>>, vector<8x128xf32>
    %c0_1 = arith.constant 0 : index
    %c0_2 = arith.constant 0 : index
    %1 = vector.load %arg2[%c0_1, %c0_2] : memref<128x128xf32, #tpu.memory_space<vmem>>, vector<128x128xf32>
    %cst = arith.constant dense<0.000000e+00> : vector<8x128xf32>
    %2 = tpu.matmul %0, %1, %cst {dimension_numbers = #tpu.dot_dimension_numbers<[1], [0], [0], [1], [0, 0, 1, 1], [], []>} : vector<8x128xf32>, vector<128x128xf32>, vector<8x128xf32> -> vector<8x128xf32>
    %cst_3 = arith.constant dense<0.000000e+00> : vector<128xf32>
    %3 = vector.multi_reduction <add>, %2, %cst_3 [0] : vector<8x128xf32> to vector<128xf32>
    %4 = vector.shape_cast %3 : vector<128xf32> to vector<1x128xf32>
    %5 = arith.mulf %2, %2 : vector<8x128xf32>
    %cst_4 = arith.constant dense<0.000000e+00> : vector<128xf32>
    %6 = vector.multi_reduction <add>, %5, %cst_4 [0] : vector<8x128xf32> to vector<128xf32>
    %7 = vector.shape_cast %6 : vector<128xf32> to vector<1x128xf32>
    %cst_5 = arith.constant 1.250000e-01 : f32
    %8 = vector.broadcast %cst_5 : f32 to vector<1x128xf32>
    %9 = arith.mulf %4, %8 : vector<1x128xf32>
    %cst_6 = arith.constant 1.250000e-01 : f32
    %10 = vector.broadcast %cst_6 : f32 to vector<1x128xf32>
    %11 = arith.mulf %7, %10 : vector<1x128xf32>
    %12 = arith.mulf %9, %9 : vector<1x128xf32>
    %13 = arith.subf %11, %12 : vector<1x128xf32>
    %cst_7 = arith.constant 0.000000e+00 : f32
    %14 = vector.broadcast %cst_7 : f32 to vector<1x128xf32>
    %15 = arith.maximumf %13, %14 : vector<1x128xf32>
    %cst_8 = arith.constant 9.99999974E-6 : f32
    %16 = vector.broadcast %cst_8 : f32 to vector<1x128xf32>
    %17 = arith.addf %15, %16 : vector<1x128xf32>
    %18 = math.rsqrt %17 : vector<1x128xf32>
    %c0_9 = arith.constant 0 : index
    %c0_10 = arith.constant 0 : index
    %19 = vector.load %arg3[%c0_9, %c0_10] : memref<1x128xf32, #tpu.memory_space<vmem>>, vector<1x128xf32>
    %20 = arith.mulf %19, %18 : vector<1x128xf32>
    %c0_11 = arith.constant 0 : index
    %c0_12 = arith.constant 0 : index
    %21 = vector.load %arg4[%c0_11, %c0_12] : memref<1x128xf32, #tpu.memory_space<vmem>>, vector<1x128xf32>
    %22 = arith.mulf %9, %20 : vector<1x128xf32>
    %23 = arith.subf %21, %22 : vector<1x128xf32>
    %24 = vector.broadcast %20 : vector<1x128xf32> to vector<8x128xf32>
    %25 = arith.mulf %2, %24 : vector<8x128xf32>
    %26 = vector.broadcast %23 : vector<1x128xf32> to vector<8x128xf32>
    %27 = arith.addf %25, %26 : vector<8x128xf32>
    %c0_13 = arith.constant 0 : index
    %c0_14 = arith.constant 0 : index
    %28 = vector.load %arg5[%c0_13, %c0_14] : memref<8x128xf32, #tpu.memory_space<vmem>>, vector<8x128xf32>
    tpu.vector_store %arg5[%c0_13, %c0_14], %27 {strides = array<i32>} : memref<8x128xf32, #tpu.memory_space<vmem>>, vector<8x128xf32>,
    return
  }
  func.func @transform_0(%arg0: i32) -> (i32, i32) {
    %c0_i32 = arith.constant 0 : i32
    %c0_i32_0 = arith.constant 0 : i32
    %c0_i32_1 = arith.constant 0 : i32
    return %c0_i32, %c0_i32_0 : i32, i32
  }
  func.func @transform_1(%arg0: i32) -> (i32, i32) {
    %c0_i32 = arith.constant 0 : i32
    %c0_i32_0 = arith.constant 0 : i32
    %c0_i32_1 = arith.constant 0 : i32
    return %c0_i32, %c0_i32_0 : i32, i32
  }
  func.func @transform_2(%arg0: i32) -> (i32, i32) {
    %c0_i32 = arith.constant 0 : i32
    %c0_i32_0 = arith.constant 0 : i32
    %c0_i32_1 = arith.constant 0 : i32
    return %c0_i32, %c0_i32_0 : i32, i32
  }
  func.func @transform_3(%arg0: i32) -> (i32, i32) {
    %c0_i32 = arith.constant 0 : i32
    %c0_i32_0 = arith.constant 0 : i32
    %c0_i32_1 = arith.constant 0 : i32
    return %c0_i32, %c0_i32_0 : i32, i32
  }
  func.func @transform_4(%arg0: i32) -> (i32, i32) {
    %c0_i32 = arith.constant 0 : i32
    %c0_i32_0 = arith.constant 0 : i32
    %c0_i32_1 = arith.constant 0 : i32
    return %c0_i32, %c0_i32_0 : i32, i32
  }
}

module attributes {stable_mosaic.version = 11 : i64} {
  func.func @_fused_conv_bn_kernel(%arg0: i32, %arg1: memref<8x128xf32, #tpu.memory_space<vmem>>, %arg2: memref<128x128xf32, #tpu.memory_space<vmem>>, %arg3: memref<1x128xf32, #tpu.memory_space<vmem>>, %arg4: memref<1x128xf32, #tpu.memory_space<vmem>>, %arg5: memref<8x128xf32, #tpu.memory_space<vmem>>, %arg6: memref<8x128xf32, #tpu.memory_space<vmem>>) attributes {dimension_semantics = [#tpu.dimension_semantics<arbitrary>], iteration_bounds = array<i64: 1>, scalar_prefetch = 0 : i64, scratch_operands = 0 : i64, tpu.core_type = #tpu.core_type<tc>, window_params = [{pipeline_mode = #tpu.pipeline_mode<synchronous>, transform_indices = @transform_0, window_bounds = array<i64: 8, 128>}, {pipeline_mode = #tpu.pipeline_mode<synchronous>, transform_indices = @transform_1, window_bounds = array<i64: 128, 128>}, {pipeline_mode = #tpu.pipeline_mode<synchronous>, transform_indices = @transform_2, window_bounds = array<i64: 1, 128>}, {pipeline_mode = #tpu.pipeline_mode<synchronous>, transform_indices = @transform_3, window_bounds = array<i64: 1, 128>}, {pipeline_mode = #tpu.pipeline_mode<synchronous>, transform_indices = @transform_4, window_bounds = array<i64: 8, 128>}, {pipeline_mode = #tpu.pipeline_mode<synchronous>, transform_indices = @transform_5, window_bounds = array<i64: 8, 128>}]} {
    %c0 = arith.constant 0 : index
    %c0_0 = arith.constant 0 : index
    %0 = vector.load %arg1[%c0, %c0_0] : memref<8x128xf32, #tpu.memory_space<vmem>>, vector<8x128xf32>
    %c0_1 = arith.constant 0 : index
    %c0_2 = arith.constant 0 : index
    %1 = vector.load %arg2[%c0_1, %c0_2] : memref<128x128xf32, #tpu.memory_space<vmem>>, vector<128x128xf32>
    %cst = arith.constant dense<0.000000e+00> : vector<8x128xf32>
    %2 = tpu.matmul %0, %1, %cst {dimension_numbers = #tpu.dot_dimension_numbers<[1], [0], [0], [1], [0, 0, 1, 1], [], []>} : vector<8x128xf32>, vector<128x128xf32>, vector<8x128xf32> -> vector<8x128xf32>
    %cst_3 = arith.constant dense<0.000000e+00> : vector<128xf32>
    %3 = vector.multi_reduction <add>, %2, %cst_3 [0] : vector<8x128xf32> to vector<128xf32>
    %4 = vector.shape_cast %3 : vector<128xf32> to vector<1x128xf32>
    %5 = arith.mulf %2, %2 : vector<8x128xf32>
    %cst_4 = arith.constant dense<0.000000e+00> : vector<128xf32>
    %6 = vector.multi_reduction <add>, %5, %cst_4 [0] : vector<8x128xf32> to vector<128xf32>
    %7 = vector.shape_cast %6 : vector<128xf32> to vector<1x128xf32>
    %cst_5 = arith.constant 1.250000e-01 : f32
    %8 = vector.broadcast %cst_5 : f32 to vector<1x128xf32>
    %9 = arith.mulf %4, %8 : vector<1x128xf32>
    %cst_6 = arith.constant 1.250000e-01 : f32
    %10 = vector.broadcast %cst_6 : f32 to vector<1x128xf32>
    %11 = arith.mulf %7, %10 : vector<1x128xf32>
    %12 = arith.mulf %9, %9 : vector<1x128xf32>
    %13 = arith.subf %11, %12 : vector<1x128xf32>
    %cst_7 = arith.constant 0.000000e+00 : f32
    %14 = vector.broadcast %cst_7 : f32 to vector<1x128xf32>
    %15 = arith.maximumf %13, %14 : vector<1x128xf32>
    %cst_8 = arith.constant 9.99999974E-6 : f32
    %16 = vector.broadcast %cst_8 : f32 to vector<1x128xf32>
    %17 = arith.addf %15, %16 : vector<1x128xf32>
    %18 = math.rsqrt %17 : vector<1x128xf32>
    %c0_9 = arith.constant 0 : index
    %c0_10 = arith.constant 0 : index
    %19 = vector.load %arg3[%c0_9, %c0_10] : memref<1x128xf32, #tpu.memory_space<vmem>>, vector<1x128xf32>
    %20 = arith.mulf %19, %18 : vector<1x128xf32>
    %c0_11 = arith.constant 0 : index
    %c0_12 = arith.constant 0 : index
    %21 = vector.load %arg4[%c0_11, %c0_12] : memref<1x128xf32, #tpu.memory_space<vmem>>, vector<1x128xf32>
    %22 = arith.mulf %9, %20 : vector<1x128xf32>
    %23 = arith.subf %21, %22 : vector<1x128xf32>
    %24 = vector.broadcast %20 : vector<1x128xf32> to vector<8x128xf32>
    %25 = arith.mulf %2, %24 : vector<8x128xf32>
    %26 = vector.broadcast %23 : vector<1x128xf32> to vector<8x128xf32>
    %27 = arith.addf %25, %26 : vector<8x128xf32>
    %c0_13 = arith.constant 0 : index
    %c0_14 = arith.constant 0 : index
    %28 = vector.load %arg5[%c0_13, %c0_14] : memref<8x128xf32, #tpu.memory_space<vmem>>, vector<8x128xf32>
    %29 = arith.addf %27, %28 : vector<8x128xf32>
    %cst_15 = arith.constant 0.000000e+00 : f32
    %30 = vector.broadcast %cst_15 : f32 to vector<8x128xf32>
    %31 = arith.maximumf %29, %30 : vector<8x128xf32>
    %c0_16 = arith.constant 0 : index
    %c0_17 = arith.constant 0 : index
    %32 = vector.load %arg6[%c0_16, %c0_17] : memref<8x128xf32, #tpu.memory_space<vmem>>, vector<8x128xf32>
    tpu.vector_store %arg6[%c0_16, %c0_17], %31 {strides = array<i32>} : memref<8x128xf32, #tpu.memory_space<vmem>>, vector<8x128xf32>,
    return
  }
  func.func @transform_0(%arg0: i32) -> (i32, i32) {
    %c0_i32 = arith.constant 0 : i32
    %c0_i32_0 = arith.constant 0 : i32
    %c0_i32_1 = arith.constant 0 : i32
    return %c0_i32, %c0_i32_0 : i32, i32
  }
  func.func @transform_1(%arg0: i32) -> (i32, i32) {
    %c0_i32 = arith.constant 0 : i32
    %c0_i32_0 = arith.constant 0 : i32
    %c0_i32_1 = arith.constant 0 : i32
    return %c0_i32, %c0_i32_0 : i32, i32
  }
  func.func @transform_2(%arg0: i32) -> (i32, i32) {
    %c0_i32 = arith.constant 0 : i32
    %c0_i32_0 = arith.constant 0 : i32
    %c0_i32_1 = arith.constant 0 : i32
    return %c0_i32, %c0_i32_0 : i32, i32
  }
  func.func @transform_3(%arg0: i32) -> (i32, i32) {
    %c0_i32 = arith.constant 0 : i32
    %c0_i32_0 = arith.constant 0 : i32
    %c0_i32_1 = arith.constant 0 : i32
    return %c0_i32, %c0_i32_0 : i32, i32
  }
  func.func @transform_4(%arg0: i32) -> (i32, i32) {
    %c0_i32 = arith.constant 0 : i32
    %c0_i32_0 = arith.constant 0 : i32
    %c0_i32_1 = arith.constant 0 : i32
    return %c0_i32, %c0_i32_0 : i32, i32
  }
  func.func @transform_5(%arg0: i32) -> (i32, i32) {
    %c0_i32 = arith.constant 0 : i32
    %c0_i32_0 = arith.constant 0 : i32
    %c0_i32_1 = arith.constant 0 : i32
    return %c0_i32, %c0_i32_0 : i32, i32
  }
}

module attributes {stable_mosaic.version = 11 : i64} {
  func.func @_fused_conv_bn_kernel(%arg0: i32, %arg1: memref<8x128xf32, #tpu.memory_space<vmem>>, %arg2: memref<128x128xf32, #tpu.memory_space<vmem>>, %arg3: memref<1x128xf32, #tpu.memory_space<vmem>>, %arg4: memref<1x128xf32, #tpu.memory_space<vmem>>, %arg5: memref<8x128xf32, #tpu.memory_space<vmem>>) attributes {dimension_semantics = [#tpu.dimension_semantics<arbitrary>], iteration_bounds = array<i64: 1>, scalar_prefetch = 0 : i64, scratch_operands = 0 : i64, tpu.core_type = #tpu.core_type<tc>, window_params = [{pipeline_mode = #tpu.pipeline_mode<synchronous>, transform_indices = @transform_0, window_bounds = array<i64: 8, 128>}, {pipeline_mode = #tpu.pipeline_mode<synchronous>, transform_indices = @transform_1, window_bounds = array<i64: 128, 128>}, {pipeline_mode = #tpu.pipeline_mode<synchronous>, transform_indices = @transform_2, window_bounds = array<i64: 1, 128>}, {pipeline_mode = #tpu.pipeline_mode<synchronous>, transform_indices = @transform_3, window_bounds = array<i64: 1, 128>}, {pipeline_mode = #tpu.pipeline_mode<synchronous>, transform_indices = @transform_4, window_bounds = array<i64: 8, 128>}]} {
    %c0 = arith.constant 0 : index
    %c0_0 = arith.constant 0 : index
    %0 = vector.load %arg1[%c0, %c0_0] : memref<8x128xf32, #tpu.memory_space<vmem>>, vector<8x128xf32>
    %c0_1 = arith.constant 0 : index
    %c0_2 = arith.constant 0 : index
    %1 = vector.load %arg2[%c0_1, %c0_2] : memref<128x128xf32, #tpu.memory_space<vmem>>, vector<128x128xf32>
    %cst = arith.constant dense<0.000000e+00> : vector<8x128xf32>
    %2 = tpu.matmul %0, %1, %cst {dimension_numbers = #tpu.dot_dimension_numbers<[1], [0], [0], [1], [0, 0, 1, 1], [], []>} : vector<8x128xf32>, vector<128x128xf32>, vector<8x128xf32> -> vector<8x128xf32>
    %cst_3 = arith.constant dense<0.000000e+00> : vector<128xf32>
    %3 = vector.multi_reduction <add>, %2, %cst_3 [0] : vector<8x128xf32> to vector<128xf32>
    %4 = vector.shape_cast %3 : vector<128xf32> to vector<1x128xf32>
    %5 = arith.mulf %2, %2 : vector<8x128xf32>
    %cst_4 = arith.constant dense<0.000000e+00> : vector<128xf32>
    %6 = vector.multi_reduction <add>, %5, %cst_4 [0] : vector<8x128xf32> to vector<128xf32>
    %7 = vector.shape_cast %6 : vector<128xf32> to vector<1x128xf32>
    %cst_5 = arith.constant 1.250000e-01 : f32
    %8 = vector.broadcast %cst_5 : f32 to vector<1x128xf32>
    %9 = arith.mulf %4, %8 : vector<1x128xf32>
    %cst_6 = arith.constant 1.250000e-01 : f32
    %10 = vector.broadcast %cst_6 : f32 to vector<1x128xf32>
    %11 = arith.mulf %7, %10 : vector<1x128xf32>
    %12 = arith.mulf %9, %9 : vector<1x128xf32>
    %13 = arith.subf %11, %12 : vector<1x128xf32>
    %cst_7 = arith.constant 0.000000e+00 : f32
    %14 = vector.broadcast %cst_7 : f32 to vector<1x128xf32>
    %15 = arith.maximumf %13, %14 : vector<1x128xf32>
    %cst_8 = arith.constant 9.99999974E-6 : f32
    %16 = vector.broadcast %cst_8 : f32 to vector<1x128xf32>
    %17 = arith.addf %15, %16 : vector<1x128xf32>
    %18 = math.rsqrt %17 : vector<1x128xf32>
    %c0_9 = arith.constant 0 : index
    %c0_10 = arith.constant 0 : index
    %19 = vector.load %arg3[%c0_9, %c0_10] : memref<1x128xf32, #tpu.memory_space<vmem>>, vector<1x128xf32>
    %20 = arith.mulf %19, %18 : vector<1x128xf32>
    %c0_11 = arith.constant 0 : index
    %c0_12 = arith.constant 0 : index
    %21 = vector.load %arg4[%c0_11, %c0_12] : memref<1x128xf32, #tpu.memory_space<vmem>>, vector<1x128xf32>
    %22 = arith.mulf %9, %20 : vector<1x128xf32>
    %23 = arith.subf %21, %22 : vector<1x128xf32>
    %24 = vector.broadcast %20 : vector<1x128xf32> to vector<8x128xf32>
    %25 = arith.mulf %2, %24 : vector<8x128xf32>
    %26 = vector.broadcast %23 : vector<1x128xf32> to vector<8x128xf32>
    %27 = arith.addf %25, %26 : vector<8x128xf32>
    %cst_13 = arith.constant 0.000000e+00 : f32
    %28 = vector.broadcast %cst_13 : f32 to vector<8x128xf32>
    %29 = arith.maximumf %27, %28 : vector<8x128xf32>
    %c0_14 = arith.constant 0 : index
    %c0_15 = arith.constant 0 : index
    %30 = vector.load %arg5[%c0_14, %c0_15] : memref<8x128xf32, #tpu.memory_space<vmem>>, vector<8x128xf32>
    tpu.vector_store %arg5[%c0_14, %c0_15], %29 {strides = array<i32>} : memref<8x128xf32, #tpu.memory_space<vmem>>, vector<8x128xf32>,
    return
  }
  func.func @transform_0(%arg0: i32) -> (i32, i32) {
    %c0_i32 = arith.constant 0 : i32
    %c0_i32_0 = arith.constant 0 : i32
    %c0_i32_1 = arith.constant 0 : i32
    return %c0_i32, %c0_i32_0 : i32, i32
  }
  func.func @transform_1(%arg0: i32) -> (i32, i32) {
    %c0_i32 = arith.constant 0 : i32
    %c0_i32_0 = arith.constant 0 : i32
    %c0_i32_1 = arith.constant 0 : i32
    return %c0_i32, %c0_i32_0 : i32, i32
  }
  func.func @transform_2(%arg0: i32) -> (i32, i32) {
    %c0_i32 = arith.constant 0 : i32
    %c0_i32_0 = arith.constant 0 : i32
    %c0_i32_1 = arith.constant 0 : i32
    return %c0_i32, %c0_i32_0 : i32, i32
  }
  func.func @transform_3(%arg0: i32) -> (i32, i32) {
    %c0_i32 = arith.constant 0 : i32
    %c0_i32_0 = arith.constant 0 : i32
    %c0_i32_1 = arith.constant 0 : i32
    return %c0_i32, %c0_i32_0 : i32, i32
  }
  func.func @transform_4(%arg0: i32) -> (i32, i32) {
    %c0_i32 = arith.constant 0 : i32
    %c0_i32_0 = arith.constant 0 : i32
    %c0_i32_1 = arith.constant 0 : i32
    return %c0_i32, %c0_i32_0 : i32, i32
  }
}

module attributes {stable_mosaic.version = 11 : i64} {
  func.func @_max_over_taps_kernel(%arg0: i32, %arg1: memref<9x8x10xf32, #tpu.memory_space<vmem>>, %arg2: memref<8x10xf32, #tpu.memory_space<vmem>>) attributes {dimension_semantics = [#tpu.dimension_semantics<arbitrary>], iteration_bounds = array<i64: 1>, scalar_prefetch = 0 : i64, scratch_operands = 0 : i64, tpu.core_type = #tpu.core_type<tc>, window_params = [{pipeline_mode = #tpu.pipeline_mode<synchronous>, transform_indices = @transform_0, window_bounds = array<i64: 9, 8, 10>}, {pipeline_mode = #tpu.pipeline_mode<synchronous>, transform_indices = @transform_1, window_bounds = array<i64: 8, 10>}]} {
    %c0 = arith.constant 0 : index
    %c0_0 = arith.constant 0 : index
    %c0_1 = arith.constant 0 : index
    %0 = vector.load %arg1[%c0, %c0_0, %c0_1] : memref<9x8x10xf32, #tpu.memory_space<vmem>>, vector<9x8x10xf32>
    %cst = arith.constant dense<0xFF800000> : vector<8x10xf32>
    %1 = vector.multi_reduction <maximumf>, %0, %cst [0] : vector<9x8x10xf32> to vector<8x10xf32>
    %c0_2 = arith.constant 0 : index
    %c0_3 = arith.constant 0 : index
    %2 = vector.load %arg2[%c0_2, %c0_3] : memref<8x10xf32, #tpu.memory_space<vmem>>, vector<8x10xf32>
    tpu.vector_store %arg2[%c0_2, %c0_3], %1 {strides = array<i32>} : memref<8x10xf32, #tpu.memory_space<vmem>>, vector<8x10xf32>,
    return
  }
  func.func @transform_0(%arg0: i32) -> (i32, i32, i32) {
    %c0_i32 = arith.constant 0 : i32
    %c0_i32_0 = arith.constant 0 : i32
    %c0_i32_1 = arith.constant 0 : i32
    %c0_i32_2 = arith.constant 0 : i32
    return %c0_i32, %c0_i32_0, %c0_i32_1 : i32, i32, i32
  }
  func.func @transform_1(%arg0: i32) -> (i32, i32) {
    %c0_i32 = arith.constant 0 : i32
    %c0_i32_0 = arith.constant 0 : i32
    %c0_i32_1 = arith.constant 0 : i32
    return %c0_i32, %c0_i32_0 : i32, i32
  }
}

module attributes {stable_mosaic.version = 11 : i64} {
  func.func @_fused_conv_bn_kernel(%arg0: i32, %arg1: memref<8x256xf32, #tpu.memory_space<vmem>>, %arg2: memref<256x128xf32, #tpu.memory_space<vmem>>, %arg3: memref<1x128xf32, #tpu.memory_space<vmem>>, %arg4: memref<1x128xf32, #tpu.memory_space<vmem>>, %arg5: memref<8x128xf32, #tpu.memory_space<vmem>>) attributes {dimension_semantics = [#tpu.dimension_semantics<arbitrary>], iteration_bounds = array<i64: 1>, scalar_prefetch = 0 : i64, scratch_operands = 0 : i64, tpu.core_type = #tpu.core_type<tc>, window_params = [{pipeline_mode = #tpu.pipeline_mode<synchronous>, transform_indices = @transform_0, window_bounds = array<i64: 8, 256>}, {pipeline_mode = #tpu.pipeline_mode<synchronous>, transform_indices = @transform_1, window_bounds = array<i64: 256, 128>}, {pipeline_mode = #tpu.pipeline_mode<synchronous>, transform_indices = @transform_2, window_bounds = array<i64: 1, 128>}, {pipeline_mode = #tpu.pipeline_mode<synchronous>, transform_indices = @transform_3, window_bounds = array<i64: 1, 128>}, {pipeline_mode = #tpu.pipeline_mode<synchronous>, transform_indices = @transform_4, window_bounds = array<i64: 8, 128>}]} {
    %c0 = arith.constant 0 : index
    %c0_0 = arith.constant 0 : index
    %0 = vector.load %arg1[%c0, %c0_0] : memref<8x256xf32, #tpu.memory_space<vmem>>, vector<8x256xf32>
    %c0_1 = arith.constant 0 : index
    %c0_2 = arith.constant 0 : index
    %1 = vector.load %arg2[%c0_1, %c0_2] : memref<256x128xf32, #tpu.memory_space<vmem>>, vector<256x128xf32>
    %cst = arith.constant dense<0.000000e+00> : vector<8x128xf32>
    %2 = tpu.matmul %0, %1, %cst {dimension_numbers = #tpu.dot_dimension_numbers<[1], [0], [0], [1], [0, 0, 1, 1], [], []>} : vector<8x256xf32>, vector<256x128xf32>, vector<8x128xf32> -> vector<8x128xf32>
    %cst_3 = arith.constant dense<0.000000e+00> : vector<128xf32>
    %3 = vector.multi_reduction <add>, %2, %cst_3 [0] : vector<8x128xf32> to vector<128xf32>
    %4 = vector.shape_cast %3 : vector<128xf32> to vector<1x128xf32>
    %5 = arith.mulf %2, %2 : vector<8x128xf32>
    %cst_4 = arith.constant dense<0.000000e+00> : vector<128xf32>
    %6 = vector.multi_reduction <add>, %5, %cst_4 [0] : vector<8x128xf32> to vector<128xf32>
    %7 = vector.shape_cast %6 : vector<128xf32> to vector<1x128xf32>
    %cst_5 = arith.constant 5.000000e-01 : f32
    %8 = vector.broadcast %cst_5 : f32 to vector<1x128xf32>
    %9 = arith.mulf %4, %8 : vector<1x128xf32>
    %cst_6 = arith.constant 5.000000e-01 : f32
    %10 = vector.broadcast %cst_6 : f32 to vector<1x128xf32>
    %11 = arith.mulf %7, %10 : vector<1x128xf32>
    %12 = arith.mulf %9, %9 : vector<1x128xf32>
    %13 = arith.subf %11, %12 : vector<1x128xf32>
    %cst_7 = arith.constant 0.000000e+00 : f32
    %14 = vector.broadcast %cst_7 : f32 to vector<1x128xf32>
    %15 = arith.maximumf %13, %14 : vector<1x128xf32>
    %cst_8 = arith.constant 9.99999974E-6 : f32
    %16 = vector.broadcast %cst_8 : f32 to vector<1x128xf32>
    %17 = arith.addf %15, %16 : vector<1x128xf32>
    %18 = math.rsqrt %17 : vector<1x128xf32>
    %c0_9 = arith.constant 0 : index
    %c0_10 = arith.constant 0 : index
    %19 = vector.load %arg3[%c0_9, %c0_10] : memref<1x128xf32, #tpu.memory_space<vmem>>, vector<1x128xf32>
    %20 = arith.mulf %19, %18 : vector<1x128xf32>
    %c0_11 = arith.constant 0 : index
    %c0_12 = arith.constant 0 : index
    %21 = vector.load %arg4[%c0_11, %c0_12] : memref<1x128xf32, #tpu.memory_space<vmem>>, vector<1x128xf32>
    %22 = arith.mulf %9, %20 : vector<1x128xf32>
    %23 = arith.subf %21, %22 : vector<1x128xf32>
    %24 = vector.broadcast %20 : vector<1x128xf32> to vector<8x128xf32>
    %25 = arith.mulf %2, %24 : vector<8x128xf32>
    %26 = vector.broadcast %23 : vector<1x128xf32> to vector<8x128xf32>
    %27 = arith.addf %25, %26 : vector<8x128xf32>
    %cst_13 = arith.constant 0.000000e+00 : f32
    %28 = vector.broadcast %cst_13 : f32 to vector<8x128xf32>
    %29 = arith.maximumf %27, %28 : vector<8x128xf32>
    %c0_14 = arith.constant 0 : index
    %c0_15 = arith.constant 0 : index
    %30 = vector.load %arg5[%c0_14, %c0_15] : memref<8x128xf32, #tpu.memory_space<vmem>>, vector<8x128xf32>
    tpu.vector_store %arg5[%c0_14, %c0_15], %29 {strides = array<i32>} : memref<8x128xf32, #tpu.memory_space<vmem>>, vector<8x128xf32>,
    return
  }
  func.func @transform_0(%arg0: i32) -> (i32, i32) {
    %c0_i32 = arith.constant 0 : i32
    %c0_i32_0 = arith.constant 0 : i32
    %c0_i32_1 = arith.constant 0 : i32
    return %c0_i32, %c0_i32_0 : i32, i32
  }
  func.func @transform_1(%arg0: i32) -> (i32, i32) {
    %c0_i32 = arith.constant 0 : i32
    %c0_i32_0 = arith.constant 0 : i32
    %c0_i32_1 = arith.constant 0 : i32
    return %c0_i32, %c0_i32_0 : i32, i32
  }
  func.func @transform_2(%arg0: i32) -> (i32, i32) {
    %c0_i32 = arith.constant 0 : i32
    %c0_i32_0 = arith.constant 0 : i32
    %c0_i32_1 = arith.constant 0 : i32
    return %c0_i32, %c0_i32_0 : i32, i32
  }
  func.func @transform_3(%arg0: i32) -> (i32, i32) {
    %c0_i32 = arith.constant 0 : i32
    %c0_i32_0 = arith.constant 0 : i32
    %c0_i32_1 = arith.constant 0 : i32
    return %c0_i32, %c0_i32_0 : i32, i32
  }
  func.func @transform_4(%arg0: i32) -> (i32, i32) {
    %c0_i32 = arith.constant 0 : i32
    %c0_i32_0 = arith.constant 0 : i32
    %c0_i32_1 = arith.constant 0 : i32
    return %c0_i32, %c0_i32_0 : i32, i32
  }
}

module attributes {stable_mosaic.version = 11 : i64} {
  func.func @_fused_conv_bn_kernel(%arg0: i32, %arg1: memref<8x128xf32, #tpu.memory_space<vmem>>, %arg2: memref<128x128xf32, #tpu.memory_space<vmem>>, %arg3: memref<1x128xf32, #tpu.memory_space<vmem>>, %arg4: memref<1x128xf32, #tpu.memory_space<vmem>>, %arg5: memref<8x128xf32, #tpu.memory_space<vmem>>) attributes {dimension_semantics = [#tpu.dimension_semantics<arbitrary>], iteration_bounds = array<i64: 1>, scalar_prefetch = 0 : i64, scratch_operands = 0 : i64, tpu.core_type = #tpu.core_type<tc>, window_params = [{pipeline_mode = #tpu.pipeline_mode<synchronous>, transform_indices = @transform_0, window_bounds = array<i64: 8, 128>}, {pipeline_mode = #tpu.pipeline_mode<synchronous>, transform_indices = @transform_1, window_bounds = array<i64: 128, 128>}, {pipeline_mode = #tpu.pipeline_mode<synchronous>, transform_indices = @transform_2, window_bounds = array<i64: 1, 128>}, {pipeline_mode = #tpu.pipeline_mode<synchronous>, transform_indices = @transform_3, window_bounds = array<i64: 1, 128>}, {pipeline_mode = #tpu.pipeline_mode<synchronous>, transform_indices = @transform_4, window_bounds = array<i64: 8, 128>}]} {
    %c0 = arith.constant 0 : index
    %c0_0 = arith.constant 0 : index
    %0 = vector.load %arg1[%c0, %c0_0] : memref<8x128xf32, #tpu.memory_space<vmem>>, vector<8x128xf32>
    %c0_1 = arith.constant 0 : index
    %c0_2 = arith.constant 0 : index
    %1 = vector.load %arg2[%c0_1, %c0_2] : memref<128x128xf32, #tpu.memory_space<vmem>>, vector<128x128xf32>
    %cst = arith.constant dense<0.000000e+00> : vector<8x128xf32>
    %2 = tpu.matmul %0, %1, %cst {dimension_numbers = #tpu.dot_dimension_numbers<[1], [0], [0], [1], [0, 0, 1, 1], [], []>} : vector<8x128xf32>, vector<128x128xf32>, vector<8x128xf32> -> vector<8x128xf32>
    %cst_3 = arith.constant dense<0.000000e+00> : vector<128xf32>
    %3 = vector.multi_reduction <add>, %2, %cst_3 [0] : vector<8x128xf32> to vector<128xf32>
    %4 = vector.shape_cast %3 : vector<128xf32> to vector<1x128xf32>
    %5 = arith.mulf %2, %2 : vector<8x128xf32>
    %cst_4 = arith.constant dense<0.000000e+00> : vector<128xf32>
    %6 = vector.multi_reduction <add>, %5, %cst_4 [0] : vector<8x128xf32> to vector<128xf32>
    %7 = vector.shape_cast %6 : vector<128xf32> to vector<1x128xf32>
    %cst_5 = arith.constant 5.000000e-01 : f32
    %8 = vector.broadcast %cst_5 : f32 to vector<1x128xf32>
    %9 = arith.mulf %4, %8 : vector<1x128xf32>
    %cst_6 = arith.constant 5.000000e-01 : f32
    %10 = vector.broadcast %cst_6 : f32 to vector<1x128xf32>
    %11 = arith.mulf %7, %10 : vector<1x128xf32>
    %12 = arith.mulf %9, %9 : vector<1x128xf32>
    %13 = arith.subf %11, %12 : vector<1x128xf32>
    %cst_7 = arith.constant 0.000000e+00 : f32
    %14 = vector.broadcast %cst_7 : f32 to vector<1x128xf32>
    %15 = arith.maximumf %13, %14 : vector<1x128xf32>
    %cst_8 = arith.constant 9.99999974E-6 : f32
    %16 = vector.broadcast %cst_8 : f32 to vector<1x128xf32>
    %17 = arith.addf %15, %16 : vector<1x128xf32>
    %18 = math.rsqrt %17 : vector<1x128xf32>
    %c0_9 = arith.constant 0 : index
    %c0_10 = arith.constant 0 : index
    %19 = vector.load %arg3[%c0_9, %c0_10] : memref<1x128xf32, #tpu.memory_space<vmem>>, vector<1x128xf32>
    %20 = arith.mulf %19, %18 : vector<1x128xf32>
    %c0_11 = arith.constant 0 : index
    %c0_12 = arith.constant 0 : index
    %21 = vector.load %arg4[%c0_11, %c0_12] : memref<1x128xf32, #tpu.memory_space<vmem>>, vector<1x128xf32>
    %22 = arith.mulf %9, %20 : vector<1x128xf32>
    %23 = arith.subf %21, %22 : vector<1x128xf32>
    %24 = vector.broadcast %20 : vector<1x128xf32> to vector<8x128xf32>
    %25 = arith.mulf %2, %24 : vector<8x128xf32>
    %26 = vector.broadcast %23 : vector<1x128xf32> to vector<8x128xf32>
    %27 = arith.addf %25, %26 : vector<8x128xf32>
    %c0_13 = arith.constant 0 : index
    %c0_14 = arith.constant 0 : index
    %28 = vector.load %arg5[%c0_13, %c0_14] : memref<8x128xf32, #tpu.memory_space<vmem>>, vector<8x128xf32>
    tpu.vector_store %arg5[%c0_13, %c0_14], %27 {strides = array<i32>} : memref<8x128xf32, #tpu.memory_space<vmem>>, vector<8x128xf32>,
    return
  }
  func.func @transform_0(%arg0: i32) -> (i32, i32) {
    %c0_i32 = arith.constant 0 : i32
    %c0_i32_0 = arith.constant 0 : i32
    %c0_i32_1 = arith.constant 0 : i32
    return %c0_i32, %c0_i32_0 : i32, i32
  }
  func.func @transform_1(%arg0: i32) -> (i32, i32) {
    %c0_i32 = arith.constant 0 : i32
    %c0_i32_0 = arith.constant 0 : i32
    %c0_i32_1 = arith.constant 0 : i32
    return %c0_i32, %c0_i32_0 : i32, i32
  }
  func.func @transform_2(%arg0: i32) -> (i32, i32) {
    %c0_i32 = arith.constant 0 : i32
    %c0_i32_0 = arith.constant 0 : i32
    %c0_i32_1 = arith.constant 0 : i32
    return %c0_i32, %c0_i32_0 : i32, i32
  }
  func.func @transform_3(%arg0: i32) -> (i32, i32) {
    %c0_i32 = arith.constant 0 : i32
    %c0_i32_0 = arith.constant 0 : i32
    %c0_i32_1 = arith.constant 0 : i32
    return %c0_i32, %c0_i32_0 : i32, i32
  }
  func.func @transform_4(%arg0: i32) -> (i32, i32) {
    %c0_i32 = arith.constant 0 : i32
    %c0_i32_0 = arith.constant 0 : i32
    %c0_i32_1 = arith.constant 0 : i32
    return %c0_i32, %c0_i32_0 : i32, i32
  }
}

module attributes {stable_mosaic.version = 11 : i64} {
  func.func @_fused_conv_bn_kernel(%arg0: i32, %arg1: memref<8x128xf32, #tpu.memory_space<vmem>>, %arg2: memref<128x128xf32, #tpu.memory_space<vmem>>, %arg3: memref<1x128xf32, #tpu.memory_space<vmem>>, %arg4: memref<1x128xf32, #tpu.memory_space<vmem>>, %arg5: memref<8x128xf32, #tpu.memory_space<vmem>>, %arg6: memref<8x128xf32, #tpu.memory_space<vmem>>) attributes {dimension_semantics = [#tpu.dimension_semantics<arbitrary>], iteration_bounds = array<i64: 1>, scalar_prefetch = 0 : i64, scratch_operands = 0 : i64, tpu.core_type = #tpu.core_type<tc>, window_params = [{pipeline_mode = #tpu.pipeline_mode<synchronous>, transform_indices = @transform_0, window_bounds = array<i64: 8, 128>}, {pipeline_mode = #tpu.pipeline_mode<synchronous>, transform_indices = @transform_1, window_bounds = array<i64: 128, 128>}, {pipeline_mode = #tpu.pipeline_mode<synchronous>, transform_indices = @transform_2, window_bounds = array<i64: 1, 128>}, {pipeline_mode = #tpu.pipeline_mode<synchronous>, transform_indices = @transform_3, window_bounds = array<i64: 1, 128>}, {pipeline_mode = #tpu.pipeline_mode<synchronous>, transform_indices = @transform_4, window_bounds = array<i64: 8, 128>}, {pipeline_mode = #tpu.pipeline_mode<synchronous>, transform_indices = @transform_5, window_bounds = array<i64: 8, 128>}]} {
    %c0 = arith.constant 0 : index
    %c0_0 = arith.constant 0 : index
    %0 = vector.load %arg1[%c0, %c0_0] : memref<8x128xf32, #tpu.memory_space<vmem>>, vector<8x128xf32>
    %c0_1 = arith.constant 0 : index
    %c0_2 = arith.constant 0 : index
    %1 = vector.load %arg2[%c0_1, %c0_2] : memref<128x128xf32, #tpu.memory_space<vmem>>, vector<128x128xf32>
    %cst = arith.constant dense<0.000000e+00> : vector<8x128xf32>
    %2 = tpu.matmul %0, %1, %cst {dimension_numbers = #tpu.dot_dimension_numbers<[1], [0], [0], [1], [0, 0, 1, 1], [], []>} : vector<8x128xf32>, vector<128x128xf32>, vector<8x128xf32> -> vector<8x128xf32>
    %cst_3 = arith.constant dense<0.000000e+00> : vector<128xf32>
    %3 = vector.multi_reduction <add>, %2, %cst_3 [0] : vector<8x128xf32> to vector<128xf32>
    %4 = vector.shape_cast %3 : vector<128xf32> to vector<1x128xf32>
    %5 = arith.mulf %2, %2 : vector<8x128xf32>
    %cst_4 = arith.constant dense<0.000000e+00> : vector<128xf32>
    %6 = vector.multi_reduction <add>, %5, %cst_4 [0] : vector<8x128xf32> to vector<128xf32>
    %7 = vector.shape_cast %6 : vector<128xf32> to vector<1x128xf32>
    %cst_5 = arith.constant 5.000000e-01 : f32
    %8 = vector.broadcast %cst_5 : f32 to vector<1x128xf32>
    %9 = arith.mulf %4, %8 : vector<1x128xf32>
    %cst_6 = arith.constant 5.000000e-01 : f32
    %10 = vector.broadcast %cst_6 : f32 to vector<1x128xf32>
    %11 = arith.mulf %7, %10 : vector<1x128xf32>
    %12 = arith.mulf %9, %9 : vector<1x128xf32>
    %13 = arith.subf %11, %12 : vector<1x128xf32>
    %cst_7 = arith.constant 0.000000e+00 : f32
    %14 = vector.broadcast %cst_7 : f32 to vector<1x128xf32>
    %15 = arith.maximumf %13, %14 : vector<1x128xf32>
    %cst_8 = arith.constant 9.99999974E-6 : f32
    %16 = vector.broadcast %cst_8 : f32 to vector<1x128xf32>
    %17 = arith.addf %15, %16 : vector<1x128xf32>
    %18 = math.rsqrt %17 : vector<1x128xf32>
    %c0_9 = arith.constant 0 : index
    %c0_10 = arith.constant 0 : index
    %19 = vector.load %arg3[%c0_9, %c0_10] : memref<1x128xf32, #tpu.memory_space<vmem>>, vector<1x128xf32>
    %20 = arith.mulf %19, %18 : vector<1x128xf32>
    %c0_11 = arith.constant 0 : index
    %c0_12 = arith.constant 0 : index
    %21 = vector.load %arg4[%c0_11, %c0_12] : memref<1x128xf32, #tpu.memory_space<vmem>>, vector<1x128xf32>
    %22 = arith.mulf %9, %20 : vector<1x128xf32>
    %23 = arith.subf %21, %22 : vector<1x128xf32>
    %24 = vector.broadcast %20 : vector<1x128xf32> to vector<8x128xf32>
    %25 = arith.mulf %2, %24 : vector<8x128xf32>
    %26 = vector.broadcast %23 : vector<1x128xf32> to vector<8x128xf32>
    %27 = arith.addf %25, %26 : vector<8x128xf32>
    %c0_13 = arith.constant 0 : index
    %c0_14 = arith.constant 0 : index
    %28 = vector.load %arg5[%c0_13, %c0_14] : memref<8x128xf32, #tpu.memory_space<vmem>>, vector<8x128xf32>
    %29 = arith.addf %27, %28 : vector<8x128xf32>
    %cst_15 = arith.constant 0.000000e+00 : f32
    %30 = vector.broadcast %cst_15 : f32 to vector<8x128xf32>
    %31 = arith.maximumf %29, %30 : vector<8x128xf32>
    %c0_16 = arith.constant 0 : index
    %c0_17 = arith.constant 0 : index
    %32 = vector.load %arg6[%c0_16, %c0_17] : memref<8x128xf32, #tpu.memory_space<vmem>>, vector<8x128xf32>
    tpu.vector_store %arg6[%c0_16, %c0_17], %31 {strides = array<i32>} : memref<8x128xf32, #tpu.memory_space<vmem>>, vector<8x128xf32>,
    return
  }
  func.func @transform_0(%arg0: i32) -> (i32, i32) {
    %c0_i32 = arith.constant 0 : i32
    %c0_i32_0 = arith.constant 0 : i32
    %c0_i32_1 = arith.constant 0 : i32
    return %c0_i32, %c0_i32_0 : i32, i32
  }
  func.func @transform_1(%arg0: i32) -> (i32, i32) {
    %c0_i32 = arith.constant 0 : i32
    %c0_i32_0 = arith.constant 0 : i32
    %c0_i32_1 = arith.constant 0 : i32
    return %c0_i32, %c0_i32_0 : i32, i32
  }
  func.func @transform_2(%arg0: i32) -> (i32, i32) {
    %c0_i32 = arith.constant 0 : i32
    %c0_i32_0 = arith.constant 0 : i32
    %c0_i32_1 = arith.constant 0 : i32
    return %c0_i32, %c0_i32_0 : i32, i32
  }
  func.func @transform_3(%arg0: i32) -> (i32, i32) {
    %c0_i32 = arith.constant 0 : i32
    %c0_i32_0 = arith.constant 0 : i32
    %c0_i32_1 = arith.constant 0 : i32
    return %c0_i32, %c0_i32_0 : i32, i32
  }
  func.func @transform_4(%arg0: i32) -> (i32, i32) {
    %c0_i32 = arith.constant 0 : i32
    %c0_i32_0 = arith.constant 0 : i32
    %c0_i32_1 = arith.constant 0 : i32
    return %c0_i32, %c0_i32_0 : i32, i32
  }
  func.func @transform_5(%arg0: i32) -> (i32, i32) {
    %c0_i32 = arith.constant 0 : i32
    %c0_i32_0 = arith.constant 0 : i32
    %c0_i32_1 = arith.constant 0 : i32
    return %c0_i32, %c0_i32_0 : i32, i32
  }
}

module attributes {stable_mosaic.version = 11 : i64} {
  func.func @_fused_conv_bn_kernel(%arg0: i32, %arg1: memref<24x128xf32, #tpu.memory_space<vmem>>, %arg2: memref<128x128xf32, #tpu.memory_space<vmem>>, %arg3: memref<1x128xf32, #tpu.memory_space<vmem>>, %arg4: memref<1x128xf32, #tpu.memory_space<vmem>>, %arg5: memref<24x128xf32, #tpu.memory_space<vmem>>) attributes {dimension_semantics = [#tpu.dimension_semantics<arbitrary>], iteration_bounds = array<i64: 1>, scalar_prefetch = 0 : i64, scratch_operands = 0 : i64, tpu.core_type = #tpu.core_type<tc>, window_params = [{pipeline_mode = #tpu.pipeline_mode<synchronous>, transform_indices = @transform_0, window_bounds = array<i64: 24, 128>}, {pipeline_mode = #tpu.pipeline_mode<synchronous>, transform_indices = @transform_1, window_bounds = array<i64: 128, 128>}, {pipeline_mode = #tpu.pipeline_mode<synchronous>, transform_indices = @transform_2, window_bounds = array<i64: 1, 128>}, {pipeline_mode = #tpu.pipeline_mode<synchronous>, transform_indices = @transform_3, window_bounds = array<i64: 1, 128>}, {pipeline_mode = #tpu.pipeline_mode<synchronous>, transform_indices = @transform_4, window_bounds = array<i64: 24, 128>}]} {
    %c0 = arith.constant 0 : index
    %c0_0 = arith.constant 0 : index
    %0 = vector.load %arg1[%c0, %c0_0] : memref<24x128xf32, #tpu.memory_space<vmem>>, vector<24x128xf32>
    %c0_1 = arith.constant 0 : index
    %c0_2 = arith.constant 0 : index
    %1 = vector.load %arg2[%c0_1, %c0_2] : memref<128x128xf32, #tpu.memory_space<vmem>>, vector<128x128xf32>
    %cst = arith.constant dense<0.000000e+00> : vector<24x128xf32>
    %2 = tpu.matmul %0, %1, %cst {dimension_numbers = #tpu.dot_dimension_numbers<[1], [0], [0], [1], [0, 0, 1, 1], [], []>} : vector<24x128xf32>, vector<128x128xf32>, vector<24x128xf32> -> vector<24x128xf32>
    %cst_3 = arith.constant dense<0.000000e+00> : vector<128xf32>
    %3 = vector.multi_reduction <add>, %2, %cst_3 [0] : vector<24x128xf32> to vector<128xf32>
    %4 = vector.shape_cast %3 : vector<128xf32> to vector<1x128xf32>
    %5 = arith.mulf %2, %2 : vector<24x128xf32>
    %cst_4 = arith.constant dense<0.000000e+00> : vector<128xf32>
    %6 = vector.multi_reduction <add>, %5, %cst_4 [0] : vector<24x128xf32> to vector<128xf32>
    %7 = vector.shape_cast %6 : vector<128xf32> to vector<1x128xf32>
    %cst_5 = arith.constant 0.055555556 : f32
    %8 = vector.broadcast %cst_5 : f32 to vector<1x128xf32>
    %9 = arith.mulf %4, %8 : vector<1x128xf32>
    %cst_6 = arith.constant 0.055555556 : f32
    %10 = vector.broadcast %cst_6 : f32 to vector<1x128xf32>
    %11 = arith.mulf %7, %10 : vector<1x128xf32>
    %12 = arith.mulf %9, %9 : vector<1x128xf32>
    %13 = arith.subf %11, %12 : vector<1x128xf32>
    %cst_7 = arith.constant 0.000000e+00 : f32
    %14 = vector.broadcast %cst_7 : f32 to vector<1x128xf32>
    %15 = arith.maximumf %13, %14 : vector<1x128xf32>
    %cst_8 = arith.constant 9.99999974E-6 : f32
    %16 = vector.broadcast %cst_8 : f32 to vector<1x128xf32>
    %17 = arith.addf %15, %16 : vector<1x128xf32>
    %18 = math.rsqrt %17 : vector<1x128xf32>
    %c0_9 = arith.constant 0 : index
    %c0_10 = arith.constant 0 : index
    %19 = vector.load %arg3[%c0_9, %c0_10] : memref<1x128xf32, #tpu.memory_space<vmem>>, vector<1x128xf32>
    %20 = arith.mulf %19, %18 : vector<1x128xf32>
    %c0_11 = arith.constant 0 : index
    %c0_12 = arith.constant 0 : index
    %21 = vector.load %arg4[%c0_11, %c0_12] : memref<1x128xf32, #tpu.memory_space<vmem>>, vector<1x128xf32>
    %22 = arith.mulf %9, %20 : vector<1x128xf32>
    %23 = arith.subf %21, %22 : vector<1x128xf32>
    %24 = vector.broadcast %20 : vector<1x128xf32> to vector<24x128xf32>
    %25 = arith.mulf %2, %24 : vector<24x128xf32>
    %26 = vector.broadcast %23 : vector<1x128xf32> to vector<24x128xf32>
    %27 = arith.addf %25, %26 : vector<24x128xf32>
    %cst_13 = arith.constant 0.000000e+00 : f32
    %28 = vector.broadcast %cst_13 : f32 to vector<24x128xf32>
    %29 = arith.maximumf %27, %28 : vector<24x128xf32>
    %c0_14 = arith.constant 0 : index
    %c0_15 = arith.constant 0 : index
    %30 = vector.load %arg5[%c0_14, %c0_15] : memref<24x128xf32, #tpu.memory_space<vmem>>, vector<24x128xf32>
    tpu.vector_store %arg5[%c0_14, %c0_15], %29 {strides = array<i32>} : memref<24x128xf32, #tpu.memory_space<vmem>>, vector<24x128xf32>,
    return
  }
  func.func @transform_0(%arg0: i32) -> (i32, i32) {
    %c0_i32 = arith.constant 0 : i32
    %c0_i32_0 = arith.constant 0 : i32
    %c0_i32_1 = arith.constant 0 : i32
    return %c0_i32, %c0_i32_0 : i32, i32
  }
  func.func @transform_1(%arg0: i32) -> (i32, i32) {
    %c0_i32 = arith.constant 0 : i32
    %c0_i32_0 = arith.constant 0 : i32
    %c0_i32_1 = arith.constant 0 : i32
    return %c0_i32, %c0_i32_0 : i32, i32
  }
  func.func @transform_2(%arg0: i32) -> (i32, i32) {
    %c0_i32 = arith.constant 0 : i32
    %c0_i32_0 = arith.constant 0 : i32
    %c0_i32_1 = arith.constant 0 : i32
    return %c0_i32, %c0_i32_0 : i32, i32
  }
  func.func @transform_3(%arg0: i32) -> (i32, i32) {
    %c0_i32 = arith.constant 0 : i32
    %c0_i32_0 = arith.constant 0 : i32
    %c0_i32_1 = arith.constant 0 : i32
    return %c0_i32, %c0_i32_0 : i32, i32
  }
  func.func @transform_4(%arg0: i32) -> (i32, i32) {
    %c0_i32 = arith.constant 0 : i32
    %c0_i32_0 = arith.constant 0 : i32
    %c0_i32_1 = arith.constant 0 : i32
    return %c0_i32, %c0_i32_0 : i32, i32
  }
}

module attributes {stable_mosaic.version = 11 : i64} {
  func.func @_fused_conv_bn_kernel(%arg0: i32, %arg1: memref<8x128xf32, #tpu.memory_space<vmem>>, %arg2: memref<128x128xf32, #tpu.memory_space<vmem>>, %arg3: memref<1x128xf32, #tpu.memory_space<vmem>>, %arg4: memref<1x128xf32, #tpu.memory_space<vmem>>, %arg5: memref<8x128xf32, #tpu.memory_space<vmem>>) attributes {dimension_semantics = [#tpu.dimension_semantics<arbitrary>], iteration_bounds = array<i64: 1>, scalar_prefetch = 0 : i64, scratch_operands = 0 : i64, tpu.core_type = #tpu.core_type<tc>, window_params = [{pipeline_mode = #tpu.pipeline_mode<synchronous>, transform_indices = @transform_0, window_bounds = array<i64: 8, 128>}, {pipeline_mode = #tpu.pipeline_mode<synchronous>, transform_indices = @transform_1, window_bounds = array<i64: 128, 128>}, {pipeline_mode = #tpu.pipeline_mode<synchronous>, transform_indices = @transform_2, window_bounds = array<i64: 1, 128>}, {pipeline_mode = #tpu.pipeline_mode<synchronous>, transform_indices = @transform_3, window_bounds = array<i64: 1, 128>}, {pipeline_mode = #tpu.pipeline_mode<synchronous>, transform_indices = @transform_4, window_bounds = array<i64: 8, 128>}]} {
    %c0 = arith.constant 0 : index
    %c0_0 = arith.constant 0 : index
    %0 = vector.load %arg1[%c0, %c0_0] : memref<8x128xf32, #tpu.memory_space<vmem>>, vector<8x128xf32>
    %c0_1 = arith.constant 0 : index
    %c0_2 = arith.constant 0 : index
    %1 = vector.load %arg2[%c0_1, %c0_2] : memref<128x128xf32, #tpu.memory_space<vmem>>, vector<128x128xf32>
    %cst = arith.constant dense<0.000000e+00> : vector<8x128xf32>
    %2 = tpu.matmul %0, %1, %cst {dimension_numbers = #tpu.dot_dimension_numbers<[1], [0], [0], [1], [0, 0, 1, 1], [], []>} : vector<8x128xf32>, vector<128x128xf32>, vector<8x128xf32> -> vector<8x128xf32>
    %cst_3 = arith.constant dense<0.000000e+00> : vector<128xf32>
    %3 = vector.multi_reduction <add>, %2, %cst_3 [0] : vector<8x128xf32> to vector<128xf32>
    %4 = vector.shape_cast %3 : vector<128xf32> to vector<1x128xf32>
    %5 = arith.mulf %2, %2 : vector<8x128xf32>
    %cst_4 = arith.constant dense<0.000000e+00> : vector<128xf32>
    %6 = vector.multi_reduction <add>, %5, %cst_4 [0] : vector<8x128xf32> to vector<128xf32>
    %7 = vector.shape_cast %6 : vector<128xf32> to vector<1x128xf32>
    %cst_5 = arith.constant 5.000000e-01 : f32
    %8 = vector.broadcast %cst_5 : f32 to vector<1x128xf32>
    %9 = arith.mulf %4, %8 : vector<1x128xf32>
    %cst_6 = arith.constant 5.000000e-01 : f32
    %10 = vector.broadcast %cst_6 : f32 to vector<1x128xf32>
    %11 = arith.mulf %7, %10 : vector<1x128xf32>
    %12 = arith.mulf %9, %9 : vector<1x128xf32>
    %13 = arith.subf %11, %12 : vector<1x128xf32>
    %cst_7 = arith.constant 0.000000e+00 : f32
    %14 = vector.broadcast %cst_7 : f32 to vector<1x128xf32>
    %15 = arith.maximumf %13, %14 : vector<1x128xf32>
    %cst_8 = arith.constant 9.99999974E-6 : f32
    %16 = vector.broadcast %cst_8 : f32 to vector<1x128xf32>
    %17 = arith.addf %15, %16 : vector<1x128xf32>
    %18 = math.rsqrt %17 : vector<1x128xf32>
    %c0_9 = arith.constant 0 : index
    %c0_10 = arith.constant 0 : index
    %19 = vector.load %arg3[%c0_9, %c0_10] : memref<1x128xf32, #tpu.memory_space<vmem>>, vector<1x128xf32>
    %20 = arith.mulf %19, %18 : vector<1x128xf32>
    %c0_11 = arith.constant 0 : index
    %c0_12 = arith.constant 0 : index
    %21 = vector.load %arg4[%c0_11, %c0_12] : memref<1x128xf32, #tpu.memory_space<vmem>>, vector<1x128xf32>
    %22 = arith.mulf %9, %20 : vector<1x128xf32>
    %23 = arith.subf %21, %22 : vector<1x128xf32>
    %24 = vector.broadcast %20 : vector<1x128xf32> to vector<8x128xf32>
    %25 = arith.mulf %2, %24 : vector<8x128xf32>
    %26 = vector.broadcast %23 : vector<1x128xf32> to vector<8x128xf32>
    %27 = arith.addf %25, %26 : vector<8x128xf32>
    %cst_13 = arith.constant 0.000000e+00 : f32
    %28 = vector.broadcast %cst_13 : f32 to vector<8x128xf32>
    %29 = arith.maximumf %27, %28 : vector<8x128xf32>
    %c0_14 = arith.constant 0 : index
    %c0_15 = arith.constant 0 : index
    %30 = vector.load %arg5[%c0_14, %c0_15] : memref<8x128xf32, #tpu.memory_space<vmem>>, vector<8x128xf32>
    tpu.vector_store %arg5[%c0_14, %c0_15], %29 {strides = array<i32>} : memref<8x128xf32, #tpu.memory_space<vmem>>, vector<8x128xf32>,
    return
  }
  func.func @transform_0(%arg0: i32) -> (i32, i32) {
    %c0_i32 = arith.constant 0 : i32
    %c0_i32_0 = arith.constant 0 : i32
    %c0_i32_1 = arith.constant 0 : i32
    return %c0_i32, %c0_i32_0 : i32, i32
  }
  func.func @transform_1(%arg0: i32) -> (i32, i32) {
    %c0_i32 = arith.constant 0 : i32
    %c0_i32_0 = arith.constant 0 : i32
    %c0_i32_1 = arith.constant 0 : i32
    return %c0_i32, %c0_i32_0 : i32, i32
  }
  func.func @transform_2(%arg0: i32) -> (i32, i32) {
    %c0_i32 = arith.constant 0 : i32
    %c0_i32_0 = arith.constant 0 : i32
    %c0_i32_1 = arith.constant 0 : i32
    return %c0_i32, %c0_i32_0 : i32, i32
  }
  func.func @transform_3(%arg0: i32) -> (i32, i32) {
    %c0_i32 = arith.constant 0 : i32
    %c0_i32_0 = arith.constant 0 : i32
    %c0_i32_1 = arith.constant 0 : i32
    return %c0_i32, %c0_i32_0 : i32, i32
  }
  func.func @transform_4(%arg0: i32) -> (i32, i32) {
    %c0_i32 = arith.constant 0 : i32
    %c0_i32_0 = arith.constant 0 : i32
    %c0_i32_1 = arith.constant 0 : i32
    return %c0_i32, %c0_i32_0 : i32, i32
  }
}

module attributes {stable_mosaic.version = 11 : i64} {
  func.func @_max_over_taps_kernel(%arg0: i32, %arg1: memref<9x2x10xf32, #tpu.memory_space<vmem>>, %arg2: memref<2x10xf32, #tpu.memory_space<vmem>>) attributes {dimension_semantics = [#tpu.dimension_semantics<arbitrary>], iteration_bounds = array<i64: 1>, scalar_prefetch = 0 : i64, scratch_operands = 0 : i64, tpu.core_type = #tpu.core_type<tc>, window_params = [{pipeline_mode = #tpu.pipeline_mode<synchronous>, transform_indices = @transform_0, window_bounds = array<i64: 9, 2, 10>}, {pipeline_mode = #tpu.pipeline_mode<synchronous>, transform_indices = @transform_1, window_bounds = array<i64: 2, 10>}]} {
    %c0 = arith.constant 0 : index
    %c0_0 = arith.constant 0 : index
    %c0_1 = arith.constant 0 : index
    %0 = vector.load %arg1[%c0, %c0_0, %c0_1] : memref<9x2x10xf32, #tpu.memory_space<vmem>>, vector<9x2x10xf32>
    %cst = arith.constant dense<0xFF800000> : vector<2x10xf32>
    %1 = vector.multi_reduction <maximumf>, %0, %cst [0] : vector<9x2x10xf32> to vector<2x10xf32>
    %c0_2 = arith.constant 0 : index
    %c0_3 = arith.constant 0 : index
    %2 = vector.load %arg2[%c0_2, %c0_3] : memref<2x10xf32, #tpu.memory_space<vmem>>, vector<2x10xf32>
    tpu.vector_store %arg2[%c0_2, %c0_3], %1 {strides = array<i32>} : memref<2x10xf32, #tpu.memory_space<vmem>>, vector<2x10xf32>,
    return
  }
  func.func @transform_0(%arg0: i32) -> (i32, i32, i32) {
    %c0_i32 = arith.constant 0 : i32
    %c0_i32_0 = arith.constant 0 : i32
    %c0_i32_1 = arith.constant 0 : i32
    %c0_i32_2 = arith.constant 0 : i32
    return %c0_i32, %c0_i32_0, %c0_i32_1 : i32, i32, i32
  }
  func.func @transform_1(%arg0: i32) -> (i32, i32) {
    %c0_i32 = arith.constant 0 : i32
    %c0_i32_0 = arith.constant 0 : i32
    %c0_i32_1 = arith.constant 0 : i32
    return %c0_i32, %c0_i32_0 : i32, i32
  }
}

module attributes {stable_mosaic.version = 11 : i64} {
  func.func @_linear_kernel(%arg0: i32, %arg1: memref<2x15xf32, #tpu.memory_space<vmem>>, %arg2: memref<15x10xf32, #tpu.memory_space<vmem>>, %arg3: memref<1x10xf32, #tpu.memory_space<vmem>>, %arg4: memref<2x10xf32, #tpu.memory_space<vmem>>) attributes {dimension_semantics = [#tpu.dimension_semantics<arbitrary>], iteration_bounds = array<i64: 1>, scalar_prefetch = 0 : i64, scratch_operands = 0 : i64, tpu.core_type = #tpu.core_type<tc>, window_params = [{pipeline_mode = #tpu.pipeline_mode<synchronous>, transform_indices = @transform_0, window_bounds = array<i64: 2, 15>}, {pipeline_mode = #tpu.pipeline_mode<synchronous>, transform_indices = @transform_1, window_bounds = array<i64: 15, 10>}, {pipeline_mode = #tpu.pipeline_mode<synchronous>, transform_indices = @transform_2, window_bounds = array<i64: 1, 10>}, {pipeline_mode = #tpu.pipeline_mode<synchronous>, transform_indices = @transform_3, window_bounds = array<i64: 2, 10>}]} {
    %c0 = arith.constant 0 : index
    %c0_0 = arith.constant 0 : index
    %0 = vector.load %arg1[%c0, %c0_0] : memref<2x15xf32, #tpu.memory_space<vmem>>, vector<2x15xf32>
    %c0_1 = arith.constant 0 : index
    %c0_2 = arith.constant 0 : index
    %1 = vector.load %arg2[%c0_1, %c0_2] : memref<15x10xf32, #tpu.memory_space<vmem>>, vector<15x10xf32>
    %cst = arith.constant dense<0.000000e+00> : vector<2x10xf32>
    %2 = tpu.matmul %0, %1, %cst {dimension_numbers = #tpu.dot_dimension_numbers<[1], [0], [0], [1], [0, 0, 1, 1], [], []>} : vector<2x15xf32>, vector<15x10xf32>, vector<2x10xf32> -> vector<2x10xf32>
    %c0_3 = arith.constant 0 : index
    %c0_4 = arith.constant 0 : index
    %3 = vector.load %arg3[%c0_3, %c0_4] : memref<1x10xf32, #tpu.memory_space<vmem>>, vector<1x10xf32>
    %4 = vector.broadcast %3 : vector<1x10xf32> to vector<2x10xf32>
    %5 = arith.addf %2, %4 : vector<2x10xf32>
    %c0_5 = arith.constant 0 : index
    %c0_6 = arith.constant 0 : index
    %6 = vector.load %arg4[%c0_5, %c0_6] : memref<2x10xf32, #tpu.memory_space<vmem>>, vector<2x10xf32>
    tpu.vector_store %arg4[%c0_5, %c0_6], %5 {strides = array<i32>} : memref<2x10xf32, #tpu.memory_space<vmem>>, vector<2x10xf32>,
    return
  }
  func.func @transform_0(%arg0: i32) -> (i32, i32) {
    %c0_i32 = arith.constant 0 : i32
    %c0_i32_0 = arith.constant 0 : i32
    %c0_i32_1 = arith.constant 0 : i32
    return %c0_i32, %c0_i32_0 : i32, i32
  }
  func.func @transform_1(%arg0: i32) -> (i32, i32) {
    %c0_i32 = arith.constant 0 : i32
    %c0_i32_0 = arith.constant 0 : i32
    %c0_i32_1 = arith.constant 0 : i32
    return %c0_i32, %c0_i32_0 : i32, i32
  }
  func.func @transform_2(%arg0: i32) -> (i32, i32) {
    %c0_i32 = arith.constant 0 : i32
    %c0_i32_0 = arith.constant 0 : i32
    %c0_i32_1 = arith.constant 0 : i32
    return %c0_i32, %c0_i32_0 : i32, i32
  }
  func.func @transform_3(%arg0: i32) -> (i32, i32) {
    %c0_i32 = arith.constant 0 : i32
    %c0_i32_0 = arith.constant 0 : i32
    %c0_i32_1 = arith.constant 0 : i32
    return %c0_i32, %c0_i32_0 : i32, i32
  }
}

</mosaic_0001>

<bundles_post_ra>
// kernel: custom_network_q4_forward.46
= control target key start
LH: loop header
LB: loop body
LE: loop exit
PB: predicated region body
PF: predicated region fallthrough
CT: control target
= control target key end

     0   :  { %s731_s1 = inlined_call_operand.vmem [shape: f32[128,128], index: 1, kind: input, shape index: {}]   ;;  %s732_s0 = inlined_call_operand.vmem [shape: f32[128,128], index: 0, kind: input, shape index: {}]   ;;  %s733_s2 = inlined_call_operand.vmem [shape: f32[1,128], index: 2, kind: input, shape index: {}]   ;;  %s734_s3 = inlined_call_operand.vmem [shape: f32[1,128], index: 3, kind: input, shape index: {}]   ;;  %s735_s4 = inlined_call_operand.vmem [shape: f32[128,128], index: 4, kind: output, shape index: {}]  }
   0x1   :  { %v48_v0 = vld [vmem:[%s731_s1 + $0x78] sm:$0xff]  ;;  %v47_v1 = vld [vmem:[%s731_s1 + $0x70] sm:$0xff]  ;;  %v46_v2 = vld [vmem:[%s731_s1 + $0x68] sm:$0xff] }
   0x2   :  { %376 = vmatprep.subr.mxu0 %v48_v0  ;;  %432 = vmatprep.subr.mxu1 %v48_v0  ;;  %v45_v3 = vld [vmem:[%s731_s1 + $0x60] sm:$0xff]  ;;  %v44_v4 = vld [vmem:[%s731_s1 + $0x58] sm:$0xff]  ;;  %v43_v5 = vld [vmem:[%s731_s1 + $0x50] sm:$0xff] }
   0x3   :  { %377 = vmatpush3.msra.mxu0 %v48_v0  ;;  %448 = vmatpush3.msra.mxu1 %v48_v0  ;;  %v42_v6 = vld [vmem:[%s731_s1 + $0x48] sm:$0xff]  ;;  %v41_v7 = vld [vmem:[%s731_s1 + $0x40] sm:$0xff]  ;;  %v40_v8 = vld [vmem:[%s731_s1 + $0x38] sm:$0xff] }
   0x4   :  { %378 = vmatprep.subr.mxu0 %v47_v1  ;;  %433 = vmatprep.subr.mxu1 %v47_v1  ;;  %v39_v9 = vld [vmem:[%s731_s1 + $0x30] sm:$0xff]  ;;  %v17_v10 = vld [vmem:[%s732_s0] sm:$0xff]  ;;  %v38_v11 = vld [vmem:[%s731_s1 + $0x28] sm:$0xff] }
   0x5   :  { %379 = vmatpush3.msra.mxu0 %v47_v1  ;;  %449 = vmatpush3.msra.mxu1 %v47_v1  ;;  %v37_v12 = vld [vmem:[%s731_s1 + $0x20] sm:$0xff]  ;;  %v36_v13 = vld [vmem:[%s731_s1 + $0x18] sm:$0xff]  ;;  %v35_v14 = vld [vmem:[%s731_s1 + $0x10] sm:$0xff] }
   0x6   :  { %380 = vmatprep.subr.mxu0 %v46_v2  ;;  %434 = vmatprep.subr.mxu1 %v46_v2  ;;  %v34_v15 = vld [vmem:[%s731_s1 + $0x8] sm:$0xff]  ;;  %v33_v16 = vld [vmem:[%s731_s1] sm:$0xff]  ;;  %v19_v18 = vld [vmem:[%s732_s0 + $0x10] sm:$0xff] }
   0x7   :  { %381 = vmatpush3.msra.mxu0 %v46_v2  ;;  %450 = vmatpush3.msra.mxu1 %v46_v2  ;;  %v18_v17 = vld [vmem:[%s732_s0 + $0x8] sm:$0xff]  ;;  %v25_v19 = vld [vmem:[%s732_s0 + $0x40] sm:$0xff]  ;;  %v27_v21 = vld [vmem:[%s732_s0 + $0x50] sm:$0xff] }
   0x8   :  { %382 = vmatprep.subr.mxu0 %v45_v3  ;;  %435 = vmatprep.subr.mxu1 %v45_v3  ;;  %v26_v20 = vld [vmem:[%s732_s0 + $0x48] sm:$0xff]  ;;  %v20_v22 = vld [vmem:[%s732_s0 + $0x18] sm:$0xff]  ;;  %v21_v23 = vld [vmem:[%s732_s0 + $0x20] sm:$0xff] }
   0x9   :  { %383 = vmatpush3.msra.mxu0 %v45_v3  ;;  %451 = vmatpush3.msra.mxu1 %v45_v3  ;;  %v28_v24 = vld [vmem:[%s732_s0 + $0x58] sm:$0xff]  ;;  %v29_v25 = vld [vmem:[%s732_s0 + $0x60] sm:$0xff]  ;;  %v22_v26 = vld [vmem:[%s732_s0 + $0x28] sm:$0xff] }
   0xa   :  { %384 = vmatprep.subr.mxu0 %v44_v4  ;;  %436 = vmatprep.subr.mxu1 %v44_v4  ;;  %v23_v27 = vld [vmem:[%s732_s0 + $0x30] sm:$0xff]  ;;  %v30_v28 = vld [vmem:[%s732_s0 + $0x68] sm:$0xff]  ;;  %v24_v30 = vld [vmem:[%s732_s0 + $0x38] sm:$0xff] }
   0xb   :  { %385 = vmatpush3.msra.mxu0 %v44_v4  ;;  %452 = vmatpush3.msra.mxu1 %v44_v4  ;;  %v31_v29 = vld [vmem:[%s732_s0 + $0x70] sm:$0xff]  ;;  %v32_v31 = vld [vmem:[%s732_s0 + $0x78] sm:$0xff] }
   0xc   :  { %386 = vmatprep.subr.mxu0 %v43_v5  ;;  %437 = vmatprep.subr.mxu1 %v43_v5 }
   0xd   :  { %387 = vmatpush3.msra.mxu0 %v43_v5  ;;  %453 = vmatpush3.msra.mxu1 %v43_v5 }
   0xe   :  { %388 = vmatprep.subr.mxu0 %v42_v6  ;;  %438 = vmatprep.subr.mxu1 %v42_v6 }
   0xf   :  { %389 = vmatpush3.msra.mxu0 %v42_v6  ;;  %454 = vmatpush3.msra.mxu1 %v42_v6 }
  0x10   :  { %390 = vmatprep.subr.mxu0 %v41_v7  ;;  %439 = vmatprep.subr.mxu1 %v41_v7 }
  0x11   :  { %391 = vmatpush3.msra.mxu0 %v41_v7  ;;  %455 = vmatpush3.msra.mxu1 %v41_v7 }
  0x12   :  { %392 = vmatprep.subr.mxu0 %v40_v8  ;;  %440 = vmatprep.subr.mxu1 %v40_v8 }
  0x13   :  { %393 = vmatpush3.msra.mxu0 %v40_v8  ;;  %456 = vmatpush3.msra.mxu1 %v40_v8 }
  0x14   :  { %394 = vmatprep.subr.mxu0 %v39_v9  ;;  %408 = vmatprep.mubr.f32.mxu0 %v17_v10 }
  0x15   :  { %395 = vmatpush3.msra.mxu0 %v39_v9  ;;  %441 = vmatprep.subr.mxu1 %v39_v9 }
  0x16   :  { %396 = vmatprep.subr.mxu0 %v38_v11  ;;  %457 = vmatpush3.msra.mxu1 %v39_v9 }
  0x17   :  { %397 = vmatpush3.msra.mxu0 %v38_v11  ;;  %442 = vmatprep.subr.mxu1 %v38_v11 }
  0x18   :  { %398 = vmatprep.subr.mxu0 %v37_v12  ;;  %458 = vmatpush3.msra.mxu1 %v38_v11 }
  0x19   :  { %399 = vmatpush3.msra.mxu0 %v37_v12  ;;  %443 = vmatprep.subr.mxu1 %v37_v12 }
  0x1a   :  { %400 = vmatprep.subr.mxu0 %v36_v13  ;;  %459 = vmatpush3.msra.mxu1 %v37_v12 }
  0x1b   :  { %401 = vmatpush3.msra.mxu0 %v36_v13  ;;  %444 = vmatprep.subr.mxu1 %v36_v13 }
  0x1c   :  { %402 = vmatprep.subr.mxu0 %v35_v14  ;;  %460 = vmatpush3.msra.mxu1 %v36_v13 }
  0x1d   :  { %403 = vmatpush3.msra.mxu0 %v35_v14  ;;  %445 = vmatprep.subr.mxu1 %v35_v14 }
  0x1e   :  { %404 = vmatprep.subr.mxu0 %v34_v15  ;;  %461 = vmatpush3.msra.mxu1 %v35_v14 }
  0x1f   :  { %405 = vmatpush3.msra.mxu0 %v34_v15  ;;  %446 = vmatprep.subr.mxu1 %v34_v15 }
  0x20   :  { %406 = vmatprep.subr.mxu0 %v33_v16  ;;  %462 = vmatpush3.msra.mxu1 %v34_v15 }
  0x21   :  { %407 = vmatpush3.msra.mxu0 %v33_v16  ;;  %447 = vmatprep.subr.mxu1 %v33_v16 }
  0x22   :  { %409 = vmatmul.mubr.f32.vlgmr.msra.gmra.mxu0 %v18_v17  ;;  %463 = vmatpush3.msra.mxu1 %v33_v16 }
  0x23   :  { %411 = vmatprep.mubr.f32.mxu0 %v19_v18  ;;  %420 = vmatprep.mubr.f32.mxu1 %v25_v19 }
  0x24   :  { %421 = vmatmul.mubr.f32.vlgmr.msra.gmra.mxu1 %v26_v20 }
  0x25   :  { %423 = vmatprep.mubr.f32.mxu1 %v27_v21 }
  0x26   :  { %412 = vmatmul.mubr.f32.gmra.mxu0 %v20_v22 }
  0x27   :  { %414 = vmatprep.mubr.f32.mxu0 %v21_v23 }
  0x28   :  { %424 = vmatmul.mubr.f32.gmra.mxu1 %v28_v24 }
  0x29   :  { %426 = vmatprep.mubr.f32.mxu1 %v29_v25 }
  0x2a   :  { %415 = vmatmul.mubr.f32.gmra.mxu0 %v22_v26 }
  0x2b   :  { %417 = vmatprep.mubr.f32.mxu0 %v23_v27 }
  0x2c   :  { %427 = vmatmul.mubr.f32.gmra.mxu1 %v30_v28 }
  0x2d   :  { %429 = vmatprep.mubr.f32.mxu1 %v31_v29 }
  0x2e   :  { %418 = vmatmul.mubr.f32.gmra.mxu0 %v24_v30 }
  0x30   :  { %430 = vmatmul.mubr.f32.gmra.mxu1 %v32_v31 }
  0xe2   :  { %v587_v32 = vpop.f32.mrf.mxu0 }
  0xe3   :  { %v216_v38 = vmul.f32 %v587_v32, %v587_v32 }
  0xe4   :  { %v589_v33 = vpop.f32.mrf.mxu0  ;;  %v591_v34 = vpop.f32.mrf.mxu1 }
  0xe5   :  { %v215_v35 = vmul.f32 %v589_v33, %v589_v33  ;;  %v194_v39 = vadd.f32 %v587_v32, %v589_v33  ;;  %v224_v6 = vmul.f32 %v591_v34, %v591_v34 }
  0xe6   :  { %v595_v36 = vpop.f32.mrf.mxu0  ;;  %v597_v37 = vpop.f32.mrf.mxu1 }
  0xe7   :  { %v231_v41 = vadd.f32 %v216_v38, %v215_v35  ;;  %v218_v46 = vmul.f32 %v595_v36, %v595_v36  ;;  %v223_v4 = vmul.f32 %v597_v37, %v597_v37 }
  0xe8   :  { %v603_v40 = vpop.f32.mrf.mxu0  ;;  %v610_v45 = vpop.f32.mrf.mxu1 }
  0xe9   :  { %v195_v42 = vadd.f32 %v194_v39, %v603_v40  ;;  %v217_v43 = vmul.f32 %v603_v40, %v603_v40  ;;  %v226_v13 = vmul.f32 %v610_v45, %v610_v45 }
  0xea   :  { %v608_v44 = vpop.f32.mrf.mxu0  ;;  %v622_v54 = vpop.f32.mrf.mxu1 }
  0xeb   :  { %v232_v47 = vadd.f32 %v231_v41, %v217_v43  ;;  %v196_v48 = vadd.f32 %v595_v36, %v195_v42  ;;  %v220_v55 = vmul.f32 %v608_v44, %v608_v44  ;;  %v225_v10 = vmul.f32 %v622_v54, %v622_v54 }
  0xec   :  { %v615_v49 = vpop.f32.mrf.mxu0  ;;  %v632_v62 = vpop.f32.mrf.mxu1 }
  0xed   :  { %v197_v50 = vadd.f32 %v196_v48, %v615_v49  ;;  %v219_v51 = vmul.f32 %v615_v49, %v615_v49  ;;  %v233_v52 = vadd.f32 %v232_v47, %v218_v46  ;;  %v228_v20 = vmul.f32 %v632_v62, %v632_v62 }
  0xee   :  { %v620_v53 = vpop.f32.mrf.mxu0  ;;  %v640_v5 = vpop.f32.mrf.mxu1 }
  0xef   :  { %v234_v56 = vadd.f32 %v233_v52, %v219_v51  ;;  %v198_v57 = vadd.f32 %v608_v44, %v197_v50  ;;  %v222_v63 = vmul.f32 %v620_v53, %v620_v53  ;;  %v227_v17 = vmul.f32 %v640_v5, %v640_v5 }
  0xf0   :  { %v627_v58 = vpop.f32.mrf.mxu0  ;;  %v648_v12 = vpop.f32.mrf.mxu1 }
  0xf1   :  { %v199_v59 = vadd.f32 %v198_v57, %v627_v58  ;;  %v221_v60 = vmul.f32 %v627_v58, %v627_v58  ;;  %v235_v61 = vadd.f32 %v234_v56, %v220_v55  ;;  %v230_v26 = vmul.f32 %v648_v12, %v648_v12 }
  0xf2   :  { %v185_v19 = vpop.f32.mrf.mxu1 }
  0xf3   :  { %v200_v0 = vadd.f32 %v620_v53, %v199_v59  ;;  %v236_v1 = vadd.f32 %v235_v61, %v221_v60  ;;  %v229_v24 = vmul.f32 %v185_v19, %v185_v19  ;;  %v265_v60 = vlaneseq }
  0xf5   :  { %v237_v2 = vadd.f32 %v236_v1, %v222_v63  ;;  %v201_v3 = vadd.f32 %v200_v0, %v597_v37  ;;  %v266_v61 = vshrl.u32 %v265_v60, 7  ;;  %v259_v63 = vld [vmem:[%s733_s2] sm:$0x1] }
  0xf7   :  { %v238_v7 = vadd.f32 %v237_v2, %v223_v4  ;;  %v202_v8 = vadd.f32 %v591_v34, %v201_v3  ;;  %v267_v0 = vsub.s32 0, %v266_v61  ;;  %v261_v3 = vld [vmem:[%s734_s3] sm:$0x1] }
  0xf9   :  { %v203_v9 = vadd.f32 %v202_v8, %v622_v54  ;;  %v239_v11 = vadd.f32 %v238_v7, %v224_v6 }
  0xfb   :  { %v240_v14 = vadd.f32 %v239_v11, %v225_v10  ;;  %v204_v15 = vadd.f32 %v610_v45, %v203_v9 }
  0xfd   :  { %v205_v16 = vadd.f32 %v204_v15, %v640_v5  ;;  %v241_v18 = vadd.f32 %v240_v14, %v226_v13 }
  0xff   :  { %v242_v21 = vadd.f32 %v241_v18, %v227_v17  ;;  %v206_v22 = vadd.f32 %v632_v62, %v205_v16 }
 0x101   :  { %v207_v23 = vadd.f32 %v206_v22, %v185_v19  ;;  %v243_v25 = vadd.f32 %v242_v21, %v228_v20 }
 0x103   :  { %v208_v27 = vadd.f32 %v648_v12, %v207_v23  ;;  %v244_v28 = vadd.f32 %v243_v25, %v229_v24 }
 0x105   :  { %v209_v29 = vrot.slane %v208_v27, 4  ;;  %v245_v30 = vadd.f32 %v244_v28, %v230_v26 }
 0x107   :  { %v210_v31 = vadd.f32 %v209_v29, %v208_v27  ;;  %v246_v35 = vrot.slane %v245_v30, 4 }
 0x109   :  { %v211_v38 = vrot.slane %v210_v31, 2  ;;  %v247_v39 = vadd.f32 %v246_v35, %v245_v30 }
 0x10b   :  { %v212_v41 = vadd.f32 %v211_v38, %v210_v31  ;;  %v248_v42 = vrot.slane %v247_v39, 2 }
 0x10d   :  { %v213_v43 = vrot.slane %v212_v41, 1  ;;  %v249_v46 = vadd.f32 %v248_v42, %v247_v39 }
 0x10f   :  { %v214_v47 = vadd.f32 %v213_v43, %v212_v41  ;;  %v250_v48 = vrot.slane %v249_v46, 1 }
 0x111   :  { %v251_v50 = vadd.f32 %v250_v48, %v249_v46  ;;  %v252_v51 = vmul.f32 0.0078125, %v214_v47 }
 0x113   :  { %v253_v52 = vmul.f32 0.0078125, %v251_v50  ;;  %v254_v55 = vmul.f32 %v252_v51, %v252_v51 }
 0x115   :  { %v255_v56 = vsub.f32 %v253_v52, %v254_v55 }
 0x117   :  { %v256_v57 = vmax.f32 %v255_v56, 0.0 }
 0x119   :  { %v257_v59 = vadd.f32 1e-05, %v256_v57 }
 0x11b   :  { %464 = vrsqrt.f32 %v257_v59 }
 0x128   :  { %v465_v1 = vpop.eup %464 }
 0x129   :  { %v260_v2 = vmul.f32 %v465_v1, %v259_v63 }
 0x12b   :  { %v262_v4 = vmul.f32 %v260_v2, %v252_v51  ;;  %v268_v6 = vrot.slane %v260_v2, %v267_v0 }
 0x12d   :  { %v263_v7 = vsub.f32 %v261_v3, %v262_v4  ;;  %v270_v8 = vmul.f32 %v268_v6, %v589_v33  ;;  %v271_v9 = vmul.f32 %v587_v32, %v268_v6  ;;  %v272_v10 = vmul.f32 %v268_v6, %v603_v40 }
 0x12e   :  { %v273_v11 = vmul.f32 %v595_v36, %v268_v6  ;;  %v274_v13 = vmul.f32 %v268_v6, %v615_v49  ;;  %v275_v14 = vmul.f32 %v608_v44, %v268_v6  ;;  %v276_v15 = vmul.f32 %v268_v6, %v627_v58 }
 0x12f   :  { %v277_v16 = vmul.f32 %v620_v53, %v268_v6  ;;  %v278_v17 = vmul.f32 %v268_v6, %v597_v37  ;;  %v279_v18 = vmul.f32 %v591_v34, %v268_v6  ;;  %v280_v33 = vmul.f32 %v268_v6, %v622_v54 }
 0x130   :  { %v281_v32 = vmul.f32 %v610_v45, %v268_v6  ;;  %v290_v20 = vrot.slane %v263_v7, %v267_v0  ;;  %v282_v40 = vmul.f32 %v268_v6, %v640_v5  ;;  %v283_v36 = vmul.f32 %v632_v62, %v268_v6 }
 0x131   :  { %v284_v49 = vmul.f32 %v268_v6, %v185_v19  ;;  %v285_v44 = vmul.f32 %v648_v12, %v268_v6 }
 0x132   :  { %v292_v21 = vadd.f32 %v290_v20, %v270_v8  ;;  %v293_v58 = vadd.f32 %v290_v20, %v271_v9  ;;  %v294_v22 = vadd.f32 %v290_v20, %v272_v10  ;;  %v295_v53 = vadd.f32 %v290_v20, %v273_v11 }
 0x133   :  { %v296_v23 = vadd.f32 %v290_v20, %v274_v13  ;;  %v297_v37 = vadd.f32 %v290_v20, %v275_v14  ;;  %v298_v24 = vadd.f32 %v290_v20, %v276_v15  ;;  %v299_v34 = vadd.f32 %v290_v20, %v277_v16 }
 0x134   :  { %v300_v25 = vadd.f32 %v290_v20, %v278_v17  ;;  %v301_v54 = vadd.f32 %v290_v20, %v279_v18  ;;  %v302_v26 = vadd.f32 %v290_v20, %v280_v33  ;;  %v303_v45 = vadd.f32 %v290_v20, %v281_v32 }
 0x135   :  { %v304_v27 = vadd.f32 %v290_v20, %v282_v40  ;;  %v305_v28 = vadd.f32 %v290_v20, %v283_v36  ;;  %v306_v5 = vadd.f32 %v290_v20, %v284_v49  ;;  %v307_v29 = vadd.f32 %v290_v20, %v285_v44 }
 0x136   :  { %v308_v62 = vmax.f32 %v292_v21, 0.0  ;;  %v309_v19 = vmax.f32 %v293_v58, 0.0  ;;  %v310_v30 = vmax.f32 %v294_v22, 0.0  ;;  %v311_v12 = vmax.f32 %v295_v53, 0.0 }
 0x137   :  { %v312_v31 = vmax.f32 %v296_v23, 0.0  ;;  %v313_v35 = vmax.f32 %v297_v37, 0.0  ;;  %v314_v38 = vmax.f32 %v298_v24, 0.0  ;;  %v315_v39 = vmax.f32 %v299_v34, 0.0 }
 0x138   :  { %v316_v41 = vmax.f32 %v300_v25, 0.0  ;;  %v317_v42 = vmax.f32 %v301_v54, 0.0  ;;  %v318_v43 = vmax.f32 %v302_v26, 0.0  ;;  %v319_v46 = vmax.f32 %v303_v45, 0.0  ;;  %324 = vst [vmem:[%s735_s4] sm:$0xff] %v308_v62  ;;  %325 = vst [vmem:[%s735_s4 + $0x8] sm:$0xff] %v309_v19 }
 0x139   :  { %326 = vst [vmem:[%s735_s4 + $0x10] sm:$0xff] %v310_v30  ;;  %327 = vst [vmem:[%s735_s4 + $0x18] sm:$0xff] %v311_v12  ;;  %v320_v47 = vmax.f32 %v304_v27, 0.0  ;;  %v321_v48 = vmax.f32 %v305_v28, 0.0  ;;  %v322_v50 = vmax.f32 %v306_v5, 0.0  ;;  %v323_v51 = vmax.f32 %v307_v29, 0.0 }
 0x13a   :  { %328 = vst [vmem:[%s735_s4 + $0x20] sm:$0xff] %v312_v31  ;;  %329 = vst [vmem:[%s735_s4 + $0x28] sm:$0xff] %v313_v35 }
 0x13b   :  { %330 = vst [vmem:[%s735_s4 + $0x30] sm:$0xff] %v314_v38  ;;  %331 = vst [vmem:[%s735_s4 + $0x38] sm:$0xff] %v315_v39 }
 0x13c   :  { %332 = vst [vmem:[%s735_s4 + $0x40] sm:$0xff] %v316_v41  ;;  %333 = vst [vmem:[%s735_s4 + $0x48] sm:$0xff] %v317_v42 }
 0x13d   :  { %334 = vst [vmem:[%s735_s4 + $0x50] sm:$0xff] %v318_v43  ;;  %335 = vst [vmem:[%s735_s4 + $0x58] sm:$0xff] %v319_v46 }
 0x13e   :  { %336 = vst [vmem:[%s735_s4 + $0x60] sm:$0xff] %v320_v47  ;;  %337 = vst [vmem:[%s735_s4 + $0x68] sm:$0xff] %v321_v48 }
 0x13f   :  { %338 = vst [vmem:[%s735_s4 + $0x70] sm:$0xff] %v322_v50  ;;  %339 = vst [vmem:[%s735_s4 + $0x78] sm:$0xff] %v323_v51 }

// kernel: custom_network_q4_forward.47
= control target key start
LH: loop header
LB: loop body
LE: loop exit
PB: predicated region body
PF: predicated region fallthrough
CT: control target
= control target key end

     0   :  { %s715_s1 = inlined_call_operand.vmem [shape: f32[128,128], index: 1, kind: input, shape index: {}]   ;;  %s716_s0 = inlined_call_operand.vmem [shape: f32[128,128], index: 0, kind: input, shape index: {}]   ;;  %s717_s2 = inlined_call_operand.vmem [shape: f32[1,128], index: 2, kind: input, shape index: {}]   ;;  %s718_s3 = inlined_call_operand.vmem [shape: f32[1,128], index: 3, kind: input, shape index: {}]   ;;  %s719_s4 = inlined_call_operand.vmem [shape: f32[128,128], index: 4, kind: output, shape index: {}]  }
   0x1   :  { %v48_v0 = vld [vmem:[%s715_s1 + $0x78] sm:$0xff]  ;;  %v47_v1 = vld [vmem:[%s715_s1 + $0x70] sm:$0xff]  ;;  %v46_v2 = vld [vmem:[%s715_s1 + $0x68] sm:$0xff] }
   0x2   :  { %360 = vmatprep.subr.mxu0 %v48_v0  ;;  %416 = vmatprep.subr.mxu1 %v48_v0  ;;  %v45_v3 = vld [vmem:[%s715_s1 + $0x60] sm:$0xff]  ;;  %v44_v4 = vld [vmem:[%s715_s1 + $0x58] sm:$0xff]  ;;  %v43_v5 = vld [vmem:[%s715_s1 + $0x50] sm:$0xff] }
   0x3   :  { %361 = vmatpush3.msra.mxu0 %v48_v0  ;;  %432 = vmatpush3.msra.mxu1 %v48_v0  ;;  %v42_v6 = vld [vmem:[%s715_s1 + $0x48] sm:$0xff]  ;;  %v41_v7 = vld [vmem:[%s715_s1 + $0x40] sm:$0xff]  ;;  %v40_v8 = vld [vmem:[%s715_s1 + $0x38] sm:$0xff] }
   0x4   :  { %362 = vmatprep.subr.mxu0 %v47_v1  ;;  %417 = vmatprep.subr.mxu1 %v47_v1  ;;  %v39_v9 = vld [vmem:[%s715_s1 + $0x30] sm:$0xff]  ;;  %v17_v10 = vld [vmem:[%s716_s0] sm:$0xff]  ;;  %v38_v11 = vld [vmem:[%s715_s1 + $0x28] sm:$0xff] }
   0x5   :  { %363 = vmatpush3.msra.mxu0 %v47_v1  ;;  %433 = vmatpush3.msra.mxu1 %v47_v1  ;;  %v37_v12 = vld [vmem:[%s715_s1 + $0x20] sm:$0xff]  ;;  %v36_v13 = vld [vmem:[%s715_s1 + $0x18] sm:$0xff]  ;;  %v35_v14 = vld [vmem:[%s715_s1 + $0x10] sm:$0xff] }
   0x6   :  { %364 = vmatprep.subr.mxu0 %v46_v2  ;;  %418 = vmatprep.subr.mxu1 %v46_v2  ;;  %v34_v15 = vld [vmem:[%s715_s1 + $0x8] sm:$0xff]  ;;  %v33_v16 = vld [vmem:[%s715_s1] sm:$0xff]  ;;  %v19_v18 = vld [vmem:[%s716_s0 + $0x10] sm:$0xff] }
   0x7   :  { %365 = vmatpush3.msra.mxu0 %v46_v2  ;;  %434 = vmatpush3.msra.mxu1 %v46_v2  ;;  %v18_v17 = vld [vmem:[%s716_s0 + $0x8] sm:$0xff]  ;;  %v25_v19 = vld [vmem:[%s716_s0 + $0x40] sm:$0xff]  ;;  %v27_v21 = vld [vmem:[%s716_s0 + $0x50] sm:$0xff] }
   0x8   :  { %366 = vmatprep.subr.mxu0 %v45_v3  ;;  %419 = vmatprep.subr.mxu1 %v45_v3  ;;  %v26_v20 = vld [vmem:[%s716_s0 + $0x48] sm:$0xff]  ;;  %v20_v22 = vld [vmem:[%s716_s0 + $0x18] sm:$0xff]  ;;  %v21_v23 = vld [vmem:[%s716_s0 + $0x20] sm:$0xff] }
   0x9   :  { %367 = vmatpush3.msra.mxu0 %v45_v3  ;;  %435 = vmatpush3.msra.mxu1 %v45_v3  ;;  %v28_v24 = vld [vmem:[%s716_s0 + $0x58] sm:$0xff]  ;;  %v29_v25 = vld [vmem:[%s716_s0 + $0x60] sm:$0xff]  ;;  %v22_v26 = vld [vmem:[%s716_s0 + $0x28] sm:$0xff] }
   0xa   :  { %368 = vmatprep.subr.mxu0 %v44_v4  ;;  %420 = vmatprep.subr.mxu1 %v44_v4  ;;  %v23_v27 = vld [vmem:[%s716_s0 + $0x30] sm:$0xff]  ;;  %v30_v28 = vld [vmem:[%s716_s0 + $0x68] sm:$0xff]  ;;  %v24_v30 = vld [vmem:[%s716_s0 + $0x38] sm:$0xff] }
   0xb   :  { %369 = vmatpush3.msra.mxu0 %v44_v4  ;;  %436 = vmatpush3.msra.mxu1 %v44_v4  ;;  %v31_v29 = vld [vmem:[%s716_s0 + $0x70] sm:$0xff]  ;;  %v32_v31 = vld [vmem:[%s716_s0 + $0x78] sm:$0xff] }
   0xc   :  { %370 = vmatprep.subr.mxu0 %v43_v5  ;;  %421 = vmatprep.subr.mxu1 %v43_v5 }
   0xd   :  { %371 = vmatpush3.msra.mxu0 %v43_v5  ;;  %437 = vmatpush3.msra.mxu1 %v43_v5 }
   0xe   :  { %372 = vmatprep.subr.mxu0 %v42_v6  ;;  %422 = vmatprep.subr.mxu1 %v42_v6 }
   0xf   :  { %373 = vmatpush3.msra.mxu0 %v42_v6  ;;  %438 = vmatpush3.msra.mxu1 %v42_v6 }
  0x10   :  { %374 = vmatprep.subr.mxu0 %v41_v7  ;;  %423 = vmatprep.subr.mxu1 %v41_v7 }
  0x11   :  { %375 = vmatpush3.msra.mxu0 %v41_v7  ;;  %439 = vmatpush3.msra.mxu1 %v41_v7 }
  0x12   :  { %376 = vmatprep.subr.mxu0 %v40_v8  ;;  %424 = vmatprep.subr.mxu1 %v40_v8 }
  0x13   :  { %377 = vmatpush3.msra.mxu0 %v40_v8  ;;  %440 = vmatpush3.msra.mxu1 %v40_v8 }
  0x14   :  { %378 = vmatprep.subr.mxu0 %v39_v9  ;;  %392 = vmatprep.mubr.f32.mxu0 %v17_v10 }
  0x15   :  { %379 = vmatpush3.msra.mxu0 %v39_v9  ;;  %425 = vmatprep.subr.mxu1 %v39_v9 }
  0x16   :  { %380 = vmatprep.subr.mxu0 %v38_v11  ;;  %441 = vmatpush3.msra.mxu1 %v39_v9 }
  0x17   :  { %381 = vmatpush3.msra.mxu0 %v38_v11  ;;  %426 = vmatprep.subr.mxu1 %v38_v11 }
  0x18   :  { %382 = vmatprep.subr.mxu0 %v37_v12  ;;  %442 = vmatpush3.msra.mxu1 %v38_v11 }
  0x19   :  { %383 = vmatpush3.msra.mxu0 %v37_v12  ;;  %427 = vmatprep.subr.mxu1 %v37_v12 }
  0x1a   :  { %384 = vmatprep.subr.mxu0 %v36_v13  ;;  %443 = vmatpush3.msra.mxu1 %v37_v12 }
  0x1b   :  { %385 = vmatpush3.msra.mxu0 %v36_v13  ;;  %428 = vmatprep.subr.mxu1 %v36_v13 }
  0x1c   :  { %386 = vmatprep.subr.mxu0 %v35_v14  ;;  %444 = vmatpush3.msra.mxu1 %v36_v13 }
  0x1d   :  { %387 = vmatpush3.msra.mxu0 %v35_v14  ;;  %429 = vmatprep.subr.mxu1 %v35_v14 }
  0x1e   :  { %388 = vmatprep.subr.mxu0 %v34_v15  ;;  %445 = vmatpush3.msra.mxu1 %v35_v14 }
  0x1f   :  { %389 = vmatpush3.msra.mxu0 %v34_v15  ;;  %430 = vmatprep.subr.mxu1 %v34_v15 }
  0x20   :  { %390 = vmatprep.subr.mxu0 %v33_v16  ;;  %446 = vmatpush3.msra.mxu1 %v34_v15 }
  0x21   :  { %391 = vmatpush3.msra.mxu0 %v33_v16  ;;  %431 = vmatprep.subr.mxu1 %v33_v16 }
  0x22   :  { %393 = vmatmul.mubr.f32.vlgmr.msra.gmra.mxu0 %v18_v17  ;;  %447 = vmatpush3.msra.mxu1 %v33_v16 }
  0x23   :  { %395 = vmatprep.mubr.f32.mxu0 %v19_v18  ;;  %404 = vmatprep.mubr.f32.mxu1 %v25_v19 }
  0x24   :  { %405 = vmatmul.mubr.f32.vlgmr.msra.gmra.mxu1 %v26_v20 }
  0x25   :  { %407 = vmatprep.mubr.f32.mxu1 %v27_v21 }
  0x26   :  { %396 = vmatmul.mubr.f32.gmra.mxu0 %v20_v22 }
  0x27   :  { %398 = vmatprep.mubr.f32.mxu0 %v21_v23 }
  0x28   :  { %408 = vmatmul.mubr.f32.gmra.mxu1 %v28_v24 }
  0x29   :  { %410 = vmatprep.mubr.f32.mxu1 %v29_v25 }
  0x2a   :  { %399 = vmatmul.mubr.f32.gmra.mxu0 %v22_v26 }
  0x2b   :  { %401 = vmatprep.mubr.f32.mxu0 %v23_v27 }
  0x2c   :  { %411 = vmatmul.mubr.f32.gmra.mxu1 %v30_v28 }
  0x2d   :  { %413 = vmatprep.mubr.f32.mxu1 %v31_v29 }
  0x2e   :  { %402 = vmatmul.mubr.f32.gmra.mxu0 %v24_v30 }
  0x30   :  { %414 = vmatmul.mubr.f32.gmra.mxu1 %v32_v31 }
  0xe2   :  { %v571_v32 = vpop.f32.mrf.mxu0 }
  0xe3   :  { %v216_v38 = vmul.f32 %v571_v32, %v571_v32 }
  0xe4   :  { %v573_v33 = vpop.f32.mrf.mxu0  ;;  %v575_v34 = vpop.f32.mrf.mxu1 }
  0xe5   :  { %v215_v35 = vmul.f32 %v573_v33, %v573_v33  ;;  %v194_v39 = vadd.f32 %v571_v32, %v573_v33  ;;  %v224_v6 = vmul.f32 %v575_v34, %v575_v34 }
  0xe6   :  { %v579_v36 = vpop.f32.mrf.mxu0  ;;  %v581_v37 = vpop.f32.mrf.mxu1 }
  0xe7   :  { %v231_v41 = vadd.f32 %v216_v38, %v215_v35  ;;  %v218_v46 = vmul.f32 %v579_v36, %v579_v36  ;;  %v223_v4 = vmul.f32 %v581_v37, %v581_v37 }
  0xe8   :  { %v587_v40 = vpop.f32.mrf.mxu0  ;;  %v594_v45 = vpop.f32.mrf.mxu1 }
  0xe9   :  { %v195_v42 = vadd.f32 %v194_v39, %v587_v40  ;;  %v217_v43 = vmul.f32 %v587_v40, %v587_v40  ;;  %v226_v13 = vmul.f32 %v594_v45, %v594_v45 }
  0xea   :  { %v592_v44 = vpop.f32.mrf.mxu0  ;;  %v606_v54 = vpop.f32.mrf.mxu1 }
  0xeb   :  { %v232_v47 = vadd.f32 %v231_v41, %v217_v43  ;;  %v196_v48 = vadd.f32 %v579_v36, %v195_v42  ;;  %v220_v55 = vmul.f32 %v592_v44, %v592_v44  ;;  %v225_v10 = vmul.f32 %v606_v54, %v606_v54 }
  0xec   :  { %v599_v49 = vpop.f32.mrf.mxu0  ;;  %v616_v62 = vpop.f32.mrf.mxu1 }
  0xed   :  { %v197_v50 = vadd.f32 %v196_v48, %v599_v49  ;;  %v219_v51 = vmul.f32 %v599_v49, %v599_v49  ;;  %v233_v52 = vadd.f32 %v232_v47, %v218_v46  ;;  %v228_v20 = vmul.f32 %v616_v62, %v616_v62 }
  0xee   :  { %v604_v53 = vpop.f32.mrf.mxu0  ;;  %v624_v5 = vpop.f32.mrf.mxu1 }
  0xef   :  { %v234_v56 = vadd.f32 %v233_v52, %v219_v51  ;;  %v198_v57 = vadd.f32 %v592_v44, %v197_v50  ;;  %v222_v63 = vmul.f32 %v604_v53, %v604_v53  ;;  %v227_v17 = vmul.f32 %v624_v5, %v624_v5 }
  0xf0   :  { %v611_v58 = vpop.f32.mrf.mxu0  ;;  %v632_v12 = vpop.f32.mrf.mxu1 }
  0xf1   :  { %v199_v59 = vadd.f32 %v198_v57, %v611_v58  ;;  %v221_v60 = vmul.f32 %v611_v58, %v611_v58  ;;  %v235_v61 = vadd.f32 %v234_v56, %v220_v55  ;;  %v230_v26 = vmul.f32 %v632_v12, %v632_v12 }
  0xf2   :  { %v185_v19 = vpop.f32.mrf.mxu1 }
  0xf3   :  { %v200_v0 = vadd.f32 %v604_v53, %v199_v59  ;;  %v236_v1 = vadd.f32 %v235_v61, %v221_v60  ;;  %v229_v24 = vmul.f32 %v185_v19, %v185_v19  ;;  %v265_v60 = vlaneseq }
  0xf5   :  { %v237_v2 = vadd.f32 %v236_v1, %v222_v63  ;;  %v201_v3 = vadd.f32 %v200_v0, %v581_v37  ;;  %v266_v61 = vshrl.u32 %v265_v60, 7  ;;  %v259_v63 = vld [vmem:[%s717_s2] sm:$0x1] }
  0xf7   :  { %v238_v7 = vadd.f32 %v237_v2, %v223_v4  ;;  %v202_v8 = vadd.f32 %v575_v34, %v201_v3  ;;  %v267_v0 = vsub.s32 0, %v266_v61  ;;  %v261_v3 = vld [vmem:[%s718_s3] sm:$0x1] }
  0xf9   :  { %v203_v9 = vadd.f32 %v202_v8, %v606_v54  ;;  %v239_v11 = vadd.f32 %v238_v7, %v224_v6 }
  0xfb   :  { %v240_v14 = vadd.f32 %v239_v11, %v225_v10  ;;  %v204_v15 = vadd.f32 %v594_v45, %v203_v9 }
  0xfd   :  { %v205_v16 = vadd.f32 %v204_v15, %v624_v5  ;;  %v241_v18 = vadd.f32 %v240_v14, %v226_v13 }
  0xff   :  { %v242_v21 = vadd.f32 %v241_v18, %v227_v17  ;;  %v206_v22 = vadd.f32 %v616_v62, %v205_v16 }
 0x101   :  { %v207_v23 = vadd.f32 %v206_v22, %v185_v19  ;;  %v243_v25 = vadd.f32 %v242_v21, %v228_v20 }
 0x103   :  { %v208_v27 = vadd.f32 %v632_v12, %v207_v23  ;;  %v244_v28 = vadd.f32 %v243_v25, %v229_v24 }
 0x105   :  { %v209_v29 = vrot.slane %v208_v27, 4  ;;  %v245_v30 = vadd.f32 %v244_v28, %v230_v26 }
 0x107   :  { %v210_v31 = vadd.f32 %v209_v29, %v208_v27  ;;  %v246_v35 = vrot.slane %v245_v30, 4 }
 0x109   :  { %v211_v38 = vrot.slane %v210_v31, 2  ;;  %v247_v39 = vadd.f32 %v246_v35, %v245_v30 }
 0x10b   :  { %v212_v41 = vadd.f32 %v211_v38, %v210_v31  ;;  %v248_v42 = vrot.slane %v247_v39, 2 }
 0x10d   :  { %v213_v43 = vrot.slane %v212_v41, 1  ;;  %v249_v46 = vadd.f32 %v248_v42, %v247_v39 }
 0x10f   :  { %v214_v47 = vadd.f32 %v213_v43, %v212_v41  ;;  %v250_v48 = vrot.slane %v249_v46, 1 }
 0x111   :  { %v251_v50 = vadd.f32 %v250_v48, %v249_v46  ;;  %v252_v51 = vmul.f32 0.0078125, %v214_v47 }
 0x113   :  { %v253_v52 = vmul.f32 0.0078125, %v251_v50  ;;  %v254_v55 = vmul.f32 %v252_v51, %v252_v51 }
 0x115   :  { %v255_v56 = vsub.f32 %v253_v52, %v254_v55 }
 0x117   :  { %v256_v57 = vmax.f32 %v255_v56, 0.0 }
 0x119   :  { %v257_v59 = vadd.f32 1e-05, %v256_v57 }
 0x11b   :  { %448 = vrsqrt.f32 %v257_v59 }
 0x128   :  { %v449_v1 = vpop.eup %448 }
 0x129   :  { %v260_v2 = vmul.f32 %v449_v1, %v259_v63 }
 0x12b   :  { %v262_v4 = vmul.f32 %v260_v2, %v252_v51  ;;  %v268_v6 = vrot.slane %v260_v2, %v267_v0 }
 0x12d   :  { %v263_v7 = vsub.f32 %v261_v3, %v262_v4  ;;  %v270_v8 = vmul.f32 %v268_v6, %v573_v33  ;;  %v271_v9 = vmul.f32 %v571_v32, %v268_v6  ;;  %v272_v10 = vmul.f32 %v268_v6, %v587_v40 }
 0x12e   :  { %v273_v11 = vmul.f32 %v579_v36, %v268_v6  ;;  %v274_v13 = vmul.f32 %v268_v6, %v599_v49  ;;  %v275_v14 = vmul.f32 %v592_v44, %v268_v6  ;;  %v276_v15 = vmul.f32 %v268_v6, %v611_v58 }
 0x12f   :  { %v277_v16 = vmul.f32 %v604_v53, %v268_v6  ;;  %v278_v17 = vmul.f32 %v268_v6, %v581_v37  ;;  %v279_v18 = vmul.f32 %v575_v34, %v268_v6  ;;  %v280_v33 = vmul.f32 %v268_v6, %v606_v54 }
 0x130   :  { %v281_v32 = vmul.f32 %v594_v45, %v268_v6  ;;  %v290_v20 = vrot.slane %v263_v7, %v267_v0  ;;  %v282_v40 = vmul.f32 %v268_v6, %v624_v5  ;;  %v283_v36 = vmul.f32 %v616_v62, %v268_v6 }
 0x131   :  { %v284_v49 = vmul.f32 %v268_v6, %v185_v19  ;;  %v285_v44 = vmul.f32 %v632_v12, %v268_v6 }
 0x132   :  { %v292_v21 = vadd.f32 %v290_v20, %v270_v8  ;;  %v293_v58 = vadd.f32 %v290_v20, %v271_v9  ;;  %v294_v22 = vadd.f32 %v290_v20, %v272_v10  ;;  %v295_v53 = vadd.f32 %v290_v20, %v273_v11 }
 0x133   :  { %v296_v23 = vadd.f32 %v290_v20, %v274_v13  ;;  %v297_v37 = vadd.f32 %v290_v20, %v275_v14  ;;  %v298_v24 = vadd.f32 %v290_v20, %v276_v15  ;;  %v299_v34 = vadd.f32 %v290_v20, %v277_v16 }
 0x134   :  { %v300_v25 = vadd.f32 %v290_v20, %v278_v17  ;;  %v301_v54 = vadd.f32 %v290_v20, %v279_v18  ;;  %v302_v26 = vadd.f32 %v290_v20, %v280_v33  ;;  %v303_v45 = vadd.f32 %v290_v20, %v281_v32  ;;  %308 = vst [vmem:[%s719_s4] sm:$0xff] %v292_v21 }
 0x135   :  { %309 = vst [vmem:[%s719_s4 + $0x8] sm:$0xff] %v293_v58  ;;  %310 = vst [vmem:[%s719_s4 + $0x10] sm:$0xff] %v294_v22  ;;  %v304_v62 = vadd.f32 %v290_v20, %v282_v40  ;;  %v305_v5 = vadd.f32 %v290_v20, %v283_v36  ;;  %v306_v12 = vadd.f32 %v290_v20, %v284_v49 }
 0x136   :  { %311 = vst [vmem:[%s719_s4 + $0x18] sm:$0xff] %v295_v53  ;;  %v307_v19 = vadd.f32 %v290_v20, %v285_v44  ;;  %312 = vst [vmem:[%s719_s4 + $0x20] sm:$0xff] %v296_v23 }
 0x137   :  { %313 = vst [vmem:[%s719_s4 + $0x28] sm:$0xff] %v297_v37  ;;  %314 = vst [vmem:[%s719_s4 + $0x30] sm:$0xff] %v298_v24 }
 0x138   :  { %315 = vst [vmem:[%s719_s4 + $0x38] sm:$0xff] %v299_v34  ;;  %316 = vst [vmem:[%s719_s4 + $0x40] sm:$0xff] %v300_v25 }
 0x139   :  { %317 = vst [vmem:[%s719_s4 + $0x48] sm:$0xff] %v301_v54  ;;  %318 = vst [vmem:[%s719_s4 + $0x50] sm:$0xff] %v302_v26 }
 0x13a   :  { %319 = vst [vmem:[%s719_s4 + $0x58] sm:$0xff] %v303_v45  ;;  %320 = vst [vmem:[%s719_s4 + $0x60] sm:$0xff] %v304_v62 }
 0x13b   :  { %321 = vst [vmem:[%s719_s4 + $0x68] sm:$0xff] %v305_v5  ;;  %322 = vst [vmem:[%s719_s4 + $0x70] sm:$0xff] %v306_v12 }
 0x13c   :  { %323 = vst [vmem:[%s719_s4 + $0x78] sm:$0xff] %v307_v19 }

// kernel: custom_network_q4_forward.48
= control target key start
LH: loop header
LB: loop body
LE: loop exit
PB: predicated region body
PF: predicated region fallthrough
CT: control target
= control target key end

     0   :  { %s819_s1 = inlined_call_operand.vmem [shape: f32[128,128], index: 1, kind: input, shape index: {}]   ;;  %s820_s0 = inlined_call_operand.vmem [shape: f32[128,128], index: 0, kind: input, shape index: {}]   ;;  %s821_s2 = inlined_call_operand.vmem [shape: f32[1,128], index: 2, kind: input, shape index: {}]   ;;  %s822_s3 = inlined_call_operand.vmem [shape: f32[1,128], index: 3, kind: input, shape index: {}]   ;;  %s823_s4 = inlined_call_operand.vmem [shape: f32[128,128], index: 4, kind: input, shape index: {}]   ;;  %s824_s5 = inlined_call_operand.vmem [shape: f32[128,128], index: 5, kind: output, shape index: {}]  }
   0x1   :  { %v51_v0 = vld [vmem:[%s819_s1 + $0x78] sm:$0xff]  ;;  %v50_v1 = vld [vmem:[%s819_s1 + $0x70] sm:$0xff]  ;;  %v49_v2 = vld [vmem:[%s819_s1 + $0x68] sm:$0xff] }
   0x2   :  { %411 = vmatprep.subr.mxu0 %v51_v0  ;;  %467 = vmatprep.subr.mxu1 %v51_v0  ;;  %v48_v3 = vld [vmem:[%s819_s1 + $0x60] sm:$0xff]  ;;  %v47_v4 = vld [vmem:[%s819_s1 + $0x58] sm:$0xff]  ;;  %v46_v5 = vld [vmem:[%s819_s1 + $0x50] sm:$0xff] }
   0x3   :  { %412 = vmatpush3.msra.mxu0 %v51_v0  ;;  %483 = vmatpush3.msra.mxu1 %v51_v0  ;;  %v45_v6 = vld [vmem:[%s819_s1 + $0x48] sm:$0xff]  ;;  %v44_v7 = vld [vmem:[%s819_s1 + $0x40] sm:$0xff]  ;;  %v43_v8 = vld [vmem:[%s819_s1 + $0x38] sm:$0xff] }
   0x4   :  { %413 = vmatprep.subr.mxu0 %v50_v1  ;;  %468 = vmatprep.subr.mxu1 %v50_v1  ;;  %v42_v9 = vld [vmem:[%s819_s1 + $0x30] sm:$0xff]  ;;  %v20_v10 = vld [vmem:[%s820_s0] sm:$0xff]  ;;  %v41_v11 = vld [vmem:[%s819_s1 + $0x28] sm:$0xff] }
   0x5   :  { %414 = vmatpush3.msra.mxu0 %v50_v1  ;;  %484 = vmatpush3.msra.mxu1 %v50_v1  ;;  %v40_v12 = vld [vmem:[%s819_s1 + $0x20] sm:$0xff]  ;;  %v39_v13 = vld [vmem:[%s819_s1 + $0x18] sm:$0xff]  ;;  %v38_v14 = vld [vmem:[%s819_s1 + $0x10] sm:$0xff] }
   0x6   :  { %415 = vmatprep.subr.mxu0 %v49_v2  ;;  %469 = vmatprep.subr.mxu1 %v49_v2  ;;  %v37_v15 = vld [vmem:[%s819_s1 + $0x8] sm:$0xff]  ;;  %v36_v16 = vld [vmem:[%s819_s1] sm:$0xff]  ;;  %v22_v18 = vld [vmem:[%s820_s0 + $0x10] sm:$0xff] }
   0x7   :  { %416 = vmatpush3.msra.mxu0 %v49_v2  ;;  %485 = vmatpush3.msra.mxu1 %v49_v2  ;;  %v21_v17 = vld [vmem:[%s820_s0 + $0x8] sm:$0xff]  ;;  %v28_v19 = vld [vmem:[%s820_s0 + $0x40] sm:$0xff]  ;;  %v30_v21 = vld [vmem:[%s820_s0 + $0x50] sm:$0xff] }
   0x8   :  { %417 = vmatprep.subr.mxu0 %v48_v3  ;;  %470 = vmatprep.subr.mxu1 %v48_v3  ;;  %v29_v20 = vld [vmem:[%s820_s0 + $0x48] sm:$0xff]  ;;  %v23_v22 = vld [vmem:[%s820_s0 + $0x18] sm:$0xff]  ;;  %v24_v23 = vld [vmem:[%s820_s0 + $0x20] sm:$0xff] }
   0x9   :  { %418 = vmatpush3.msra.mxu0 %v48_v3  ;;  %486 = vmatpush3.msra.mxu1 %v48_v3  ;;  %v31_v24 = vld [vmem:[%s820_s0 + $0x58] sm:$0xff]  ;;  %v32_v25 = vld [vmem:[%s820_s0 + $0x60] sm:$0xff]  ;;  %v25_v26 = vld [vmem:[%s820_s0 + $0x28] sm:$0xff] }
   0xa   :  { %419 = vmatprep.subr.mxu0 %v47_v4  ;;  %471 = vmatprep.subr.mxu1 %v47_v4  ;;  %v26_v27 = vld [vmem:[%s820_s0 + $0x30] sm:$0xff]  ;;  %v33_v28 = vld [vmem:[%s820_s0 + $0x68] sm:$0xff]  ;;  %v27_v30 = vld [vmem:[%s820_s0 + $0x38] sm:$0xff] }
   0xb   :  { %420 = vmatpush3.msra.mxu0 %v47_v4  ;;  %487 = vmatpush3.msra.mxu1 %v47_v4  ;;  %v34_v29 = vld [vmem:[%s820_s0 + $0x70] sm:$0xff]  ;;  %v35_v31 = vld [vmem:[%s820_s0 + $0x78] sm:$0xff] }
   0xc   :  { %421 = vmatprep.subr.mxu0 %v46_v5  ;;  %472 = vmatprep.subr.mxu1 %v46_v5 }
   0xd   :  { %422 = vmatpush3.msra.mxu0 %v46_v5  ;;  %488 = vmatpush3.msra.mxu1 %v46_v5 }
   0xe   :  { %423 = vmatprep.subr.mxu0 %v45_v6  ;;  %473 = vmatprep.subr.mxu1 %v45_v6 }
   0xf   :  { %424 = vmatpush3.msra.mxu0 %v45_v6  ;;  %489 = vmatpush3.msra.mxu1 %v45_v6 }
  0x10   :  { %425 = vmatprep.subr.mxu0 %v44_v7  ;;  %474 = vmatprep.subr.mxu1 %v44_v7 }
  0x11   :  { %426 = vmatpush3.msra.mxu0 %v44_v7  ;;  %490 = vmatpush3.msra.mxu1 %v44_v7 }
  0x12   :  { %427 = vmatprep.subr.mxu0 %v43_v8  ;;  %475 = vmatprep.subr.mxu1 %v43_v8 }
  0x13   :  { %428 = vmatpush3.msra.mxu0 %v43_v8  ;;  %491 = vmatpush3.msra.mxu1 %v43_v8 }
  0x14   :  { %429 = vmatprep.subr.mxu0 %v42_v9  ;;  %443 = vmatprep.mubr.f32.mxu0 %v20_v10 }
  0x15   :  { %430 = vmatpush3.msra.mxu0 %v42_v9  ;;  %476 = vmatprep.subr.mxu1 %v42_v9 }
  0x16   :  { %431 = vmatprep.subr.mxu0 %v41_v11  ;;  %492 = vmatpush3.msra.mxu1 %v42_v9 }
  0x17   :  { %432 = vmatpush3.msra.mxu0 %v41_v11  ;;  %477 = vmatprep.subr.mxu1 %v41_v11 }
  0x18   :  { %433 = vmatprep.subr.mxu0 %v40_v12  ;;  %493 = vmatpush3.msra.mxu1 %v41_v11 }
  0x19   :  { %434 = vmatpush3.msra.mxu0 %v40_v12  ;;  %478 = vmatprep.subr.mxu1 %v40_v12 }
  0x1a   :  { %435 = vmatprep.subr.mxu0 %v39_v13  ;;  %494 = vmatpush3.msra.mxu1 %v40_v12 }
  0x1b   :  { %436 = vmatpush3.msra.mxu0 %v39_v13  ;;  %479 = vmatprep.subr.mxu1 %v39_v13 }
  0x1c   :  { %437 = vmatprep.subr.mxu0 %v38_v14  ;;  %495 = vmatpush3.msra.mxu1 %v39_v13 }
  0x1d   :  { %438 = vmatpush3.msra.mxu0 %v38_v14  ;;  %480 = vmatprep.subr.mxu1 %v38_v14 }
  0x1e   :  { %439 = vmatprep.subr.mxu0 %v37_v15  ;;  %496 = vmatpush3.msra.mxu1 %v38_v14 }
  0x1f   :  { %440 = vmatpush3.msra.mxu0 %v37_v15  ;;  %481 = vmatprep.subr.mxu1 %v37_v15 }
  0x20   :  { %441 = vmatprep.subr.mxu0 %v36_v16  ;;  %497 = vmatpush3.msra.mxu1 %v37_v15 }
  0x21   :  { %442 = vmatpush3.msra.mxu0 %v36_v16  ;;  %482 = vmatprep.subr.mxu1 %v36_v16 }
  0x22   :  { %444 = vmatmul.mubr.f32.vlgmr.msra.gmra.mxu0 %v21_v17  ;;  %498 = vmatpush3.msra.mxu1 %v36_v16 }
  0x23   :  { %446 = vmatprep.mubr.f32.mxu0 %v22_v18  ;;  %455 = vmatprep.mubr.f32.mxu1 %v28_v19 }
  0x24   :  { %456 = vmatmul.mubr.f32.vlgmr.msra.gmra.mxu1 %v29_v20 }
  0x25   :  { %458 = vmatprep.mubr.f32.mxu1 %v30_v21 }
  0x26   :  { %447 = vmatmul.mubr.f32.gmra.mxu0 %v23_v22 }
  0x27   :  { %449 = vmatprep.mubr.f32.mxu0 %v24_v23 }
  0x28   :  { %459 = vmatmul.mubr.f32.gmra.mxu1 %v31_v24 }
  0x29   :  { %461 = vmatprep.mubr.f32.mxu1 %v32_v25 }
  0x2a   :  { %450 = vmatmul.mubr.f32.gmra.mxu0 %v25_v26 }
  0x2b   :  { %452 = vmatprep.mubr.f32.mxu0 %v26_v27 }
  0x2c   :  { %462 = vmatmul.mubr.f32.gmra.mxu1 %v33_v28 }
  0x2d   :  { %464 = vmatprep.mubr.f32.mxu1 %v34_v29 }
  0x2e   :  { %453 = vmatmul.mubr.f32.gmra.mxu0 %v27_v30 }
  0x30   :  { %465 = vmatmul.mubr.f32.gmra.mxu1 %v35_v31 }
  0xe2   :  { %v627_v32 = vpop.f32.mrf.mxu0 }
  0xe3   :  { %v219_v38 = vmul.f32 %v627_v32, %v627_v32 }
  0xe4   :  { %v629_v33 = vpop.f32.mrf.mxu0  ;;  %v631_v34 = vpop.f32.mrf.mxu1 }
  0xe5   :  { %v218_v35 = vmul.f32 %v629_v33, %v629_v33  ;;  %v197_v39 = vadd.f32 %v627_v32, %v629_v33  ;;  %v227_v6 = vmul.f32 %v631_v34, %v631_v34 }
  0xe6   :  { %v635_v36 = vpop.f32.mrf.mxu0  ;;  %v637_v37 = vpop.f32.mrf.mxu1 }
  0xe7   :  { %v234_v41 = vadd.f32 %v219_v38, %v218_v35  ;;  %v221_v46 = vmul.f32 %v635_v36, %v635_v36  ;;  %v226_v4 = vmul.f32 %v637_v37, %v637_v37 }
  0xe8   :  { %v643_v40 = vpop.f32.mrf.mxu0  ;;  %v650_v45 = vpop.f32.mrf.mxu1 }
  0xe9   :  { %v198_v42 = vadd.f32 %v197_v39, %v643_v40  ;;  %v220_v43 = vmul.f32 %v643_v40, %v643_v40  ;;  %v229_v13 = vmul.f32 %v650_v45, %v650_v45 }
  0xea   :  { %v648_v44 = vpop.f32.mrf.mxu0  ;;  %v662_v54 = vpop.f32.mrf.mxu1 }
  0xeb   :  { %v235_v47 = vadd.f32 %v234_v41, %v220_v43  ;;  %v199_v48 = vadd.f32 %v635_v36, %v198_v42  ;;  %v223_v55 = vmul.f32 %v648_v44, %v648_v44  ;;  %v228_v10 = vmul.f32 %v662_v54, %v662_v54 }
  0xec   :  { %v655_v49 = vpop.f32.mrf.mxu0  ;;  %v672_v62 = vpop.f32.mrf.mxu1 }
  0xed   :  { %v200_v50 = vadd.f32 %v199_v48, %v655_v49  ;;  %v222_v51 = vmul.f32 %v655_v49, %v655_v49  ;;  %v236_v52 = vadd.f32 %v235_v47, %v221_v46  ;;  %v231_v20 = vmul.f32 %v672_v62, %v672_v62 }
  0xee   :  { %v660_v53 = vpop.f32.mrf.mxu0  ;;  %v680_v5 = vpop.f32.mrf.mxu1 }
  0xef   :  { %v237_v56 = vadd.f32 %v236_v52, %v222_v51  ;;  %v201_v57 = vadd.f32 %v648_v44, %v200_v50  ;;  %v225_v63 = vmul.f32 %v660_v53, %v660_v53  ;;  %v230_v17 = vmul.f32 %v680_v5, %v680_v5 }
  0xf0   :  { %v667_v58 = vpop.f32.mrf.mxu0  ;;  %v688_v12 = vpop.f32.mrf.mxu1 }
  0xf1   :  { %v202_v59 = vadd.f32 %v201_v57, %v667_v58  ;;  %v224_v60 = vmul.f32 %v667_v58, %v667_v58  ;;  %v238_v61 = vadd.f32 %v237_v56, %v223_v55  ;;  %v233_v26 = vmul.f32 %v688_v12, %v688_v12 }
  0xf2   :  { %v188_v19 = vpop.f32.mrf.mxu1 }
  0xf3   :  { %v203_v0 = vadd.f32 %v660_v53, %v202_v59  ;;  %v239_v1 = vadd.f32 %v238_v61, %v224_v60  ;;  %v232_v24 = vmul.f32 %v188_v19, %v188_v19  ;;  %v268_v60 = vlaneseq }
  0xf5   :  { %v240_v2 = vadd.f32 %v239_v1, %v225_v63  ;;  %v204_v3 = vadd.f32 %v203_v0, %v637_v37  ;;  %v269_v61 = vshrl.u32 %v268_v60, 7  ;;  %v262_v63 = vld [vmem:[%s821_s2] sm:$0x1] }
  0xf7   :  { %v241_v7 = vadd.f32 %v240_v2, %v226_v4  ;;  %v205_v8 = vadd.f32 %v631_v34, %v204_v3  ;;  %v270_v0 = vsub.s32 0, %v269_v61  ;;  %v264_v3 = vld [vmem:[%s822_s3] sm:$0x1] }
  0xf9   :  { %v206_v9 = vadd.f32 %v205_v8, %v662_v54  ;;  %v242_v11 = vadd.f32 %v241_v7, %v227_v6 }
  0xfb   :  { %v243_v14 = vadd.f32 %v242_v11, %v228_v10  ;;  %v207_v15 = vadd.f32 %v650_v45, %v206_v9 }
  0xfd   :  { %v208_v16 = vadd.f32 %v207_v15, %v680_v5  ;;  %v244_v18 = vadd.f32 %v243_v14, %v229_v13 }
  0xff   :  { %v245_v21 = vadd.f32 %v244_v18, %v230_v17  ;;  %v209_v22 = vadd.f32 %v672_v62, %v208_v16 }
 0x101   :  { %v210_v23 = vadd.f32 %v209_v22, %v188_v19  ;;  %v246_v25 = vadd.f32 %v245_v21, %v231_v20 }
 0x103   :  { %v211_v27 = vadd.f32 %v688_v12, %v210_v23  ;;  %v247_v28 = vadd.f32 %v246_v25, %v232_v24  ;;  %v315_v23 = vld [vmem:[%s823_s4 + $0x20] sm:$0xff]  ;;  %v316_v24 = vld [vmem:[%s823_s4 + $0x28] sm:$0xff]  ;;  %v317_v25 = vld [vmem:[%s823_s4 + $0x30] sm:$0xff] }
 0x105   :  { %v212_v29 = vrot.slane %v211_v27, 4  ;;  %v248_v30 = vadd.f32 %v247_v28, %v233_v26 }
 0x107   :  { %v213_v31 = vadd.f32 %v212_v29, %v211_v27  ;;  %v249_v35 = vrot.slane %v248_v30, 4 }
 0x109   :  { %v214_v38 = vrot.slane %v213_v31, 2  ;;  %v250_v39 = vadd.f32 %v249_v35, %v248_v30  ;;  %v318_v30 = vld [vmem:[%s823_s4 + $0x38] sm:$0xff]  ;;  %v320_v35 = vld [vmem:[%s823_s4 + $0x48] sm:$0xff] }
 0x10b   :  { %v215_v41 = vadd.f32 %v214_v38, %v213_v31  ;;  %v251_v42 = vrot.slane %v250_v39, 2  ;;  %v319_v31 = vld [vmem:[%s823_s4 + $0x40] sm:$0xff] }
 0x10d   :  { %v216_v43 = vrot.slane %v215_v41, 1  ;;  %v252_v46 = vadd.f32 %v251_v42, %v250_v39 }
 0x10f   :  { %v217_v47 = vadd.f32 %v216_v43, %v215_v41  ;;  %v253_v48 = vrot.slane %v252_v46, 1  ;;  %v321_v43 = vld [vmem:[%s823_s4 + $0x50] sm:$0xff] }
 0x111   :  { %v254_v50 = vadd.f32 %v253_v48, %v252_v46  ;;  %v255_v51 = vmul.f32 0.0078125, %v217_v47  ;;  %v322_v46 = vld [vmem:[%s823_s4 + $0x58] sm:$0xff]  ;;  %v323_v47 = vld [vmem:[%s823_s4 + $0x60] sm:$0xff]  ;;  %v324_v48 = vld [vmem:[%s823_s4 + $0x68] sm:$0xff] }
 0x113   :  { %v256_v52 = vmul.f32 0.0078125, %v254_v50  ;;  %v257_v55 = vmul.f32 %v255_v51, %v255_v51  ;;  %v325_v50 = vld [vmem:[%s823_s4 + $0x70] sm:$0xff] }
 0x115   :  { %v258_v56 = vsub.f32 %v256_v52, %v257_v55 }
 0x117   :  { %v259_v57 = vmax.f32 %v258_v56, 0.0 }
 0x119   :  { %v260_v59 = vadd.f32 1e-05, %v259_v57 }
 0x11b   :  { %499 = vrsqrt.f32 %v260_v59 }
 0x128   :  { %v500_v1 = vpop.eup %499 }
 0x129   :  { %v263_v2 = vmul.f32 %v500_v1, %v262_v63 }
 0x12b   :  { %v265_v4 = vmul.f32 %v263_v2, %v255_v51  ;;  %v271_v6 = vrot.slane %v263_v2, %v270_v0  ;;  %v326_v51 = vld [vmem:[%s823_s4 + $0x78] sm:$0xff] }
 0x12d   :  { %v266_v7 = vsub.f32 %v264_v3, %v265_v4  ;;  %v273_v8 = vmul.f32 %v271_v6, %v629_v33  ;;  %v274_v9 = vmul.f32 %v627_v32, %v271_v6  ;;  %v275_v10 = vmul.f32 %v271_v6, %v643_v40 }
 0x12e   :  { %v276_v11 = vmul.f32 %v635_v36, %v271_v6  ;;  %v277_v13 = vmul.f32 %v271_v6, %v655_v49  ;;  %v278_v14 = vmul.f32 %v648_v44, %v271_v6  ;;  %v279_v15 = vmul.f32 %v271_v6, %v667_v58 }
 0x12f   :  { %v280_v16 = vmul.f32 %v660_v53, %v271_v6  ;;  %v281_v17 = vmul.f32 %v271_v6, %v637_v37  ;;  %v282_v18 = vmul.f32 %v631_v34, %v271_v6  ;;  %v283_v33 = vmul.f32 %v271_v6, %v662_v54  ;;  %v311_v53 = vld [vmem:[%s823_s4] sm:$0xff]  ;;  %v313_v54 = vld [vmem:[%s823_s4 + $0x10] sm:$0xff] }
 0x130   :  { %v284_v32 = vmul.f32 %v650_v45, %v271_v6  ;;  %v293_v20 = vrot.slane %v266_v7, %v270_v0  ;;  %v285_v40 = vmul.f32 %v271_v6, %v680_v5  ;;  %v286_v36 = vmul.f32 %v672_v62, %v271_v6  ;;  %v312_v45 = vld [vmem:[%s823_s4 + $0x8] sm:$0xff]  ;;  %v314_v62 = vld [vmem:[%s823_s4 + $0x18] sm:$0xff] }
 0x131   :  { %v287_v49 = vmul.f32 %v271_v6, %v188_v19  ;;  %v288_v44 = vmul.f32 %v688_v12, %v271_v6 }
 0x132   :  { %v295_v58 = vadd.f32 %v293_v20, %v273_v8  ;;  %v296_v37 = vadd.f32 %v293_v20, %v274_v9  ;;  %v297_v21 = vadd.f32 %v293_v20, %v275_v10  ;;  %v298_v34 = vadd.f32 %v293_v20, %v276_v11 }
 0x133   :  { %v299_v5 = vadd.f32 %v293_v20, %v277_v13  ;;  %v300_v12 = vadd.f32 %v293_v20, %v278_v14  ;;  %v301_v19 = vadd.f32 %v293_v20, %v279_v15  ;;  %v302_v22 = vadd.f32 %v293_v20, %v280_v16 }
 0x134   :  { %v303_v26 = vadd.f32 %v293_v20, %v281_v17  ;;  %v304_v27 = vadd.f32 %v293_v20, %v282_v18  ;;  %v305_v28 = vadd.f32 %v293_v20, %v283_v33  ;;  %v306_v29 = vadd.f32 %v293_v20, %v284_v32 }
 0x135   :  { %v307_v38 = vadd.f32 %v293_v20, %v285_v40  ;;  %v308_v39 = vadd.f32 %v293_v20, %v286_v36  ;;  %v309_v41 = vadd.f32 %v293_v20, %v287_v49  ;;  %v310_v42 = vadd.f32 %v293_v20, %v288_v44 }
 0x136   :  { %v327_v52 = vadd.f32 %v311_v53, %v295_v58  ;;  %v328_v55 = vadd.f32 %v312_v45, %v296_v37  ;;  %v329_v56 = vadd.f32 %v313_v54, %v297_v21  ;;  %v330_v57 = vadd.f32 %v314_v62, %v298_v34 }
 0x137   :  { %v331_v59 = vadd.f32 %v315_v23, %v299_v5  ;;  %v332_v60 = vadd.f32 %v316_v24, %v300_v12  ;;  %v333_v61 = vadd.f32 %v317_v25, %v301_v19  ;;  %v334_v63 = vadd.f32 %v318_v30, %v302_v22 }
 0x138   :  { %v335_v0 = vadd.f32 %v319_v31, %v303_v26  ;;  %v336_v1 = vadd.f32 %v320_v35, %v304_v27  ;;  %v337_v2 = vadd.f32 %v321_v43, %v305_v28  ;;  %v338_v3 = vadd.f32 %v322_v46, %v306_v29 }
 0x139   :  { %v339_v4 = vadd.f32 %v323_v47, %v307_v38  ;;  %v340_v6 = vadd.f32 %v324_v48, %v308_v39  ;;  %v341_v7 = vadd.f32 %v325_v50, %v309_v41  ;;  %v342_v8 = vadd.f32 %v326_v51, %v310_v42 }
 0x13a   :  { %v343_v9 = vmax.f32 %v327_v52, 0.0  ;;  %v344_v10 = vmax.f32 %v328_v55, 0.0  ;;  %v345_v11 = vmax.f32 %v329_v56, 0.0  ;;  %v346_v13 = vmax.f32 %v330_v57, 0.0 }
 0x13b   :  { %v347_v14 = vmax.f32 %v331_v59, 0.0  ;;  %v348_v15 = vmax.f32 %v332_v60, 0.0  ;;  %v349_v16 = vmax.f32 %v333_v61, 0.0  ;;  %v350_v17 = vmax.f32 %v334_v63, 0.0 }
 0x13c   :  { %v351_v18 = vmax.f32 %v335_v0, 0.0  ;;  %v352_v33 = vmax.f32 %v336_v1, 0.0  ;;  %v353_v32 = vmax.f32 %v337_v2, 0.0  ;;  %v354_v20 = vmax.f32 %v338_v3, 0.0  ;;  %359 = vst [vmem:[%s824_s5] sm:$0xff] %v343_v9  ;;  %360 = vst [vmem:[%s824_s5 + $0x8] sm:$0xff] %v344_v10 }
 0x13d   :  { %361 = vst [vmem:[%s824_s5 + $0x10] sm:$0xff] %v345_v11  ;;  %362 = vst [vmem:[%s824_s5 + $0x18] sm:$0xff] %v346_v13  ;;  %v355_v40 = vmax.f32 %v339_v4, 0.0  ;;  %v356_v36 = vmax.f32 %v340_v6, 0.0  ;;  %v357_v49 = vmax.f32 %v341_v7, 0.0  ;;  %v358_v44 = vmax.f32 %v342_v8, 0.0 }
 0x13e   :  { %363 = vst [vmem:[%s824_s5 + $0x20] sm:$0xff] %v347_v14  ;;  %364 = vst [vmem:[%s824_s5 + $0x28] sm:$0xff] %v348_v15 }
 0x13f   :  { %365 = vst [vmem:[%s824_s5 + $0x30] sm:$0xff] %v349_v16  ;;  %366 = vst [vmem:[%s824_s5 + $0x38] sm:$0xff] %v350_v17 }
 0x140   :  { %367 = vst [vmem:[%s824_s5 + $0x40] sm:$0xff] %v351_v18  ;;  %368 = vst [vmem:[%s824_s5 + $0x48] sm:$0xff] %v352_v33 }
 0x141   :  { %369 = vst [vmem:[%s824_s5 + $0x50] sm:$0xff] %v353_v32  ;;  %370 = vst [vmem:[%s824_s5 + $0x58] sm:$0xff] %v354_v20 }
 0x142   :  { %371 = vst [vmem:[%s824_s5 + $0x60] sm:$0xff] %v355_v40  ;;  %372 = vst [vmem:[%s824_s5 + $0x68] sm:$0xff] %v356_v36 }
 0x143   :  { %373 = vst [vmem:[%s824_s5 + $0x70] sm:$0xff] %v357_v49  ;;  %374 = vst [vmem:[%s824_s5 + $0x78] sm:$0xff] %v358_v44 }

// kernel: custom_network_q4_forward.49
= control target key start
LH: loop header
LB: loop body
LE: loop exit
PB: predicated region body
PF: predicated region fallthrough
CT: control target
= control target key end

     0   :  { %v157_v52 = vlaneseq  ;;  %s383_s1 = inlined_call_operand.vmem [shape: f32[128,128], index: 1, kind: input, shape index: {}]   ;;  %s384_s0 = inlined_call_operand.vmem [shape: f32[32,128], index: 0, kind: input, shape index: {}]   ;;  %s385_s2 = inlined_call_operand.vmem [shape: f32[1,128], index: 2, kind: input, shape index: {}]   ;;  %s386_s3 = inlined_call_operand.vmem [shape: f32[1,128], index: 3, kind: input, shape index: {}]   ;;  %s387_s4 = inlined_call_operand.vmem [shape: f32[32,128], index: 4, kind: output, shape index: {}]  }
   0x1   :  { %v36_v0 = vld [vmem:[%s383_s1 + $0x78] sm:$0xff]  ;;  %v35_v1 = vld [vmem:[%s383_s1 + $0x70] sm:$0xff]  ;;  %v34_v2 = vld [vmem:[%s383_s1 + $0x68] sm:$0xff] }
   0x2   :  { %208 = vmatprep.subr.mxu0 %v36_v0  ;;  %246 = vmatprep.subr.mxu1 %v36_v0  ;;  %v33_v3 = vld [vmem:[%s383_s1 + $0x60] sm:$0xff]  ;;  %v32_v4 = vld [vmem:[%s383_s1 + $0x58] sm:$0xff]  ;;  %v31_v5 = vld [vmem:[%s383_s1 + $0x50] sm:$0xff]  ;;  %v158_v53 = vshrl.u32 %v157_v52, 7 }
   0x3   :  { %209 = vmatpush3.msra.mxu0 %v36_v0  ;;  %262 = vmatpush3.msra.mxu1 %v36_v0  ;;  %v30_v6 = vld [vmem:[%s383_s1 + $0x48] sm:$0xff]  ;;  %v29_v7 = vld [vmem:[%s383_s1 + $0x40] sm:$0xff]  ;;  %v28_v8 = vld [vmem:[%s383_s1 + $0x38] sm:$0xff] }
   0x4   :  { %210 = vmatprep.subr.mxu0 %v35_v1  ;;  %247 = vmatprep.subr.mxu1 %v35_v1  ;;  %v27_v9 = vld [vmem:[%s383_s1 + $0x30] sm:$0xff]  ;;  %v26_v10 = vld [vmem:[%s383_s1 + $0x28] sm:$0xff]  ;;  %v25_v11 = vld [vmem:[%s383_s1 + $0x20] sm:$0xff]  ;;  %v159_v55 = vsub.s32 0, %v158_v53 }
   0x5   :  { %211 = vmatpush3.msra.mxu0 %v35_v1  ;;  %263 = vmatpush3.msra.mxu1 %v35_v1  ;;  %v24_v12 = vld [vmem:[%s383_s1 + $0x18] sm:$0xff]  ;;  %v23_v13 = vld [vmem:[%s383_s1 + $0x10] sm:$0xff]  ;;  %v22_v14 = vld [vmem:[%s383_s1 + $0x8] sm:$0xff] }
   0x6   :  { %212 = vmatprep.subr.mxu0 %v34_v2  ;;  %248 = vmatprep.subr.mxu1 %v34_v2  ;;  %v21_v15 = vld [vmem:[%s383_s1] sm:$0xff]  ;;  %v19_v17 = vld [vmem:[%s384_s0 + $0x10] sm:$0xff]  ;;  %v18_v18 = vld [vmem:[%s384_s0 + $0x8] sm:$0xff] }
   0x7   :  { %213 = vmatpush3.msra.mxu0 %v34_v2  ;;  %264 = vmatpush3.msra.mxu1 %v34_v2  ;;  %v17_v16 = vld [vmem:[%s384_s0] sm:$0xff]  ;;  %v20_v19 = vld [vmem:[%s384_s0 + $0x18] sm:$0xff] }
   0x8   :  { %214 = vmatprep.subr.mxu0 %v33_v3  ;;  %249 = vmatprep.subr.mxu1 %v33_v3  ;;  %v151_v54 = vld [vmem:[%s385_s2] sm:$0x1] }
   0x9   :  { %215 = vmatpush3.msra.mxu0 %v33_v3  ;;  %265 = vmatpush3.msra.mxu1 %v33_v3  ;;  %v153_v58 = vld [vmem:[%s386_s3] sm:$0x1] }
   0xa   :  { %216 = vmatprep.subr.mxu0 %v32_v4  ;;  %250 = vmatprep.subr.mxu1 %v32_v4 }
   0xb   :  { %217 = vmatpush3.msra.mxu0 %v32_v4  ;;  %266 = vmatpush3.msra.mxu1 %v32_v4 }
   0xc   :  { %218 = vmatprep.subr.mxu0 %v31_v5  ;;  %251 = vmatprep.subr.mxu1 %v31_v5 }
   0xd   :  { %219 = vmatpush3.msra.mxu0 %v31_v5  ;;  %267 = vmatpush3.msra.mxu1 %v31_v5 }
   0xe   :  { %220 = vmatprep.subr.mxu0 %v30_v6  ;;  %252 = vmatprep.subr.mxu1 %v30_v6 }
   0xf   :  { %221 = vmatpush3.msra.mxu0 %v30_v6  ;;  %268 = vmatpush3.msra.mxu1 %v30_v6 }
  0x10   :  { %222 = vmatprep.subr.mxu0 %v29_v7  ;;  %253 = vmatprep.subr.mxu1 %v29_v7 }
  0x11   :  { %223 = vmatpush3.msra.mxu0 %v29_v7  ;;  %269 = vmatpush3.msra.mxu1 %v29_v7 }
  0x12   :  { %224 = vmatprep.subr.mxu0 %v28_v8  ;;  %254 = vmatprep.subr.mxu1 %v28_v8 }
  0x13   :  { %225 = vmatpush3.msra.mxu0 %v28_v8  ;;  %270 = vmatpush3.msra.mxu1 %v28_v8 }
  0x14   :  { %226 = vmatprep.subr.mxu0 %v27_v9  ;;  %255 = vmatprep.subr.mxu1 %v27_v9 }
  0x15   :  { %227 = vmatpush3.msra.mxu0 %v27_v9  ;;  %271 = vmatpush3.msra.mxu1 %v27_v9 }
  0x16   :  { %228 = vmatprep.subr.mxu0 %v26_v10  ;;  %256 = vmatprep.subr.mxu1 %v26_v10 }
  0x17   :  { %229 = vmatpush3.msra.mxu0 %v26_v10  ;;  %272 = vmatpush3.msra.mxu1 %v26_v10 }
  0x18   :  { %230 = vmatprep.subr.mxu0 %v25_v11  ;;  %257 = vmatprep.subr.mxu1 %v25_v11 }
  0x19   :  { %231 = vmatpush3.msra.mxu0 %v25_v11  ;;  %273 = vmatpush3.msra.mxu1 %v25_v11 }
  0x1a   :  { %232 = vmatprep.subr.mxu0 %v24_v12  ;;  %258 = vmatprep.subr.mxu1 %v24_v12 }
  0x1b   :  { %233 = vmatpush3.msra.mxu0 %v24_v12  ;;  %274 = vmatpush3.msra.mxu1 %v24_v12 }
  0x1c   :  { %234 = vmatprep.subr.mxu0 %v23_v13  ;;  %259 = vmatprep.subr.mxu1 %v23_v13 }
  0x1d   :  { %235 = vmatpush3.msra.mxu0 %v23_v13  ;;  %275 = vmatpush3.msra.mxu1 %v23_v13 }
  0x1e   :  { %236 = vmatprep.subr.mxu0 %v22_v14  ;;  %260 = vmatprep.subr.mxu1 %v22_v14 }
  0x1f   :  { %237 = vmatpush3.msra.mxu0 %v22_v14  ;;  %276 = vmatpush3.msra.mxu1 %v22_v14 }
  0x20   :  { %238 = vmatprep.subr.mxu0 %v21_v15  ;;  %261 = vmatprep.subr.mxu1 %v21_v15 }
  0x21   :  { %239 = vmatpush3.msra.mxu0 %v21_v15  ;;  %277 = vmatpush3.msra.mxu1 %v21_v15 }
  0x22   :  { %240 = vmatprep.mubr.f32.mxu0 %v17_v16  ;;  %243 = vmatprep.mubr.f32.mxu1 %v19_v17 }
  0x23   :  { %241 = vmatmul.mubr.f32.vlgmr.msra.gmra.mxu0 %v18_v18  ;;  %244 = vmatmul.mubr.f32.vlgmr.msra.gmra.mxu1 %v20_v19 }
  0xe3   :  { %v242_v20 = vpop.f32.mrf.mxu0  ;;  %v245_v21 = vpop.f32.mrf.mxu1 }
  0xe4   :  { %v132_v24 = vmul.f32 %v242_v20, %v242_v20  ;;  %v134_v30 = vmul.f32 %v245_v21, %v245_v21 }
  0xe5   :  { %v103_v22 = vpop.f32.mrf.mxu0  ;;  %v113_v23 = vpop.f32.mrf.mxu1 }
  0xe6   :  { %v122_v25 = vadd.f32 %v242_v20, %v103_v22  ;;  %v131_v26 = vmul.f32 %v103_v22, %v103_v22  ;;  %v133_v29 = vmul.f32 %v113_v23, %v113_v23 }
  0xe8   :  { %v135_v27 = vadd.f32 %v132_v24, %v131_v26  ;;  %v123_v28 = vadd.f32 %v122_v25, %v113_v23 }
  0xea   :  { %v124_v31 = vadd.f32 %v245_v21, %v123_v28  ;;  %v136_v32 = vadd.f32 %v135_v27, %v133_v29 }
  0xec   :  { %v125_v33 = vrot.slane %v124_v31, 4  ;;  %v137_v34 = vadd.f32 %v136_v32, %v134_v30 }
  0xee   :  { %v126_v35 = vadd.f32 %v125_v33, %v124_v31  ;;  %v138_v36 = vrot.slane %v137_v34, 4 }
  0xf0   :  { %v127_v37 = vrot.slane %v126_v35, 2  ;;  %v139_v38 = vadd.f32 %v138_v36, %v137_v34 }
  0xf2   :  { %v128_v39 = vadd.f32 %v127_v37, %v126_v35  ;;  %v140_v40 = vrot.slane %v139_v38, 2 }
  0xf4   :  { %v129_v41 = vrot.slane %v128_v39, 1  ;;  %v141_v42 = vadd.f32 %v140_v40, %v139_v38 }
  0xf6   :  { %v130_v43 = vadd.f32 %v129_v41, %v128_v39  ;;  %v142_v44 = vrot.slane %v141_v42, 1 }
  0xf8   :  { %v143_v45 = vadd.f32 %v142_v44, %v141_v42  ;;  %v144_v46 = vmul.f32 0.03125, %v130_v43 }
  0xfa   :  { %v145_v47 = vmul.f32 0.03125, %v143_v45  ;;  %v146_v48 = vmul.f32 %v144_v46, %v144_v46 }
  0xfc   :  { %v147_v49 = vsub.f32 %v145_v47, %v146_v48 }
  0xfe   :  { %v148_v50 = vmax.f32 %v147_v49, 0.0 }
 0x100   :  { %v149_v51 = vadd.f32 1e-05, %v148_v50 }
 0x102   :  { %278 = vrsqrt.f32 %v149_v51 }
 0x10f   :  { %v279_v56 = vpop.eup %278 }
 0x110   :  { %v152_v57 = vmul.f32 %v279_v56, %v151_v54 }
 0x112   :  { %v154_v59 = vmul.f32 %v152_v57, %v144_v46  ;;  %v160_v60 = vrot.slane %v152_v57, %v159_v55 }
 0x114   :  { %v155_v61 = vsub.f32 %v153_v58, %v154_v59  ;;  %v162_v62 = vmul.f32 %v160_v60, %v103_v22  ;;  %v163_v63 = vmul.f32 %v242_v20, %v160_v60  ;;  %v164_v0 = vmul.f32 %v160_v60, %v113_v23 }
 0x115   :  { %v165_v1 = vmul.f32 %v245_v21, %v160_v60 }
 0x116   :  { %v170_v2 = vrot.slane %v155_v61, %v159_v55 }
 0x118   :  { %v172_v3 = vadd.f32 %v170_v2, %v162_v62  ;;  %v173_v4 = vadd.f32 %v170_v2, %v163_v63  ;;  %v174_v5 = vadd.f32 %v170_v2, %v164_v0  ;;  %v175_v6 = vadd.f32 %v170_v2, %v165_v1 }
 0x11a   :  { %v176_v7 = vmax.f32 %v172_v3, 0.0  ;;  %v177_v8 = vmax.f32 %v173_v4, 0.0  ;;  %v178_v9 = vmax.f32 %v174_v5, 0.0  ;;  %v179_v10 = vmax.f32 %v175_v6, 0.0 }
 0x11c   :  { %180 = vst [vmem:[%s387_s4] sm:$0xff] %v176_v7  ;;  %181 = vst [vmem:[%s387_s4 + $0x8] sm:$0xff] %v177_v8 }
 0x11d   :  { %182 = vst [vmem:[%s387_s4 + $0x10] sm:$0xff] %v178_v9  ;;  %183 = vst [vmem:[%s387_s4 + $0x18] sm:$0xff] %v179_v10 }

// kernel: custom_network_q4_forward.50
= control target key start
LH: loop header
LB: loop body
LE: loop exit
PB: predicated region body
PF: predicated region fallthrough
CT: control target
= control target key end

     0   :  { %v157_v52 = vlaneseq  ;;  %s379_s1 = inlined_call_operand.vmem [shape: f32[128,128], index: 1, kind: input, shape index: {}]   ;;  %s380_s0 = inlined_call_operand.vmem [shape: f32[32,128], index: 0, kind: input, shape index: {}]   ;;  %s381_s2 = inlined_call_operand.vmem [shape: f32[1,128], index: 2, kind: input, shape index: {}]   ;;  %s382_s3 = inlined_call_operand.vmem [shape: f32[1,128], index: 3, kind: input, shape index: {}]   ;;  %s383_s4 = inlined_call_operand.vmem [shape: f32[32,128], index: 4, kind: output, shape index: {}]  }
   0x1   :  { %v36_v0 = vld [vmem:[%s379_s1 + $0x78] sm:$0xff]  ;;  %v35_v1 = vld [vmem:[%s379_s1 + $0x70] sm:$0xff]  ;;  %v34_v2 = vld [vmem:[%s379_s1 + $0x68] sm:$0xff] }
   0x2   :  { %204 = vmatprep.subr.mxu0 %v36_v0  ;;  %242 = vmatprep.subr.mxu1 %v36_v0  ;;  %v33_v3 = vld [vmem:[%s379_s1 + $0x60] sm:$0xff]  ;;  %v32_v4 = vld [vmem:[%s379_s1 + $0x58] sm:$0xff]  ;;  %v31_v5 = vld [vmem:[%s379_s1 + $0x50] sm:$0xff]  ;;  %v158_v53 = vshrl.u32 %v157_v52, 7 }
   0x3   :  { %205 = vmatpush3.msra.mxu0 %v36_v0  ;;  %258 = vmatpush3.msra.mxu1 %v36_v0  ;;  %v30_v6 = vld [vmem:[%s379_s1 + $0x48] sm:$0xff]  ;;  %v29_v7 = vld [vmem:[%s379_s1 + $0x40] sm:$0xff]  ;;  %v28_v8 = vld [vmem:[%s379_s1 + $0x38] sm:$0xff] }
   0x4   :  { %206 = vmatprep.subr.mxu0 %v35_v1  ;;  %243 = vmatprep.subr.mxu1 %v35_v1  ;;  %v27_v9 = vld [vmem:[%s379_s1 + $0x30] sm:$0xff]  ;;  %v26_v10 = vld [vmem:[%s379_s1 + $0x28] sm:$0xff]  ;;  %v25_v11 = vld [vmem:[%s379_s1 + $0x20] sm:$0xff]  ;;  %v159_v55 = vsub.s32 0, %v158_v53 }
   0x5   :  { %207 = vmatpush3.msra.mxu0 %v35_v1  ;;  %259 = vmatpush3.msra.mxu1 %v35_v1  ;;  %v24_v12 = vld [vmem:[%s379_s1 + $0x18] sm:$0xff]  ;;  %v23_v13 = vld [vmem:[%s379_s1 + $0x10] sm:$0xff]  ;;  %v22_v14 = vld [vmem:[%s379_s1 + $0x8] sm:$0xff] }
   0x6   :  { %208 = vmatprep.subr.mxu0 %v34_v2  ;;  %244 = vmatprep.subr.mxu1 %v34_v2  ;;  %v21_v15 = vld [vmem:[%s379_s1] sm:$0xff]  ;;  %v19_v17 = vld [vmem:[%s380_s0 + $0x10] sm:$0xff]  ;;  %v18_v18 = vld [vmem:[%s380_s0 + $0x8] sm:$0xff] }
   0x7   :  { %209 = vmatpush3.msra.mxu0 %v34_v2  ;;  %260 = vmatpush3.msra.mxu1 %v34_v2  ;;  %v17_v16 = vld [vmem:[%s380_s0] sm:$0xff]  ;;  %v20_v19 = vld [vmem:[%s380_s0 + $0x18] sm:$0xff] }
   0x8   :  { %210 = vmatprep.subr.mxu0 %v33_v3  ;;  %245 = vmatprep.subr.mxu1 %v33_v3  ;;  %v151_v54 = vld [vmem:[%s381_s2] sm:$0x1] }
   0x9   :  { %211 = vmatpush3.msra.mxu0 %v33_v3  ;;  %261 = vmatpush3.msra.mxu1 %v33_v3  ;;  %v153_v58 = vld [vmem:[%s382_s3] sm:$0x1] }
   0xa   :  { %212 = vmatprep.subr.mxu0 %v32_v4  ;;  %246 = vmatprep.subr.mxu1 %v32_v4 }
   0xb   :  { %213 = vmatpush3.msra.mxu0 %v32_v4  ;;  %262 = vmatpush3.msra.mxu1 %v32_v4 }
   0xc   :  { %214 = vmatprep.subr.mxu0 %v31_v5  ;;  %247 = vmatprep.subr.mxu1 %v31_v5 }
   0xd   :  { %215 = vmatpush3.msra.mxu0 %v31_v5  ;;  %263 = vmatpush3.msra.mxu1 %v31_v5 }
   0xe   :  { %216 = vmatprep.subr.mxu0 %v30_v6  ;;  %248 = vmatprep.subr.mxu1 %v30_v6 }
   0xf   :  { %217 = vmatpush3.msra.mxu0 %v30_v6  ;;  %264 = vmatpush3.msra.mxu1 %v30_v6 }
  0x10   :  { %218 = vmatprep.subr.mxu0 %v29_v7  ;;  %249 = vmatprep.subr.mxu1 %v29_v7 }
  0x11   :  { %219 = vmatpush3.msra.mxu0 %v29_v7  ;;  %265 = vmatpush3.msra.mxu1 %v29_v7 }
  0x12   :  { %220 = vmatprep.subr.mxu0 %v28_v8  ;;  %250 = vmatprep.subr.mxu1 %v28_v8 }
  0x13   :  { %221 = vmatpush3.msra.mxu0 %v28_v8  ;;  %266 = vmatpush3.msra.mxu1 %v28_v8 }
  0x14   :  { %222 = vmatprep.subr.mxu0 %v27_v9  ;;  %251 = vmatprep.subr.mxu1 %v27_v9 }
  0x15   :  { %223 = vmatpush3.msra.mxu0 %v27_v9  ;;  %267 = vmatpush3.msra.mxu1 %v27_v9 }
  0x16   :  { %224 = vmatprep.subr.mxu0 %v26_v10  ;;  %252 = vmatprep.subr.mxu1 %v26_v10 }
  0x17   :  { %225 = vmatpush3.msra.mxu0 %v26_v10  ;;  %268 = vmatpush3.msra.mxu1 %v26_v10 }
  0x18   :  { %226 = vmatprep.subr.mxu0 %v25_v11  ;;  %253 = vmatprep.subr.mxu1 %v25_v11 }
  0x19   :  { %227 = vmatpush3.msra.mxu0 %v25_v11  ;;  %269 = vmatpush3.msra.mxu1 %v25_v11 }
  0x1a   :  { %228 = vmatprep.subr.mxu0 %v24_v12  ;;  %254 = vmatprep.subr.mxu1 %v24_v12 }
  0x1b   :  { %229 = vmatpush3.msra.mxu0 %v24_v12  ;;  %270 = vmatpush3.msra.mxu1 %v24_v12 }
  0x1c   :  { %230 = vmatprep.subr.mxu0 %v23_v13  ;;  %255 = vmatprep.subr.mxu1 %v23_v13 }
  0x1d   :  { %231 = vmatpush3.msra.mxu0 %v23_v13  ;;  %271 = vmatpush3.msra.mxu1 %v23_v13 }
  0x1e   :  { %232 = vmatprep.subr.mxu0 %v22_v14  ;;  %256 = vmatprep.subr.mxu1 %v22_v14 }
  0x1f   :  { %233 = vmatpush3.msra.mxu0 %v22_v14  ;;  %272 = vmatpush3.msra.mxu1 %v22_v14 }
  0x20   :  { %234 = vmatprep.subr.mxu0 %v21_v15  ;;  %257 = vmatprep.subr.mxu1 %v21_v15 }
  0x21   :  { %235 = vmatpush3.msra.mxu0 %v21_v15  ;;  %273 = vmatpush3.msra.mxu1 %v21_v15 }
  0x22   :  { %236 = vmatprep.mubr.f32.mxu0 %v17_v16  ;;  %239 = vmatprep.mubr.f32.mxu1 %v19_v17 }
  0x23   :  { %237 = vmatmul.mubr.f32.vlgmr.msra.gmra.mxu0 %v18_v18  ;;  %240 = vmatmul.mubr.f32.vlgmr.msra.gmra.mxu1 %v20_v19 }
  0xe3   :  { %v238_v20 = vpop.f32.mrf.mxu0  ;;  %v241_v21 = vpop.f32.mrf.mxu1 }
  0xe4   :  { %v132_v24 = vmul.f32 %v238_v20, %v238_v20  ;;  %v134_v30 = vmul.f32 %v241_v21, %v241_v21 }
  0xe5   :  { %v103_v22 = vpop.f32.mrf.mxu0  ;;  %v113_v23 = vpop.f32.mrf.mxu1 }
  0xe6   :  { %v122_v25 = vadd.f32 %v238_v20, %v103_v22  ;;  %v131_v26 = vmul.f32 %v103_v22, %v103_v22  ;;  %v133_v29 = vmul.f32 %v113_v23, %v113_v23 }
  0xe8   :  { %v135_v27 = vadd.f32 %v132_v24, %v131_v26  ;;  %v123_v28 = vadd.f32 %v122_v25, %v113_v23 }
  0xea   :  { %v124_v31 = vadd.f32 %v241_v21, %v123_v28  ;;  %v136_v32 = vadd.f32 %v135_v27, %v133_v29 }
  0xec   :  { %v125_v33 = vrot.slane %v124_v31, 4  ;;  %v137_v34 = vadd.f32 %v136_v32, %v134_v30 }
  0xee   :  { %v126_v35 = vadd.f32 %v125_v33, %v124_v31  ;;  %v138_v36 = vrot.slane %v137_v34, 4 }
  0xf0   :  { %v127_v37 = vrot.slane %v126_v35, 2  ;;  %v139_v38 = vadd.f32 %v138_v36, %v137_v34 }
  0xf2   :  { %v128_v39 = vadd.f32 %v127_v37, %v126_v35  ;;  %v140_v40 = vrot.slane %v139_v38, 2 }
  0xf4   :  { %v129_v41 = vrot.slane %v128_v39, 1  ;;  %v141_v42 = vadd.f32 %v140_v40, %v139_v38 }
  0xf6   :  { %v130_v43 = vadd.f32 %v129_v41, %v128_v39  ;;  %v142_v44 = vrot.slane %v141_v42, 1 }
  0xf8   :  { %v143_v45 = vadd.f32 %v142_v44, %v141_v42  ;;  %v144_v46 = vmul.f32 0.03125, %v130_v43 }
  0xfa   :  { %v145_v47 = vmul.f32 0.03125, %v143_v45  ;;  %v146_v48 = vmul.f32 %v144_v46, %v144_v46 }
  0xfc   :  { %v147_v49 = vsub.f32 %v145_v47, %v146_v48 }
  0xfe   :  { %v148_v50 = vmax.f32 %v147_v49, 0.0 }
 0x100   :  { %v149_v51 = vadd.f32 1e-05, %v148_v50 }
 0x102   :  { %274 = vrsqrt.f32 %v149_v51 }
 0x10f   :  { %v275_v56 = vpop.eup %274 }
 0x110   :  { %v152_v57 = vmul.f32 %v275_v56, %v151_v54 }
 0x112   :  { %v154_v59 = vmul.f32 %v152_v57, %v144_v46  ;;  %v160_v60 = vrot.slane %v152_v57, %v159_v55 }
 0x114   :  { %v155_v61 = vsub.f32 %v153_v58, %v154_v59  ;;  %v162_v62 = vmul.f32 %v160_v60, %v103_v22  ;;  %v163_v63 = vmul.f32 %v238_v20, %v160_v60  ;;  %v164_v0 = vmul.f32 %v160_v60, %v113_v23 }
 0x115   :  { %v165_v1 = vmul.f32 %v241_v21, %v160_v60 }
 0x116   :  { %v170_v2 = vrot.slane %v155_v61, %v159_v55 }
 0x118   :  { %v172_v3 = vadd.f32 %v170_v2, %v162_v62  ;;  %v173_v4 = vadd.f32 %v170_v2, %v163_v63  ;;  %v174_v5 = vadd.f32 %v170_v2, %v164_v0  ;;  %v175_v6 = vadd.f32 %v170_v2, %v165_v1 }
 0x11a   :  { %176 = vst [vmem:[%s383_s4] sm:$0xff] %v172_v3  ;;  %177 = vst [vmem:[%s383_s4 + $0x8] sm:$0xff] %v173_v4 }
 0x11b   :  { %178 = vst [vmem:[%s383_s4 + $0x10] sm:$0xff] %v174_v5  ;;  %179 = vst [vmem:[%s383_s4 + $0x18] sm:$0xff] %v175_v6 }

// kernel: custom_network_q4_forward.51
= control target key start
LH: loop header
LB: loop body
LE: loop exit
PB: predicated region body
PF: predicated region fallthrough
CT: control target
= control target key end

     0   :  { %v160_v52 = vlaneseq  ;;  %s411_s1 = inlined_call_operand.vmem [shape: f32[128,128], index: 1, kind: input, shape index: {}]   ;;  %s412_s0 = inlined_call_operand.vmem [shape: f32[32,128], index: 0, kind: input, shape index: {}]   ;;  %s413_s2 = inlined_call_operand.vmem [shape: f32[1,128], index: 2, kind: input, shape index: {}]   ;;  %s414_s3 = inlined_call_operand.vmem [shape: f32[1,128], index: 3, kind: input, shape index: {}]   ;;  %s415_s4 = inlined_call_operand.vmem [shape: f32[32,128], index: 4, kind: input, shape index: {}]   ;;  %s416_s5 = inlined_call_operand.vmem [shape: f32[32,128], index: 5, kind: output, shape index: {}]  }
   0x1   :  { %v39_v0 = vld [vmem:[%s411_s1 + $0x78] sm:$0xff]  ;;  %v38_v1 = vld [vmem:[%s411_s1 + $0x70] sm:$0xff]  ;;  %v37_v2 = vld [vmem:[%s411_s1 + $0x68] sm:$0xff] }
   0x2   :  { %219 = vmatprep.subr.mxu0 %v39_v0  ;;  %257 = vmatprep.subr.mxu1 %v39_v0  ;;  %v36_v3 = vld [vmem:[%s411_s1 + $0x60] sm:$0xff]  ;;  %v35_v4 = vld [vmem:[%s411_s1 + $0x58] sm:$0xff]  ;;  %v34_v5 = vld [vmem:[%s411_s1 + $0x50] sm:$0xff]  ;;  %v161_v53 = vshrl.u32 %v160_v52, 7 }
   0x3   :  { %220 = vmatpush3.msra.mxu0 %v39_v0  ;;  %273 = vmatpush3.msra.mxu1 %v39_v0  ;;  %v33_v6 = vld [vmem:[%s411_s1 + $0x48] sm:$0xff]  ;;  %v32_v7 = vld [vmem:[%s411_s1 + $0x40] sm:$0xff]  ;;  %v31_v8 = vld [vmem:[%s411_s1 + $0x38] sm:$0xff] }
   0x4   :  { %221 = vmatprep.subr.mxu0 %v38_v1  ;;  %258 = vmatprep.subr.mxu1 %v38_v1  ;;  %v30_v9 = vld [vmem:[%s411_s1 + $0x30] sm:$0xff]  ;;  %v29_v10 = vld [vmem:[%s411_s1 + $0x28] sm:$0xff]  ;;  %v28_v11 = vld [vmem:[%s411_s1 + $0x20] sm:$0xff]  ;;  %v162_v55 = vsub.s32 0, %v161_v53 }
   0x5   :  { %222 = vmatpush3.msra.mxu0 %v38_v1  ;;  %274 = vmatpush3.msra.mxu1 %v38_v1  ;;  %v27_v12 = vld [vmem:[%s411_s1 + $0x18] sm:$0xff]  ;;  %v26_v13 = vld [vmem:[%s411_s1 + $0x10] sm:$0xff]  ;;  %v25_v14 = vld [vmem:[%s411_s1 + $0x8] sm:$0xff] }
   0x6   :  { %223 = vmatprep.subr.mxu0 %v37_v2  ;;  %259 = vmatprep.subr.mxu1 %v37_v2  ;;  %v24_v15 = vld [vmem:[%s411_s1] sm:$0xff]  ;;  %v22_v17 = vld [vmem:[%s412_s0 + $0x10] sm:$0xff]  ;;  %v21_v18 = vld [vmem:[%s412_s0 + $0x8] sm:$0xff] }
   0x7   :  { %224 = vmatpush3.msra.mxu0 %v37_v2  ;;  %275 = vmatpush3.msra.mxu1 %v37_v2  ;;  %v20_v16 = vld [vmem:[%s412_s0] sm:$0xff]  ;;  %v23_v19 = vld [vmem:[%s412_s0 + $0x18] sm:$0xff] }
   0x8   :  { %225 = vmatprep.subr.mxu0 %v36_v3  ;;  %260 = vmatprep.subr.mxu1 %v36_v3  ;;  %v154_v54 = vld [vmem:[%s413_s2] sm:$0x1] }
   0x9   :  { %226 = vmatpush3.msra.mxu0 %v36_v3  ;;  %276 = vmatpush3.msra.mxu1 %v36_v3  ;;  %v156_v58 = vld [vmem:[%s414_s3] sm:$0x1] }
   0xa   :  { %227 = vmatprep.subr.mxu0 %v35_v4  ;;  %261 = vmatprep.subr.mxu1 %v35_v4  ;;  %v179_v3 = vld [vmem:[%s415_s4] sm:$0xff] }
   0xb   :  { %228 = vmatpush3.msra.mxu0 %v35_v4  ;;  %277 = vmatpush3.msra.mxu1 %v35_v4  ;;  %v180_v4 = vld [vmem:[%s415_s4 + $0x8] sm:$0xff] }
   0xc   :  { %229 = vmatprep.subr.mxu0 %v34_v5  ;;  %262 = vmatprep.subr.mxu1 %v34_v5 }
   0xd   :  { %230 = vmatpush3.msra.mxu0 %v34_v5  ;;  %278 = vmatpush3.msra.mxu1 %v34_v5  ;;  %v181_v5 = vld [vmem:[%s415_s4 + $0x10] sm:$0xff] }
   0xe   :  { %231 = vmatprep.subr.mxu0 %v33_v6  ;;  %263 = vmatprep.subr.mxu1 %v33_v6 }
   0xf   :  { %232 = vmatpush3.msra.mxu0 %v33_v6  ;;  %279 = vmatpush3.msra.mxu1 %v33_v6  ;;  %v182_v6 = vld [vmem:[%s415_s4 + $0x18] sm:$0xff] }
  0x10   :  { %233 = vmatprep.subr.mxu0 %v32_v7  ;;  %264 = vmatprep.subr.mxu1 %v32_v7 }
  0x11   :  { %234 = vmatpush3.msra.mxu0 %v32_v7  ;;  %280 = vmatpush3.msra.mxu1 %v32_v7 }
  0x12   :  { %235 = vmatprep.subr.mxu0 %v31_v8  ;;  %265 = vmatprep.subr.mxu1 %v31_v8 }
  0x13   :  { %236 = vmatpush3.msra.mxu0 %v31_v8  ;;  %281 = vmatpush3.msra.mxu1 %v31_v8 }
  0x14   :  { %237 = vmatprep.subr.mxu0 %v30_v9  ;;  %266 = vmatprep.subr.mxu1 %v30_v9 }
  0x15   :  { %238 = vmatpush3.msra.mxu0 %v30_v9  ;;  %282 = vmatpush3.msra.mxu1 %v30_v9 }
  0x16   :  { %239 = vmatprep.subr.mxu0 %v29_v10  ;;  %267 = vmatprep.subr.mxu1 %v29_v10 }
  0x17   :  { %240 = vmatpush3.msra.mxu0 %v29_v10  ;;  %283 = vmatpush3.msra.mxu1 %v29_v10 }
  0x18   :  { %241 = vmatprep.subr.mxu0 %v28_v11  ;;  %268 = vmatprep.subr.mxu1 %v28_v11 }
  0x19   :  { %242 = vmatpush3.msra.mxu0 %v28_v11  ;;  %284 = vmatpush3.msra.mxu1 %v28_v11 }
  0x1a   :  { %243 = vmatprep.subr.mxu0 %v27_v12  ;;  %269 = vmatprep.subr.mxu1 %v27_v12 }
  0x1b   :  { %244 = vmatpush3.msra.mxu0 %v27_v12  ;;  %285 = vmatpush3.msra.mxu1 %v27_v12 }
  0x1c   :  { %245 = vmatprep.subr.mxu0 %v26_v13  ;;  %270 = vmatprep.subr.mxu1 %v26_v13 }
  0x1d   :  { %246 = vmatpush3.msra.mxu0 %v26_v13  ;;  %286 = vmatpush3.msra.mxu1 %v26_v13 }
  0x1e   :  { %247 = vmatprep.subr.mxu0 %v25_v14  ;;  %271 = vmatprep.subr.mxu1 %v25_v14 }
  0x1f   :  { %248 = vmatpush3.msra.mxu0 %v25_v14  ;;  %287 = vmatpush3.msra.mxu1 %v25_v14 }
  0x20   :  { %249 = vmatprep.subr.mxu0 %v24_v15  ;;  %272 = vmatprep.subr.mxu1 %v24_v15 }
  0x21   :  { %250 = vmatpush3.msra.mxu0 %v24_v15  ;;  %288 = vmatpush3.msra.mxu1 %v24_v15 }
  0x22   :  { %251 = vmatprep.mubr.f32.mxu0 %v20_v16  ;;  %254 = vmatprep.mubr.f32.mxu1 %v22_v17 }
  0x23   :  { %252 = vmatmul.mubr.f32.vlgmr.msra.gmra.mxu0 %v21_v18  ;;  %255 = vmatmul.mubr.f32.vlgmr.msra.gmra.mxu1 %v23_v19 }
  0xe3   :  { %v253_v20 = vpop.f32.mrf.mxu0  ;;  %v256_v21 = vpop.f32.mrf.mxu1 }
  0xe4   :  { %v135_v24 = vmul.f32 %v253_v20, %v253_v20  ;;  %v137_v30 = vmul.f32 %v256_v21, %v256_v21 }
  0xe5   :  { %v106_v22 = vpop.f32.mrf.mxu0  ;;  %v116_v23 = vpop.f32.mrf.mxu1 }
  0xe6   :  { %v125_v25 = vadd.f32 %v253_v20, %v106_v22  ;;  %v134_v26 = vmul.f32 %v106_v22, %v106_v22  ;;  %v136_v29 = vmul.f32 %v116_v23, %v116_v23 }
  0xe8   :  { %v138_v27 = vadd.f32 %v135_v24, %v134_v26  ;;  %v126_v28 = vadd.f32 %v125_v25, %v116_v23 }
  0xea   :  { %v127_v31 = vadd.f32 %v256_v21, %v126_v28  ;;  %v139_v32 = vadd.f32 %v138_v27, %v136_v29 }
  0xec   :  { %v128_v33 = vrot.slane %v127_v31, 4  ;;  %v140_v34 = vadd.f32 %v139_v32, %v137_v30 }
  0xee   :  { %v129_v35 = vadd.f32 %v128_v33, %v127_v31  ;;  %v141_v36 = vrot.slane %v140_v34, 4 }
  0xf0   :  { %v130_v37 = vrot.slane %v129_v35, 2  ;;  %v142_v38 = vadd.f32 %v141_v36, %v140_v34 }
  0xf2   :  { %v131_v39 = vadd.f32 %v130_v37, %v129_v35  ;;  %v143_v40 = vrot.slane %v142_v38, 2 }
  0xf4   :  { %v132_v41 = vrot.slane %v131_v39, 1  ;;  %v144_v42 = vadd.f32 %v143_v40, %v142_v38 }
  0xf6   :  { %v133_v43 = vadd.f32 %v132_v41, %v131_v39  ;;  %v145_v44 = vrot.slane %v144_v42, 1 }
  0xf8   :  { %v146_v45 = vadd.f32 %v145_v44, %v144_v42  ;;  %v147_v46 = vmul.f32 0.03125, %v133_v43 }
  0xfa   :  { %v148_v47 = vmul.f32 0.03125, %v146_v45  ;;  %v149_v48 = vmul.f32 %v147_v46, %v147_v46 }
  0xfc   :  { %v150_v49 = vsub.f32 %v148_v47, %v149_v48 }
  0xfe   :  { %v151_v50 = vmax.f32 %v150_v49, 0.0 }
 0x100   :  { %v152_v51 = vadd.f32 1e-05, %v151_v50 }
 0x102   :  { %289 = vrsqrt.f32 %v152_v51 }
 0x10f   :  { %v290_v56 = vpop.eup %289 }
 0x110   :  { %v155_v57 = vmul.f32 %v290_v56, %v154_v54 }
 0x112   :  { %v157_v59 = vmul.f32 %v155_v57, %v147_v46  ;;  %v163_v60 = vrot.slane %v155_v57, %v162_v55 }
 0x114   :  { %v158_v61 = vsub.f32 %v156_v58, %v157_v59  ;;  %v165_v62 = vmul.f32 %v163_v60, %v106_v22  ;;  %v166_v63 = vmul.f32 %v253_v20, %v163_v60  ;;  %v167_v0 = vmul.f32 %v163_v60, %v116_v23 }
 0x115   :  { %v168_v1 = vmul.f32 %v256_v21, %v163_v60 }
 0x116   :  { %v173_v2 = vrot.slane %v158_v61, %v162_v55 }
 0x118   :  { %v175_v7 = vadd.f32 %v173_v2, %v165_v62  ;;  %v176_v8 = vadd.f32 %v173_v2, %v166_v63  ;;  %v177_v9 = vadd.f32 %v173_v2, %v167_v0  ;;  %v178_v10 = vadd.f32 %v173_v2, %v168_v1 }
 0x11a   :  { %v183_v11 = vadd.f32 %v179_v3, %v175_v7  ;;  %v184_v12 = vadd.f32 %v180_v4, %v176_v8  ;;  %v185_v13 = vadd.f32 %v181_v5, %v177_v9  ;;  %v186_v14 = vadd.f32 %v182_v6, %v178_v10 }
 0x11c   :  { %v187_v15 = vmax.f32 %v183_v11, 0.0  ;;  %v188_v16 = vmax.f32 %v184_v12, 0.0  ;;  %v189_v17 = vmax.f32 %v185_v13, 0.0  ;;  %v190_v18 = vmax.f32 %v186_v14, 0.0 }
 0x11e   :  { %191 = vst [vmem:[%s416_s5] sm:$0xff] %v187_v15  ;;  %192 = vst [vmem:[%s416_s5 + $0x8] sm:$0xff] %v188_v16 }
 0x11f   :  { %193 = vst [vmem:[%s416_s5 + $0x10] sm:$0xff] %v189_v17  ;;  %194 = vst [vmem:[%s416_s5 + $0x18] sm:$0xff] %v190_v18 }

// kernel: custom_network_q4_forward.53
= control target key start
LH: loop header
LB: loop body
LE: loop exit
PB: predicated region body
PF: predicated region fallthrough
CT: control target
= control target key end

     0   :  { %v373_v0 = vmov 0.0   ;;  %vm374_vm0 = vmmov 0   ;;  %s594_s1 = inlined_call_operand.vmem [shape: f32[128,128], index: 1, kind: input, shape index: {}]   ;;  %s595_s0 = inlined_call_operand.vmem [shape: f32[72,128], index: 0, kind: input, shape index: {}]   ;;  %s596_s2 = inlined_call_operand.vmem [shape: f32[1,128], index: 2, kind: input, shape index: {}]   ;;  %s597_s3 = inlined_call_operand.vmem [shape: f32[1,128], index: 3, kind: input, shape index: {}]   ;;  %s598_s4 = inlined_call_operand.vmem [shape: f32[72,128], index: 4, kind: output, shape index: {}]  }
   0x1   :  { %278 = vmatprep.subr.mxu0 %v373_v0  ;;  %v41_v1 = vld [vmem:[%s594_s1 + $0x78] sm:$0xff]  ;;  %v40_v2 = vld [vmem:[%s594_s1 + $0x70] sm:$0xff]  ;;  %337 = vmatprep.subr.mxu1 %v373_v0  ;;  %v39_v3 = vld [vmem:[%s594_s1 + $0x68] sm:$0xff] }
   0x2   :  { %279 = vmatpush3.msra.mxu0 %v41_v1  ;;  %353 = vmatpush3.msra.mxu1 %v41_v1  ;;  %v38_v4 = vld [vmem:[%s594_s1 + $0x60] sm:$0xff]  ;;  %v37_v5 = vld [vmem:[%s594_s1 + $0x58] sm:$0xff]  ;;  %v36_v6 = vld [vmem:[%s594_s1 + $0x50] sm:$0xff] }
   0x3   :  { %280 = vmatprep.subr.mxu0 %v373_v0  ;;  %338 = vmatprep.subr.mxu1 %v373_v0  ;;  %v35_v7 = vld [vmem:[%s594_s1 + $0x48] sm:$0xff]  ;;  %v34_v8 = vld [vmem:[%s594_s1 + $0x40] sm:$0xff]  ;;  %v33_v9 = vld [vmem:[%s594_s1 + $0x38] sm:$0xff] }
   0x4   :  { %281 = vmatpush3.msra.mxu0 %v40_v2  ;;  %354 = vmatpush3.msra.mxu1 %v40_v2  ;;  %v32_v10 = vld [vmem:[%s594_s1 + $0x30] sm:$0xff]  ;;  %v31_v11 = vld [vmem:[%s594_s1 + $0x28] sm:$0xff]  ;;  %v30_v12 = vld [vmem:[%s594_s1 + $0x20] sm:$0xff] }
   0x5   :  { %282 = vmatprep.subr.mxu0 %v373_v0  ;;  %339 = vmatprep.subr.mxu1 %v373_v0  ;;  %v29_v13 = vld [vmem:[%s594_s1 + $0x18] sm:$0xff]  ;;  %v28_v14 = vld [vmem:[%s594_s1 + $0x10] sm:$0xff]  ;;  %v27_v15 = vld [vmem:[%s594_s1 + $0x8] sm:$0xff] }
   0x6   :  { %283 = vmatpush3.msra.mxu0 %v39_v3  ;;  %355 = vmatpush3.msra.mxu1 %v39_v3  ;;  %v26_v16 = vld [vmem:[%s594_s1] sm:$0xff]  ;;  %v22_v18 = vld [vmem:[%s595_s0 + $0x28] sm:$0xff]  ;;  %v23_v20 = vld [vmem:[%s595_s0 + $0x30] sm:$0xff] }
   0x7   :  { %284 = vmatprep.subr.mxu0 %v373_v0  ;;  %340 = vmatprep.subr.mxu1 %v373_v0  ;;  %v17_v17 = vld [vmem:[%s595_s0] sm:$0xff]  ;;  %v18_v19 = vld [vmem:[%s595_s0 + $0x8] sm:$0xff]  ;;  %v19_v21 = vld [vmem:[%s595_s0 + $0x10] sm:$0xff] }
   0x8   :  { %285 = vmatpush3.msra.mxu0 %v38_v4  ;;  %356 = vmatpush3.msra.mxu1 %v38_v4  ;;  %v24_v22 = vld [vmem:[%s595_s0 + $0x38] sm:$0xff]  ;;  %v25_v24 = vld [vmem:[%s595_s0 + $0x40] sm:$0xff] }
   0x9   :  { %286 = vmatprep.subr.mxu0 %v373_v0  ;;  %341 = vmatprep.subr.mxu1 %v373_v0  ;;  %v20_v23 = vld [vmem:[%s595_s0 + $0x18] sm:$0xff]  ;;  %v21_v25 = vld [vmem:[%s595_s0 + $0x20] sm:$0xff] }
   0xa   :  { %287 = vmatpush3.msra.mxu0 %v37_v5  ;;  %357 = vmatpush3.msra.mxu1 %v37_v5 }
   0xb   :  { %288 = vmatprep.subr.mxu0 %v373_v0  ;;  %342 = vmatprep.subr.mxu1 %v373_v0 }
   0xc   :  { %289 = vmatpush3.msra.mxu0 %v36_v6  ;;  %358 = vmatpush3.msra.mxu1 %v36_v6 }
   0xd   :  { %290 = vmatprep.subr.mxu0 %v373_v0  ;;  %343 = vmatprep.subr.mxu1 %v373_v0 }
   0xe   :  { %291 = vmatpush3.msra.mxu0 %v35_v7  ;;  %359 = vmatpush3.msra.mxu1 %v35_v7 }
   0xf   :  { %292 = vmatprep.subr.mxu0 %v373_v0  ;;  %344 = vmatprep.subr.mxu1 %v373_v0 }
  0x10   :  { %293 = vmatpush3.msra.mxu0 %v34_v8  ;;  %360 = vmatpush3.msra.mxu1 %v34_v8 }
  0x11   :  { %294 = vmatprep.subr.mxu0 %v373_v0  ;;  %345 = vmatprep.subr.mxu1 %v373_v0 }
  0x12   :  { %295 = vmatpush3.msra.mxu0 %v33_v9  ;;  %361 = vmatpush3.msra.mxu1 %v33_v9 }
  0x13   :  { %296 = vmatprep.subr.mxu0 %v373_v0  ;;  %346 = vmatprep.subr.mxu1 %v373_v0 }
  0x14   :  { %297 = vmatpush3.msra.mxu0 %v32_v10  ;;  %362 = vmatpush3.msra.mxu1 %v32_v10 }
  0x15   :  { %298 = vmatprep.subr.mxu0 %v373_v0  ;;  %347 = vmatprep.subr.mxu1 %v373_v0 }
  0x16   :  { %299 = vmatpush3.msra.mxu0 %v31_v11  ;;  %363 = vmatpush3.msra.mxu1 %v31_v11 }
  0x17   :  { %300 = vmatprep.subr.mxu0 %v373_v0  ;;  %310 = vmatprep.mubr.msk.f32.mxu0 %vm374_vm0, %v373_v0 }
  0x18   :  { %301 = vmatpush3.msra.mxu0 %v30_v12  ;;  %348 = vmatprep.subr.mxu1 %v373_v0 }
  0x19   :  { %302 = vmatprep.subr.mxu0 %v373_v0  ;;  %364 = vmatpush3.msra.mxu1 %v30_v12 }
  0x1a   :  { %303 = vmatpush3.msra.mxu0 %v29_v13  ;;  %349 = vmatprep.subr.mxu1 %v373_v0 }
  0x1b   :  { %304 = vmatprep.subr.mxu0 %v373_v0  ;;  %365 = vmatpush3.msra.mxu1 %v29_v13 }
  0x1c   :  { %305 = vmatpush3.msra.mxu0 %v28_v14  ;;  %350 = vmatprep.subr.mxu1 %v373_v0 }
  0x1d   :  { %306 = vmatprep.subr.mxu0 %v373_v0  ;;  %366 = vmatpush3.msra.mxu1 %v28_v14 }
  0x1e   :  { %307 = vmatpush3.msra.mxu0 %v27_v15  ;;  %351 = vmatprep.subr.mxu1 %v373_v0 }
  0x1f   :  { %308 = vmatprep.subr.mxu0 %v373_v0  ;;  %367 = vmatpush3.msra.mxu1 %v27_v15 }
  0x20   :  { %309 = vmatpush3.msra.mxu0 %v26_v16  ;;  %352 = vmatprep.subr.mxu1 %v373_v0 }
  0x21   :  { %311 = vmatmul.mubr.f32.vlgmr.msra.gmra.mxu0 %v17_v17  ;;  %368 = vmatpush3.msra.mxu1 %v26_v16 }
  0x22   :  { %313 = vmatprep.mubr.msk.f32.mxu0 %vm374_vm0, %v373_v0  ;;  %325 = vmatprep.mubr.msk.f32.mxu1 %vm374_vm0, %v373_v0 }
  0x23   :  { %326 = vmatmul.mubr.f32.vlgmr.msra.gmra.mxu1 %v22_v18 }
  0x24   :  { %328 = vmatprep.mubr.msk.f32.mxu1 %vm374_vm0, %v373_v0 }
  0x25   :  { %314 = vmatmul.mubr.f32.gmra.mxu0 %v18_v19 }
  0x26   :  { %316 = vmatprep.mubr.msk.f32.mxu0 %vm374_vm0, %v373_v0 }
  0x27   :  { %329 = vmatmul.mubr.f32.gmra.mxu1 %v23_v20 }
  0x28   :  { %331 = vmatprep.mubr.msk.f32.mxu1 %vm374_vm0, %v373_v0 }
  0x29   :  { %317 = vmatmul.mubr.f32.gmra.mxu0 %v19_v21 }
  0x2a   :  { %319 = vmatprep.mubr.msk.f32.mxu0 %vm374_vm0, %v373_v0 }
  0x2b   :  { %332 = vmatmul.mubr.f32.gmra.mxu1 %v24_v22 }
  0x2c   :  { %334 = vmatprep.mubr.msk.f32.mxu1 %vm374_vm0, %v373_v0 }
  0x2d   :  { %320 = vmatmul.mubr.f32.gmra.mxu0 %v20_v23  ;;  %v202_v23 = vlaneseq }
  0x2e   :  { %322 = vmatprep.mubr.msk.f32.mxu0 %vm374_vm0, %v373_v0 }
  0x2f   :  { %335 = vmatmul.mubr.f32.gmra.mxu1 %v25_v24  ;;  %v203_v24 = vshrl.u32 %v202_v23, 7 }
  0x31   :  { %323 = vmatmul.mubr.f32.gmra.mxu0 %v21_v25  ;;  %v196_v25 = vld [vmem:[%s596_s2] sm:$0x1] }
  0xe1   :  { %v525_v26 = vpop.f32.mrf.mxu0 }
  0xe2   :  { %v166_v38 = vmul.f32 %v525_v26, %v525_v26 }
  0xe3   :  { %v312_v27 = vpop.f32.mrf.mxu0  ;;  %v527_v28 = vpop.f32.mrf.mxu1 }
  0xe4   :  { %v171_v56 = vmul.f32 %v527_v28, %v527_v28  ;;  %v204_v27 = vsub.s32 0, %v203_v24 }
  0xe5   :  { %v529_v29 = vpop.f32.mrf.mxu0  ;;  %v327_v30 = vpop.f32.mrf.mxu1 }
  0xe6   :  { %v167_v35 = vmul.f32 %v529_v29, %v529_v29  ;;  %v152_v39 = vadd.f32 %v529_v29, %v525_v26 }
  0xe7   :  { %v315_v31 = vpop.f32.mrf.mxu0  ;;  %v531_v32 = vpop.f32.mrf.mxu1 }
  0xe8   :  { %v175_v43 = vadd.f32 %v167_v35, %v166_v38  ;;  %v172_v59 = vmul.f32 %v531_v32, %v531_v32 }
  0xe9   :  { %v533_v33 = vpop.f32.mrf.mxu0  ;;  %v330_v34 = vpop.f32.mrf.mxu1 }
  0xea   :  { %v168_v40 = vmul.f32 %v533_v33, %v533_v33  ;;  %v153_v44 = vadd.f32 %v152_v39, %v533_v33  ;;  %v198_v34 = vld [vmem:[%s597_s3] sm:$0x1] }
  0xeb   :  { %v318_v36 = vpop.f32.mrf.mxu0  ;;  %v537_v37 = vpop.f32.mrf.mxu1 }
  0xec   :  { %v176_v48 = vadd.f32 %v175_v43, %v168_v40  ;;  %v173_v63 = vmul.f32 %v537_v37, %v537_v37 }
  0xed   :  { %v123_v41 = vpop.f32.mrf.mxu0  ;;  %v333_v42 = vpop.f32.mrf.mxu1 }
  0xee   :  { %v169_v45 = vmul.f32 %v123_v41, %v123_v41  ;;  %v154_v49 = vadd.f32 %v153_v44, %v123_v41 }
  0xef   :  { %v321_v46 = vpop.f32.mrf.mxu0  ;;  %v148_v47 = vpop.f32.mrf.mxu1 }
  0xf0   :  { %v177_v52 = vadd.f32 %v176_v48, %v169_v45  ;;  %v174_v1 = vmul.f32 %v148_v47, %v148_v47 }
  0xf1   :  { %v128_v50 = vpop.f32.mrf.mxu0  ;;  %v336_v51 = vpop.f32.mrf.mxu1 }
  0xf2   :  { %v155_v53 = vadd.f32 %v154_v49, %v128_v50  ;;  %v170_v54 = vmul.f32 %v128_v50, %v128_v50 }
  0xf3   :  { %v324_v55 = vpop.f32.mrf.mxu0 }
  0xf4   :  { %v156_v57 = vadd.f32 %v155_v53, %v527_v28  ;;  %v178_v58 = vadd.f32 %v177_v52, %v170_v54 }
  0xf6   :  { %v179_v60 = vadd.f32 %v178_v58, %v171_v56  ;;  %v157_v61 = vadd.f32 %v156_v57, %v531_v32 }
  0xf8   :  { %v158_v62 = vadd.f32 %v157_v61, %v537_v37  ;;  %v180_v0 = vadd.f32 %v179_v60, %v172_v59 }
  0xfa   :  { %v181_v2 = vadd.f32 %v180_v0, %v173_v63  ;;  %v159_v3 = vadd.f32 %v158_v62, %v148_v47 }
  0xfc   :  { %v160_v4 = vrot.slane %v159_v3, 4  ;;  %v182_v5 = vadd.f32 %v181_v2, %v174_v1 }
  0xfe   :  { %v161_v6 = vadd.f32 %v160_v4, %v159_v3  ;;  %v183_v7 = vrot.slane %v182_v5, 4 }
 0x100   :  { %v162_v8 = vrot.slane %v161_v6, 2  ;;  %v184_v9 = vadd.f32 %v183_v7, %v182_v5 }
 0x102   :  { %v163_v10 = vadd.f32 %v162_v8, %v161_v6  ;;  %v185_v11 = vrot.slane %v184_v9, 2 }
 0x104   :  { %v164_v12 = vrot.slane %v163_v10, 1  ;;  %v186_v13 = vadd.f32 %v185_v11, %v184_v9 }
 0x106   :  { %v165_v14 = vadd.f32 %v164_v12, %v163_v10  ;;  %v187_v15 = vrot.slane %v186_v13, 1 }
 0x108   :  { %v188_v16 = vadd.f32 %v187_v15, %v186_v13  ;;  %v189_v17 = vmul.f32 0.013888889, %v165_v14 }
 0x10a   :  { %v190_v18 = vmul.f32 0.013888889, %v188_v16  ;;  %v191_v19 = vmul.f32 %v189_v17, %v189_v17 }
 0x10c   :  { %v192_v20 = vsub.f32 %v190_v18, %v191_v19 }
 0x10e   :  { %v193_v21 = vmax.f32 %v192_v20, 0.0 }
 0x110   :  { %v194_v22 = vadd.f32 1e-05, %v193_v21 }
 0x112   :  { %371 = vrsqrt.f32 %v194_v22 }
 0x11f   :  { %v372_v30 = vpop.eup %371 }
 0x120   :  { %v197_v31 = vmul.f32 %v372_v30, %v196_v25 }
 0x122   :  { %v199_v35 = vmul.f32 %v197_v31, %v189_v17  ;;  %v205_v36 = vrot.slane %v197_v31, %v204_v27 }
 0x124   :  { %v200_v38 = vsub.f32 %v198_v34, %v199_v35  ;;  %v207_v39 = vmul.f32 %v205_v36, %v525_v26  ;;  %v208_v40 = vmul.f32 %v205_v36, %v529_v29  ;;  %v209_v42 = vmul.f32 %v205_v36, %v533_v33 }
 0x125   :  { %v210_v43 = vmul.f32 %v205_v36, %v123_v41  ;;  %v211_v44 = vmul.f32 %v205_v36, %v128_v50  ;;  %v212_v46 = vmul.f32 %v205_v36, %v527_v28  ;;  %v213_v48 = vmul.f32 %v205_v36, %v531_v32 }
 0x126   :  { %v220_v45 = vrot.slane %v200_v38, %v204_v27  ;;  %v214_v49 = vmul.f32 %v205_v36, %v537_v37  ;;  %v215_v51 = vmul.f32 %v205_v36, %v148_v47 }
 0x128   :  { %v222_v52 = vadd.f32 %v220_v45, %v207_v39  ;;  %v223_v53 = vadd.f32 %v220_v45, %v208_v40  ;;  %v224_v54 = vadd.f32 %v220_v45, %v209_v42  ;;  %v225_v55 = vadd.f32 %v220_v45, %v210_v43 }
 0x129   :  { %v226_v56 = vadd.f32 %v220_v45, %v211_v44  ;;  %v227_v26 = vadd.f32 %v220_v45, %v212_v46  ;;  %v228_v57 = vadd.f32 %v220_v45, %v213_v48  ;;  %v229_v29 = vadd.f32 %v220_v45, %v214_v49 }
 0x12a   :  { %v230_v58 = vadd.f32 %v220_v45, %v215_v51  ;;  %v231_v33 = vmax.f32 %v222_v52, 0.0  ;;  %v232_v41 = vmax.f32 %v223_v53, 0.0  ;;  %v233_v50 = vmax.f32 %v224_v54, 0.0 }
 0x12b   :  { %v234_v59 = vmax.f32 %v225_v55, 0.0  ;;  %v235_v60 = vmax.f32 %v226_v56, 0.0  ;;  %v236_v28 = vmax.f32 %v227_v26, 0.0  ;;  %v237_v61 = vmax.f32 %v228_v57, 0.0 }
 0x12c   :  { %v238_v32 = vmax.f32 %v229_v29, 0.0  ;;  %v239_v62 = vmax.f32 %v230_v58, 0.0  ;;  %240 = vst [vmem:[%s598_s4] sm:$0xff] %v231_v33  ;;  %241 = vst [vmem:[%s598_s4 + $0x8] sm:$0xff] %v232_v41 }
 0x12d   :  { %242 = vst [vmem:[%s598_s4 + $0x10] sm:$0xff] %v233_v50  ;;  %243 = vst [vmem:[%s598_s4 + $0x18] sm:$0xff] %v234_v59 }
 0x12e   :  { %244 = vst [vmem:[%s598_s4 + $0x20] sm:$0xff] %v235_v60  ;;  %245 = vst [vmem:[%s598_s4 + $0x28] sm:$0xff] %v236_v28 }
 0x12f   :  { %246 = vst [vmem:[%s598_s4 + $0x30] sm:$0xff] %v237_v61  ;;  %247 = vst [vmem:[%s598_s4 + $0x38] sm:$0xff] %v238_v32 }
 0x130   :  { %248 = vst [vmem:[%s598_s4 + $0x40] sm:$0xff] %v239_v62 }

// kernel: custom_network_q4_forward.57
= control target key start
LH: loop header
LB: loop body
LE: loop exit
PB: predicated region body
PF: predicated region fallthrough
CT: control target
= control target key end

     0   :  { %vm44_vm0 = vcmask 15360   ;;  %s291_s0 = inlined_call_operand.vmem [shape: f32[9,32,2], index: 0, kind: input, shape index: {}]   ;;  %s292_s1 = inlined_call_operand.vmem [shape: f32[32,2], index: 1, kind: output, shape index: {}]  }
   0x1   :  { %v8_v0 = vld [vmem:[%s291_s0] sm:$0xff]  ;;  %v9_v11 = vld [vmem:[%s291_s0 + $0x8] sm:$0xff]  ;;  %v10_v27 = vld [vmem:[%s291_s0 + $0x10] sm:$0xff] }
   0x2   :  { %v12_v1 = vld [vmem:[%s291_s0 + $0x20] sm:$0xff]  ;;  %v45_v4 = vsel %vm44_vm0, %v8_v0, -inf  ;;  %v13_v12 = vld [vmem:[%s291_s0 + $0x28] sm:$0xff]  ;;  %v62_v16 = vsel %vm44_vm0, %v9_v11, -inf  ;;  %v14_v28 = vld [vmem:[%s291_s0 + $0x30] sm:$0xff]  ;;  %v79_v33 = vsel %vm44_vm0, %v10_v27, -inf }
   0x3   :  { %v16_v2 = vld [vmem:[%s291_s0 + $0x40] sm:$0xff]  ;;  %v46_v5 = vsel %vm44_vm0, %v12_v1, -inf  ;;  %v17_v13 = vld [vmem:[%s291_s0 + $0x48] sm:$0xff]  ;;  %v63_v17 = vsel %vm44_vm0, %v13_v12, -inf  ;;  %v18_v29 = vld [vmem:[%s291_s0 + $0x50] sm:$0xff]  ;;  %v80_v34 = vsel %vm44_vm0, %v14_v28, -inf }
   0x4   :  { %v20_v3 = vld [vmem:[%s291_s0 + $0x60] sm:$0xff]  ;;  %v48_v6 = vsel %vm44_vm0, %v16_v2, -inf  ;;  %v47_v9 = vmax.f32 %v45_v4, %v46_v5  ;;  %v21_v15 = vld [vmem:[%s291_s0 + $0x68] sm:$0xff]  ;;  %v65_v18 = vsel %vm44_vm0, %v17_v13, -inf  ;;  %v64_v23 = vmax.f32 %v62_v16, %v63_v17  ;;  %v22_v32 = vld [vmem:[%s291_s0 + $0x70] sm:$0xff] }
   0x5   :  { %v24_v7 = vld [vmem:[%s291_s0 + $0x80] sm:$0xff]  ;;  %v50_v10 = vsel %vm44_vm0, %v20_v3, -inf  ;;  %v25_v22 = vld [vmem:[%s291_s0 + $0x88] sm:$0xff]  ;;  %v67_v26 = vsel %vm44_vm0, %v21_v15, -inf  ;;  %v82_v35 = vsel %vm44_vm0, %v18_v29, -inf  ;;  %v26_v39 = vld [vmem:[%s291_s0 + $0x90] sm:$0xff]  ;;  %v81_v40 = vmax.f32 %v79_v33, %v80_v34 }
   0x6   :  { %v28_v8 = vld [vmem:[%s291_s0 + $0xa0] sm:$0xff]  ;;  %v49_v14 = vmax.f32 %v47_v9, %v48_v6  ;;  %v52_v21 = vsel %vm44_vm0, %v24_v7, -inf  ;;  %v29_v30 = vld [vmem:[%s291_s0 + $0xa8] sm:$0xff]  ;;  %v66_v31 = vmax.f32 %v64_v23, %v65_v18  ;;  %v69_v38 = vsel %vm44_vm0, %v25_v22, -inf  ;;  %v11_v45 = vld [vmem:[%s291_s0 + $0x18] sm:$0xff] }
   0x7   :  { %v32_v19 = vld [vmem:[%s291_s0 + $0xc0] sm:$0xff]  ;;  %v54_v25 = vsel %vm44_vm0, %v28_v8, -inf  ;;  %v33_v37 = vld [vmem:[%s291_s0 + $0xc8] sm:$0xff]  ;;  %v84_v44 = vsel %vm44_vm0, %v22_v32, -inf  ;;  %v15_v46 = vld [vmem:[%s291_s0 + $0x38] sm:$0xff]  ;;  %v71_v50 = vsel %vm44_vm0, %v29_v30, -inf  ;;  %v83_v52 = vmax.f32 %v81_v40, %v82_v35 }
   0x8   :  { %v36_v20 = vld [vmem:[%s291_s0 + $0xe0] sm:$0xff]  ;;  %v51_v24 = vmax.f32 %v49_v14, %v50_v10  ;;  %v56_v41 = vsel %vm44_vm0, %v32_v19, -inf  ;;  %v68_v43 = vmax.f32 %v66_v31, %v67_v26  ;;  %v19_v47 = vld [vmem:[%s291_s0 + $0x58] sm:$0xff]  ;;  %v30_v51 = vld [vmem:[%s291_s0 + $0xb0] sm:$0xff]  ;;  %v96_v54 = vsel %vm44_vm0, %v11_v45, -inf }
   0x9   :  { %v58_v42 = vsel %vm44_vm0, %v36_v20, -inf  ;;  %v40_v48 = vld [vmem:[%s291_s0 + $0x100] sm:$0xff]  ;;  %v23_v53 = vld [vmem:[%s291_s0 + $0x78] sm:$0xff]  ;;  %v37_v55 = vld [vmem:[%s291_s0 + $0xe8] sm:$0xff]  ;;  %v86_v57 = vsel %vm44_vm0, %v26_v39, -inf  ;;  %v97_v58 = vsel %vm44_vm0, %v15_v46, -inf  ;;  %v85_v63 = vmax.f32 %v83_v52, %v84_v44 }
   0xa   :  { %v53_v36 = vmax.f32 %v51_v24, %v52_v21  ;;  %v70_v56 = vmax.f32 %v68_v43, %v69_v38  ;;  %v99_v59 = vsel %vm44_vm0, %v19_v47, -inf  ;;  %v73_v61 = vsel %vm44_vm0, %v33_v37, -inf  ;;  %v34_v62 = vld [vmem:[%s291_s0 + $0xd0] sm:$0xff]  ;;  %v27_v0 = vld [vmem:[%s291_s0 + $0x98] sm:$0xff]  ;;  %v41_v3 = vld [vmem:[%s291_s0 + $0x108] sm:$0xff] }
   0xb   :  { %v98_v1 = vmax.f32 %v96_v54, %v97_v58  ;;  %v60_v2 = vsel %vm44_vm0, %v40_v48, -inf  ;;  %v88_v5 = vsel %vm44_vm0, %v30_v51, -inf  ;;  %v101_v6 = vsel %vm44_vm0, %v23_v53, -inf  ;;  %v38_v9 = vld [vmem:[%s291_s0 + $0xf0] sm:$0xff]  ;;  %v31_v11 = vld [vmem:[%s291_s0 + $0xb8] sm:$0xff] }
   0xc   :  { %v55_v49 = vmax.f32 %v53_v36, %v54_v25  ;;  %v72_v4 = vmax.f32 %v70_v56, %v71_v50  ;;  %v75_v8 = vsel %vm44_vm0, %v37_v55, -inf  ;;  %v87_v10 = vmax.f32 %v85_v63, %v86_v57  ;;  %v42_v18 = vld [vmem:[%s291_s0 + $0x110] sm:$0xff]  ;;  %v35_v20 = vld [vmem:[%s291_s0 + $0xd8] sm:$0xff] }
   0xd   :  { %v100_v12 = vmax.f32 %v98_v1, %v99_v59  ;;  %v90_v14 = vsel %vm44_vm0, %v34_v62, -inf  ;;  %v103_v15 = vsel %vm44_vm0, %v27_v0, -inf  ;;  %v77_v17 = vsel %vm44_vm0, %v41_v3, -inf  ;;  %v39_v26 = vld [vmem:[%s291_s0 + $0xf8] sm:$0xff] }
   0xe   :  { %v57_v60 = vmax.f32 %v55_v49, %v56_v41  ;;  %v74_v13 = vmax.f32 %v72_v4, %v73_v61  ;;  %v89_v19 = vmax.f32 %v87_v10, %v88_v5  ;;  %v92_v23 = vsel %vm44_vm0, %v38_v9, -inf  ;;  %v43_v32 = vld [vmem:[%s291_s0 + $0x118] sm:$0xff] }
   0xf   :  { %v102_v21 = vmax.f32 %v100_v12, %v101_v6  ;;  %v105_v24 = vsel %vm44_vm0, %v31_v11, -inf  ;;  %v94_v29 = vsel %vm44_vm0, %v42_v18, -inf  ;;  %v107_v30 = vsel %vm44_vm0, %v35_v20, -inf }
  0x10   :  { %v59_v7 = vmax.f32 %v57_v60, %v58_v42  ;;  %v76_v22 = vmax.f32 %v74_v13, %v75_v8  ;;  %v91_v25 = vmax.f32 %v89_v19, %v90_v14  ;;  %v109_v34 = vsel %vm44_vm0, %v39_v26, -inf }
  0x11   :  { %v104_v27 = vmax.f32 %v102_v21, %v103_v15  ;;  %v111_v37 = vsel %vm44_vm0, %v43_v32, -inf }
  0x12   :  { %v61_v16 = vmax.f32 %v59_v7, %v60_v2  ;;  %v78_v28 = vmax.f32 %v76_v22, %v77_v17  ;;  %v93_v31 = vmax.f32 %v91_v25, %v92_v23 }
  0x13   :  { %v106_v33 = vmax.f32 %v104_v27, %v105_v24 }
  0x14   :  { %113 = vst.msk [vmem:[%s292_s1] sm:$0xff] %vm44_vm0, %v61_v16  ;;  %114 = vst.msk [vmem:[%s292_s1 + $0x8] sm:$0xff] %vm44_vm0, %v78_v28  ;;  %v95_v35 = vmax.f32 %v93_v31, %v94_v29 }
  0x15   :  { %v108_v36 = vmax.f32 %v106_v33, %v107_v30 }
  0x16   :  { %115 = vst.msk [vmem:[%s292_s1 + $0x10] sm:$0xff] %vm44_vm0, %v95_v35 }
  0x17   :  { %v110_v38 = vmax.f32 %v108_v36, %v109_v34 }
  0x19   :  { %v112_v39 = vmax.f32 %v110_v38, %v111_v37 }
  0x1b   :  { %116 = vst.msk [vmem:[%s292_s1 + $0x18] sm:$0xff] %vm44_vm0, %v112_v39 }

// kernel: custom_network_q4_forward.63
= control target key start
LH: loop header
LB: loop body
LE: loop exit
PB: predicated region body
PF: predicated region fallthrough
CT: control target
= control target key end

     0   :  { %vm44_vm0 = vcmask 80896   ;;  %s291_s0 = inlined_call_operand.vmem [shape: f32[9,32,10], index: 0, kind: input, shape index: {}]   ;;  %s292_s1 = inlined_call_operand.vmem [shape: f32[32,10], index: 1, kind: output, shape index: {}]  }
   0x1   :  { %v8_v0 = vld [vmem:[%s291_s0] sm:$0xff]  ;;  %v9_v11 = vld [vmem:[%s291_s0 + $0x8] sm:$0xff]  ;;  %v10_v27 = vld [vmem:[%s291_s0 + $0x10] sm:$0xff] }
   0x2   :  { %v12_v1 = vld [vmem:[%s291_s0 + $0x20] sm:$0xff]  ;;  %v45_v4 = vsel %vm44_vm0, %v8_v0, -inf  ;;  %v13_v12 = vld [vmem:[%s291_s0 + $0x28] sm:$0xff]  ;;  %v62_v16 = vsel %vm44_vm0, %v9_v11, -inf  ;;  %v14_v28 = vld [vmem:[%s291_s0 + $0x30] sm:$0xff]  ;;  %v79_v33 = vsel %vm44_vm0, %v10_v27, -inf }
   0x3   :  { %v16_v2 = vld [vmem:[%s291_s0 + $0x40] sm:$0xff]  ;;  %v46_v5 = vsel %vm44_vm0, %v12_v1, -inf  ;;  %v17_v13 = vld [vmem:[%s291_s0 + $0x48] sm:$0xff]  ;;  %v63_v17 = vsel %vm44_vm0, %v13_v12, -inf  ;;  %v18_v29 = vld [vmem:[%s291_s0 + $0x50] sm:$0xff]  ;;  %v80_v34 = vsel %vm44_vm0, %v14_v28, -inf }
   0x4   :  { %v20_v3 = vld [vmem:[%s291_s0 + $0x60] sm:$0xff]  ;;  %v48_v6 = vsel %vm44_vm0, %v16_v2, -inf  ;;  %v47_v9 = vmax.f32 %v45_v4, %v46_v5  ;;  %v21_v15 = vld [vmem:[%s291_s0 + $0x68] sm:$0xff]  ;;  %v65_v18 = vsel %vm44_vm0, %v17_v13, -inf  ;;  %v64_v23 = vmax.f32 %v62_v16, %v63_v17  ;;  %v22_v32 = vld [vmem:[%s291_s0 + $0x70] sm:$0xff] }
   0x5   :  { %v24_v7 = vld [vmem:[%s291_s0 + $0x80] sm:$0xff]  ;;  %v50_v10 = vsel %vm44_vm0, %v20_v3, -inf  ;;  %v25_v22 = vld [vmem:[%s291_s0 + $0x88] sm:$0xff]  ;;  %v67_v26 = vsel %vm44_vm0, %v21_v15, -inf  ;;  %v82_v35 = vsel %vm44_vm0, %v18_v29, -inf  ;;  %v26_v39 = vld [vmem:[%s291_s0 + $0x90] sm:$0xff]  ;;  %v81_v40 = vmax.f32 %v79_v33, %v80_v34 }
   0x6   :  { %v28_v8 = vld [vmem:[%s291_s0 + $0xa0] sm:$0xff]  ;;  %v49_v14 = vmax.f32 %v47_v9, %v48_v6  ;;  %v52_v21 = vsel %vm44_vm0, %v24_v7, -inf  ;;  %v29_v30 = vld [vmem:[%s291_s0 + $0xa8] sm:$0xff]  ;;  %v66_v31 = vmax.f32 %v64_v23, %v65_v18  ;;  %v69_v38 = vsel %vm44_vm0, %v25_v22, -inf  ;;  %v11_v45 = vld [vmem:[%s291_s0 + $0x18] sm:$0xff] }
   0x7   :  { %v32_v19 = vld [vmem:[%s291_s0 + $0xc0] sm:$0xff]  ;;  %v54_v25 = vsel %vm44_vm0, %v28_v8, -inf  ;;  %v33_v37 = vld [vmem:[%s291_s0 + $0xc8] sm:$0xff]  ;;  %v84_v44 = vsel %vm44_vm0, %v22_v32, -inf  ;;  %v15_v46 = vld [vmem:[%s291_s0 + $0x38] sm:$0xff]  ;;  %v71_v50 = vsel %vm44_vm0, %v29_v30, -inf  ;;  %v83_v52 = vmax.f32 %v81_v40, %v82_v35 }
   0x8   :  { %v36_v20 = vld [vmem:[%s291_s0 + $0xe0] sm:$0xff]  ;;  %v51_v24 = vmax.f32 %v49_v14, %v50_v10  ;;  %v56_v41 = vsel %vm44_vm0, %v32_v19, -inf  ;;  %v68_v43 = vmax.f32 %v66_v31, %v67_v26  ;;  %v19_v47 = vld [vmem:[%s291_s0 + $0x58] sm:$0xff]  ;;  %v30_v51 = vld [vmem:[%s291_s0 + $0xb0] sm:$0xff]  ;;  %v96_v54 = vsel %vm44_vm0, %v11_v45, -inf }
   0x9   :  { %v58_v42 = vsel %vm44_vm0, %v36_v20, -inf  ;;  %v40_v48 = vld [vmem:[%s291_s0 + $0x100] sm:$0xff]  ;;  %v23_v53 = vld [vmem:[%s291_s0 + $0x78] sm:$0xff]  ;;  %v37_v55 = vld [vmem:[%s291_s0 + $0xe8] sm:$0xff]  ;;  %v86_v57 = vsel %vm44_vm0, %v26_v39, -inf  ;;  %v97_v58 = vsel %vm44_vm0, %v15_v46, -inf  ;;  %v85_v63 = vmax.f32 %v83_v52, %v84_v44 }
   0xa   :  { %v53_v36 = vmax.f32 %v51_v24, %v52_v21  ;;  %v70_v56 = vmax.f32 %v68_v43, %v69_v38  ;;  %v99_v59 = vsel %vm44_vm0, %v19_v47, -inf  ;;  %v73_v61 = vsel %vm44_vm0, %v33_v37, -inf  ;;  %v34_v62 = vld [vmem:[%s291_s0 + $0xd0] sm:$0xff]  ;;  %v27_v0 = vld [vmem:[%s291_s0 + $0x98] sm:$0xff]  ;;  %v41_v3 = vld [vmem:[%s291_s0 + $0x108] sm:$0xff] }
   0xb   :  { %v98_v1 = vmax.f32 %v96_v54, %v97_v58  ;;  %v60_v2 = vsel %vm44_vm0, %v40_v48, -inf  ;;  %v88_v5 = vsel %vm44_vm0, %v30_v51, -inf  ;;  %v101_v6 = vsel %vm44_vm0, %v23_v53, -inf  ;;  %v38_v9 = vld [vmem:[%s291_s0 + $0xf0] sm:$0xff]  ;;  %v31_v11 = vld [vmem:[%s291_s0 + $0xb8] sm:$0xff] }
   0xc   :  { %v55_v49 = vmax.f32 %v53_v36, %v54_v25  ;;  %v72_v4 = vmax.f32 %v70_v56, %v71_v50  ;;  %v75_v8 = vsel %vm44_vm0, %v37_v55, -inf  ;;  %v87_v10 = vmax.f32 %v85_v63, %v86_v57  ;;  %v42_v18 = vld [vmem:[%s291_s0 + $0x110] sm:$0xff]  ;;  %v35_v20 = vld [vmem:[%s291_s0 + $0xd8] sm:$0xff] }
   0xd   :  { %v100_v12 = vmax.f32 %v98_v1, %v99_v59  ;;  %v90_v14 = vsel %vm44_vm0, %v34_v62, -inf  ;;  %v103_v15 = vsel %vm44_vm0, %v27_v0, -inf  ;;  %v77_v17 = vsel %vm44_vm0, %v41_v3, -inf  ;;  %v39_v26 = vld [vmem:[%s291_s0 + $0xf8] sm:$0xff] }
   0xe   :  { %v57_v60 = vmax.f32 %v55_v49, %v56_v41  ;;  %v74_v13 = vmax.f32 %v72_v4, %v73_v61  ;;  %v89_v19 = vmax.f32 %v87_v10, %v88_v5  ;;  %v92_v23 = vsel %vm44_vm0, %v38_v9, -inf  ;;  %v43_v32 = vld [vmem:[%s291_s0 + $0x118] sm:$0xff] }
   0xf   :  { %v102_v21 = vmax.f32 %v100_v12, %v101_v6  ;;  %v105_v24 = vsel %vm44_vm0, %v31_v11, -inf  ;;  %v94_v29 = vsel %vm44_vm0, %v42_v18, -inf  ;;  %v107_v30 = vsel %vm44_vm0, %v35_v20, -inf }
  0x10   :  { %v59_v7 = vmax.f32 %v57_v60, %v58_v42  ;;  %v76_v22 = vmax.f32 %v74_v13, %v75_v8  ;;  %v91_v25 = vmax.f32 %v89_v19, %v90_v14  ;;  %v109_v34 = vsel %vm44_vm0, %v39_v26, -inf }
  0x11   :  { %v104_v27 = vmax.f32 %v102_v21, %v103_v15  ;;  %v111_v37 = vsel %vm44_vm0, %v43_v32, -inf }
  0x12   :  { %v61_v16 = vmax.f32 %v59_v7, %v60_v2  ;;  %v78_v28 = vmax.f32 %v76_v22, %v77_v17  ;;  %v93_v31 = vmax.f32 %v91_v25, %v92_v23 }
  0x13   :  { %v106_v33 = vmax.f32 %v104_v27, %v105_v24 }
  0x14   :  { %113 = vst.msk [vmem:[%s292_s1] sm:$0xff] %vm44_vm0, %v61_v16  ;;  %114 = vst.msk [vmem:[%s292_s1 + $0x8] sm:$0xff] %vm44_vm0, %v78_v28  ;;  %v95_v35 = vmax.f32 %v93_v31, %v94_v29 }
  0x15   :  { %v108_v36 = vmax.f32 %v106_v33, %v107_v30 }
  0x16   :  { %115 = vst.msk [vmem:[%s292_s1 + $0x10] sm:$0xff] %vm44_vm0, %v95_v35 }
  0x17   :  { %v110_v38 = vmax.f32 %v108_v36, %v109_v34 }
  0x19   :  { %v112_v39 = vmax.f32 %v110_v38, %v111_v37 }
  0x1b   :  { %116 = vst.msk [vmem:[%s292_s1 + $0x18] sm:$0xff] %vm44_vm0, %v112_v39 }

// kernel: custom_network_q4_forward.64
= control target key start
LH: loop header
LB: loop body
LE: loop exit
PB: predicated region body
PF: predicated region fallthrough
CT: control target
= control target key end

     0   :  { %v147_v56 = vlaneseq  ;;  %s339_s1 = inlined_call_operand.vmem [shape: f32[256,128], index: 1, kind: input, shape index: {}]   ;;  %s340_s0 = inlined_call_operand.vmem [shape: f32[8,256], index: 0, kind: input, shape index: {}]   ;;  %s341_s2 = inlined_call_operand.vmem [shape: f32[1,128], index: 2, kind: input, shape index: {}]   ;;  %s342_s3 = inlined_call_operand.vmem [shape: f32[1,128], index: 3, kind: input, shape index: {}]   ;;  %s343_s4 = inlined_call_operand.vmem [shape: f32[8,128], index: 4, kind: output, shape index: {}]  }
   0x1   :  { %v50_v0 = vld [vmem:[%s339_s1 + $0xf8] sm:$0xff]  ;;  %v49_v2 = vld [vmem:[%s339_s1 + $0xf0] sm:$0xff]  ;;  %v48_v4 = vld [vmem:[%s339_s1 + $0xe8] sm:$0xff] }
   0x2   :  { %v34_v1 = vld [vmem:[%s339_s1 + $0x78] sm:$0xff]  ;;  %166 = vmatprep.subr.mxu0 %v50_v0  ;;  %v33_v3 = vld [vmem:[%s339_s1 + $0x70] sm:$0xff]  ;;  %v32_v5 = vld [vmem:[%s339_s1 + $0x68] sm:$0xff]  ;;  %v148_v57 = vshrl.u32 %v147_v56, 7 }
   0x3   :  { %167 = vmatpush3.msra.mxu0 %v34_v1  ;;  %v47_v6 = vld [vmem:[%s339_s1 + $0xe0] sm:$0xff]  ;;  %v46_v8 = vld [vmem:[%s339_s1 + $0xd8] sm:$0xff]  ;;  %v45_v10 = vld [vmem:[%s339_s1 + $0xd0] sm:$0xff] }
   0x4   :  { %168 = vmatprep.subr.mxu0 %v49_v2  ;;  %v31_v7 = vld [vmem:[%s339_s1 + $0x60] sm:$0xff]  ;;  %v30_v9 = vld [vmem:[%s339_s1 + $0x58] sm:$0xff]  ;;  %v29_v11 = vld [vmem:[%s339_s1 + $0x50] sm:$0xff]  ;;  %v149_v59 = vsub.s32 0, %v148_v57 }
   0x5   :  { %169 = vmatpush3.msra.mxu0 %v33_v3  ;;  %v44_v12 = vld [vmem:[%s339_s1 + $0xc8] sm:$0xff]  ;;  %v43_v15 = vld [vmem:[%s339_s1 + $0xc0] sm:$0xff]  ;;  %v42_v17 = vld [vmem:[%s339_s1 + $0xb8] sm:$0xff] }
   0x6   :  { %170 = vmatprep.subr.mxu0 %v48_v4  ;;  %v18_v13 = vld [vmem:[%s340_s0 + $0x8] sm:$0xff]  ;;  %v27_v16 = vld [vmem:[%s339_s1 + $0x40] sm:$0xff]  ;;  %v26_v18 = vld [vmem:[%s339_s1 + $0x38] sm:$0xff] }
   0x7   :  { %171 = vmatpush3.msra.mxu0 %v32_v5  ;;  %v28_v14 = vld [vmem:[%s339_s1 + $0x48] sm:$0xff]  ;;  %115 = vmatprep.mubr.f32.mxu0 %v18_v13  ;;  %v41_v19 = vld [vmem:[%s339_s1 + $0xb0] sm:$0xff]  ;;  %v39_v23 = vld [vmem:[%s339_s1 + $0xa0] sm:$0xff] }
   0x8   :  { %172 = vmatprep.subr.mxu0 %v47_v6  ;;  %v25_v20 = vld [vmem:[%s339_s1 + $0x30] sm:$0xff]  ;;  %v40_v21 = vld [vmem:[%s339_s1 + $0xa8] sm:$0xff]  ;;  %v23_v24 = vld [vmem:[%s339_s1 + $0x20] sm:$0xff] }
   0x9   :  { %173 = vmatpush3.msra.mxu0 %v31_v7  ;;  %v24_v22 = vld [vmem:[%s339_s1 + $0x28] sm:$0xff]  ;;  %v38_v25 = vld [vmem:[%s339_s1 + $0x98] sm:$0xff]  ;;  %v37_v27 = vld [vmem:[%s339_s1 + $0x90] sm:$0xff] }
   0xa   :  { %174 = vmatprep.subr.mxu0 %v46_v8  ;;  %v22_v26 = vld [vmem:[%s339_s1 + $0x18] sm:$0xff]  ;;  %v21_v28 = vld [vmem:[%s339_s1 + $0x10] sm:$0xff]  ;;  %v36_v29 = vld [vmem:[%s339_s1 + $0x88] sm:$0xff] }
   0xb   :  { %175 = vmatpush3.msra.mxu0 %v30_v9  ;;  %v20_v30 = vld [vmem:[%s339_s1 + $0x8] sm:$0xff]  ;;  %v35_v31 = vld [vmem:[%s339_s1 + $0x80] sm:$0xff] }
   0xc   :  { %176 = vmatprep.subr.mxu0 %v45_v10  ;;  %v19_v32 = vld [vmem:[%s339_s1] sm:$0xff] }
   0xd   :  { %177 = vmatpush3.msra.mxu0 %v29_v11  ;;  %v17_v33 = vld [vmem:[%s340_s0] sm:$0xff] }
   0xe   :  { %178 = vmatprep.subr.mxu0 %v44_v12  ;;  %v141_v58 = vld [vmem:[%s341_s2] sm:$0x1] }
   0xf   :  { %179 = vmatpush3.msra.mxu0 %v28_v14  ;;  %v143_v62 = vld [vmem:[%s342_s3] sm:$0x1] }
  0x10   :  { %180 = vmatprep.subr.mxu0 %v43_v15 }
  0x11   :  { %181 = vmatpush3.msra.mxu0 %v27_v16 }
  0x12   :  { %182 = vmatprep.subr.mxu0 %v42_v17 }
  0x13   :  { %183 = vmatpush3.msra.mxu0 %v26_v18 }
  0x14   :  { %184 = vmatprep.subr.mxu0 %v41_v19 }
  0x15   :  { %185 = vmatpush3.msra.mxu0 %v25_v20 }
  0x16   :  { %186 = vmatprep.subr.mxu0 %v40_v21 }
  0x17   :  { %187 = vmatpush3.msra.mxu0 %v24_v22 }
  0x18   :  { %188 = vmatprep.subr.mxu0 %v39_v23 }
  0x19   :  { %189 = vmatpush3.msra.mxu0 %v23_v24 }
  0x1a   :  { %190 = vmatprep.subr.mxu0 %v38_v25 }
  0x1b   :  { %191 = vmatpush3.msra.mxu0 %v22_v26 }
  0x1c   :  { %192 = vmatprep.subr.mxu0 %v37_v27 }
  0x1d   :  { %193 = vmatpush3.msra.mxu0 %v21_v28 }
  0x1e   :  { %194 = vmatprep.subr.mxu0 %v36_v29 }
  0x1f   :  { %195 = vmatpush3.msra.mxu0 %v20_v30 }
  0x20   :  { %196 = vmatprep.subr.mxu0 %v35_v31 }
  0x21   :  { %197 = vmatpush3.msra.mxu0 %v19_v32 }
  0x22   :  { %116 = vmatmul.mubr.f32.vlgmr.msra.gmra.mxu0 %v17_v33 }
  0xe2   :  { %v198_v34 = vpop.f32.mrf.mxu0 }
  0xe4   :  { %v199_v35 = vpop.f32.mrf.mxu0 }
  0xe5   :  { %v200_v36 = vadd.f32 %v199_v35, %v198_v34 }
  0xe7   :  { %v121_v37 = vrot.slane %v200_v36, 4  ;;  %v127_v38 = vmul.f32 %v200_v36, %v200_v36 }
  0xe9   :  { %v122_v39 = vadd.f32 %v200_v36, %v121_v37  ;;  %v128_v40 = vrot.slane %v127_v38, 4 }
  0xeb   :  { %v123_v41 = vrot.slane %v122_v39, 2  ;;  %v129_v42 = vadd.f32 %v128_v40, %v127_v38 }
  0xed   :  { %v124_v43 = vadd.f32 %v123_v41, %v122_v39  ;;  %v130_v44 = vrot.slane %v129_v42, 2 }
  0xef   :  { %v125_v45 = vrot.slane %v124_v43, 1  ;;  %v131_v46 = vadd.f32 %v130_v44, %v129_v42 }
  0xf1   :  { %v126_v47 = vadd.f32 %v125_v45, %v124_v43  ;;  %v132_v48 = vrot.slane %v131_v46, 1 }
  0xf3   :  { %v133_v49 = vadd.f32 %v132_v48, %v131_v46  ;;  %v134_v50 = vmul.f32 0.125, %v126_v47 }
  0xf5   :  { %v135_v51 = vmul.f32 0.125, %v133_v49  ;;  %v136_v52 = vmul.f32 %v134_v50, %v134_v50 }
  0xf7   :  { %v137_v53 = vsub.f32 %v135_v51, %v136_v52 }
  0xf9   :  { %v138_v54 = vmax.f32 %v137_v53, 0.0 }
  0xfb   :  { %v139_v55 = vadd.f32 1e-05, %v138_v54 }
  0xfd   :  { %201 = vrsqrt.f32 %v139_v55 }
 0x10a   :  { %v202_v60 = vpop.eup %201 }
 0x10b   :  { %v142_v61 = vmul.f32 %v202_v60, %v141_v58 }
 0x10d   :  { %v144_v63 = vmul.f32 %v142_v61, %v134_v50  ;;  %v150_v0 = vrot.slane %v142_v61, %v149_v59 }
 0x10f   :  { %v145_v1 = vsub.f32 %v143_v62, %v144_v63  ;;  %v152_v2 = vmul.f32 %v200_v36, %v150_v0 }
 0x111   :  { %v157_v3 = vrot.slane %v145_v1, %v149_v59 }
 0x113   :  { %v159_v4 = vadd.f32 %v157_v3, %v152_v2 }
 0x115   :  { %v160_v5 = vmax.f32 %v159_v4, 0.0 }
 0x117   :  { %161 = vst [vmem:[%s343_s4] sm:$0xff] %v160_v5 }

// kernel: custom_network_q4_forward.65
= control target key start
LH: loop header
LB: loop body
LE: loop exit
PB: predicated region body
PF: predicated region fallthrough
CT: control target
= control target key end

     0   :  { %v204_v0 = vmov 0.0   ;;  %vm205_vm0 = vmmov 0   ;;  %v130_v39 = vlaneseq  ;;  %s291_s1 = inlined_call_operand.vmem [shape: f32[128,128], index: 1, kind: input, shape index: {}]   ;;  %s292_s0 = inlined_call_operand.vmem [shape: f32[8,128], index: 0, kind: input, shape index: {}]   ;;  %s293_s2 = inlined_call_operand.vmem [shape: f32[1,128], index: 2, kind: input, shape index: {}]   ;;  %s294_s3 = inlined_call_operand.vmem [shape: f32[1,128], index: 3, kind: input, shape index: {}]   ;;  %s295_s4 = inlined_call_operand.vmem [shape: f32[8,128], index: 4, kind: output, shape index: {}]  }
   0x1   :  { %165 = vmatprep.subr.mxu0 %v204_v0  ;;  %v33_v1 = vld [vmem:[%s291_s1 + $0x78] sm:$0xff]  ;;  %v32_v2 = vld [vmem:[%s291_s1 + $0x70] sm:$0xff]  ;;  %197 = vmatprep.mubr.msk.f32.mxu0 %vm205_vm0, %v204_v0  ;;  %v31_v3 = vld [vmem:[%s291_s1 + $0x68] sm:$0xff] }
   0x2   :  { %166 = vmatpush3.msra.mxu0 %v33_v1  ;;  %v30_v4 = vld [vmem:[%s291_s1 + $0x60] sm:$0xff]  ;;  %v29_v5 = vld [vmem:[%s291_s1 + $0x58] sm:$0xff]  ;;  %v28_v6 = vld [vmem:[%s291_s1 + $0x50] sm:$0xff]  ;;  %v131_v40 = vshrl.u32 %v130_v39, 7 }
   0x3   :  { %167 = vmatprep.subr.mxu0 %v204_v0  ;;  %v27_v7 = vld [vmem:[%s291_s1 + $0x48] sm:$0xff]  ;;  %v26_v8 = vld [vmem:[%s291_s1 + $0x40] sm:$0xff]  ;;  %v25_v9 = vld [vmem:[%s291_s1 + $0x38] sm:$0xff] }
   0x4   :  { %168 = vmatpush3.msra.mxu0 %v32_v2  ;;  %v24_v10 = vld [vmem:[%s291_s1 + $0x30] sm:$0xff]  ;;  %v23_v11 = vld [vmem:[%s291_s1 + $0x28] sm:$0xff]  ;;  %v22_v12 = vld [vmem:[%s291_s1 + $0x20] sm:$0xff]  ;;  %v132_v42 = vsub.s32 0, %v131_v40 }
   0x5   :  { %169 = vmatprep.subr.mxu0 %v204_v0  ;;  %v21_v13 = vld [vmem:[%s291_s1 + $0x18] sm:$0xff]  ;;  %v20_v14 = vld [vmem:[%s291_s1 + $0x10] sm:$0xff]  ;;  %v19_v15 = vld [vmem:[%s291_s1 + $0x8] sm:$0xff] }
   0x6   :  { %170 = vmatpush3.msra.mxu0 %v31_v3  ;;  %v18_v16 = vld [vmem:[%s291_s1] sm:$0xff] }
   0x7   :  { %171 = vmatprep.subr.mxu0 %v204_v0  ;;  %v17_v17 = vld [vmem:[%s292_s0] sm:$0xff] }
   0x8   :  { %172 = vmatpush3.msra.mxu0 %v30_v4  ;;  %v124_v41 = vld [vmem:[%s293_s2] sm:$0x1] }
   0x9   :  { %173 = vmatprep.subr.mxu0 %v204_v0  ;;  %v126_v45 = vld [vmem:[%s294_s3] sm:$0x1] }
   0xa   :  { %174 = vmatpush3.msra.mxu0 %v29_v5 }
   0xb   :  { %175 = vmatprep.subr.mxu0 %v204_v0 }
   0xc   :  { %176 = vmatpush3.msra.mxu0 %v28_v6 }
   0xd   :  { %177 = vmatprep.subr.mxu0 %v204_v0 }
   0xe   :  { %178 = vmatpush3.msra.mxu0 %v27_v7 }
   0xf   :  { %179 = vmatprep.subr.mxu0 %v204_v0 }
  0x10   :  { %180 = vmatpush3.msra.mxu0 %v26_v8 }
  0x11   :  { %181 = vmatprep.subr.mxu0 %v204_v0 }
  0x12   :  { %182 = vmatpush3.msra.mxu0 %v25_v9 }
  0x13   :  { %183 = vmatprep.subr.mxu0 %v204_v0 }
  0x14   :  { %184 = vmatpush3.msra.mxu0 %v24_v10 }
  0x15   :  { %185 = vmatprep.subr.mxu0 %v204_v0 }
  0x16   :  { %186 = vmatpush3.msra.mxu0 %v23_v11 }
  0x17   :  { %187 = vmatprep.subr.mxu0 %v204_v0 }
  0x18   :  { %188 = vmatpush3.msra.mxu0 %v22_v12 }
  0x19   :  { %189 = vmatprep.subr.mxu0 %v204_v0 }
  0x1a   :  { %190 = vmatpush3.msra.mxu0 %v21_v13 }
  0x1b   :  { %191 = vmatprep.subr.mxu0 %v204_v0 }
  0x1c   :  { %192 = vmatpush3.msra.mxu0 %v20_v14 }
  0x1d   :  { %193 = vmatprep.subr.mxu0 %v204_v0 }
  0x1e   :  { %194 = vmatpush3.msra.mxu0 %v19_v15 }
  0x1f   :  { %195 = vmatprep.subr.mxu0 %v204_v0 }
  0x20   :  { %196 = vmatpush3.msra.mxu0 %v18_v16 }
  0x21   :  { %198 = vmatmul.mubr.f32.vlgmr.msra.gmra.mxu0 %v17_v17 }
  0xe1   :  { %v100_v18 = vpop.f32.mrf.mxu0 }
  0xe2   :  { %v104_v19 = vrot.slane %v100_v18, 4  ;;  %v110_v20 = vmul.f32 %v100_v18, %v100_v18 }
  0xe3   :  { %v199_v21 = vpop.f32.mrf.mxu0 }
  0xe4   :  { %v105_v22 = vadd.f32 %v104_v19, %v100_v18  ;;  %v111_v23 = vrot.slane %v110_v20, 4 }
  0xe6   :  { %v106_v24 = vrot.slane %v105_v22, 2  ;;  %v112_v25 = vadd.f32 %v111_v23, %v110_v20 }
  0xe8   :  { %v107_v26 = vadd.f32 %v106_v24, %v105_v22  ;;  %v113_v27 = vrot.slane %v112_v25, 2 }
  0xea   :  { %v108_v28 = vrot.slane %v107_v26, 1  ;;  %v114_v29 = vadd.f32 %v113_v27, %v112_v25 }
  0xec   :  { %v109_v30 = vadd.f32 %v108_v28, %v107_v26  ;;  %v115_v31 = vrot.slane %v114_v29, 1 }
  0xee   :  { %v116_v32 = vadd.f32 %v115_v31, %v114_v29  ;;  %v117_v33 = vmul.f32 0.125, %v109_v30 }
  0xf0   :  { %v118_v34 = vmul.f32 0.125, %v116_v32  ;;  %v119_v35 = vmul.f32 %v117_v33, %v117_v33 }
  0xf2   :  { %v120_v36 = vsub.f32 %v118_v34, %v119_v35 }
  0xf4   :  { %v121_v37 = vmax.f32 %v120_v36, 0.0 }
  0xf6   :  { %v122_v38 = vadd.f32 1e-05, %v121_v37 }
  0xf8   :  { %202 = vrsqrt.f32 %v122_v38 }
 0x105   :  { %v203_v43 = vpop.eup %202 }
 0x106   :  { %v125_v44 = vmul.f32 %v203_v43, %v124_v41 }
 0x108   :  { %v127_v46 = vmul.f32 %v125_v44, %v117_v33  ;;  %v133_v47 = vrot.slane %v125_v44, %v132_v42 }
 0x10a   :  { %v128_v48 = vsub.f32 %v126_v45, %v127_v46  ;;  %v135_v49 = vmul.f32 %v133_v47, %v100_v18 }
 0x10c   :  { %v140_v50 = vrot.slane %v128_v48, %v132_v42 }
 0x10e   :  { %v142_v51 = vadd.f32 %v140_v50, %v135_v49 }
 0x110   :  { %143 = vst [vmem:[%s295_s4] sm:$0xff] %v142_v51 }

// kernel: custom_network_q4_forward.66
= control target key start
LH: loop header
LB: loop body
LE: loop exit
PB: predicated region body
PF: predicated region fallthrough
CT: control target
= control target key end

     0   :  { %v210_v0 = vmov 0.0   ;;  %vm211_vm0 = vmmov 0   ;;  %v133_v39 = vlaneseq  ;;  %s305_s1 = inlined_call_operand.vmem [shape: f32[128,128], index: 1, kind: input, shape index: {}]   ;;  %s306_s0 = inlined_call_operand.vmem [shape: f32[8,128], index: 0, kind: input, shape index: {}]   ;;  %s307_s2 = inlined_call_operand.vmem [shape: f32[1,128], index: 2, kind: input, shape index: {}]   ;;  %s308_s3 = inlined_call_operand.vmem [shape: f32[1,128], index: 3, kind: input, shape index: {}]   ;;  %s309_s4 = inlined_call_operand.vmem [shape: f32[8,128], index: 4, kind: input, shape index: {}]   ;;  %s310_s5 = inlined_call_operand.vmem [shape: f32[8,128], index: 5, kind: output, shape index: {}]  }
   0x1   :  { %171 = vmatprep.subr.mxu0 %v210_v0  ;;  %v36_v1 = vld [vmem:[%s305_s1 + $0x78] sm:$0xff]  ;;  %v35_v2 = vld [vmem:[%s305_s1 + $0x70] sm:$0xff]  ;;  %203 = vmatprep.mubr.msk.f32.mxu0 %vm211_vm0, %v210_v0  ;;  %v34_v3 = vld [vmem:[%s305_s1 + $0x68] sm:$0xff] }
   0x2   :  { %172 = vmatpush3.msra.mxu0 %v36_v1  ;;  %v33_v4 = vld [vmem:[%s305_s1 + $0x60] sm:$0xff]  ;;  %v32_v5 = vld [vmem:[%s305_s1 + $0x58] sm:$0xff]  ;;  %v31_v6 = vld [vmem:[%s305_s1 + $0x50] sm:$0xff]  ;;  %v134_v40 = vshrl.u32 %v133_v39, 7 }
   0x3   :  { %173 = vmatprep.subr.mxu0 %v210_v0  ;;  %v30_v7 = vld [vmem:[%s305_s1 + $0x48] sm:$0xff]  ;;  %v29_v8 = vld [vmem:[%s305_s1 + $0x40] sm:$0xff]  ;;  %v28_v9 = vld [vmem:[%s305_s1 + $0x38] sm:$0xff] }
   0x4   :  { %174 = vmatpush3.msra.mxu0 %v35_v2  ;;  %v27_v10 = vld [vmem:[%s305_s1 + $0x30] sm:$0xff]  ;;  %v26_v11 = vld [vmem:[%s305_s1 + $0x28] sm:$0xff]  ;;  %v25_v12 = vld [vmem:[%s305_s1 + $0x20] sm:$0xff]  ;;  %v135_v42 = vsub.s32 0, %v134_v40 }
   0x5   :  { %175 = vmatprep.subr.mxu0 %v210_v0  ;;  %v24_v13 = vld [vmem:[%s305_s1 + $0x18] sm:$0xff]  ;;  %v23_v14 = vld [vmem:[%s305_s1 + $0x10] sm:$0xff]  ;;  %v22_v15 = vld [vmem:[%s305_s1 + $0x8] sm:$0xff] }
   0x6   :  { %176 = vmatpush3.msra.mxu0 %v34_v3  ;;  %v21_v16 = vld [vmem:[%s305_s1] sm:$0xff] }
   0x7   :  { %177 = vmatprep.subr.mxu0 %v210_v0  ;;  %v20_v17 = vld [vmem:[%s306_s0] sm:$0xff] }
   0x8   :  { %178 = vmatpush3.msra.mxu0 %v33_v4  ;;  %v127_v41 = vld [vmem:[%s307_s2] sm:$0x1] }
   0x9   :  { %179 = vmatprep.subr.mxu0 %v210_v0  ;;  %v129_v45 = vld [vmem:[%s308_s3] sm:$0x1] }
   0xa   :  { %180 = vmatpush3.msra.mxu0 %v32_v5  ;;  %v146_v51 = vld [vmem:[%s309_s4] sm:$0xff] }
   0xb   :  { %181 = vmatprep.subr.mxu0 %v210_v0 }
   0xc   :  { %182 = vmatpush3.msra.mxu0 %v31_v6 }
   0xd   :  { %183 = vmatprep.subr.mxu0 %v210_v0 }
   0xe   :  { %184 = vmatpush3.msra.mxu0 %v30_v7 }
   0xf   :  { %185 = vmatprep.subr.mxu0 %v210_v0 }
  0x10   :  { %186 = vmatpush3.msra.mxu0 %v29_v8 }
  0x11   :  { %187 = vmatprep.subr.mxu0 %v210_v0 }
  0x12   :  { %188 = vmatpush3.msra.mxu0 %v28_v9 }
  0x13   :  { %189 = vmatprep.subr.mxu0 %v210_v0 }
  0x14   :  { %190 = vmatpush3.msra.mxu0 %v27_v10 }
  0x15   :  { %191 = vmatprep.subr.mxu0 %v210_v0 }
  0x16   :  { %192 = vmatpush3.msra.mxu0 %v26_v11 }
  0x17   :  { %193 = vmatprep.subr.mxu0 %v210_v0 }
  0x18   :  { %194 = vmatpush3.msra.mxu0 %v25_v12 }
  0x19   :  { %195 = vmatprep.subr.mxu0 %v210_v0 }
  0x1a   :  { %196 = vmatpush3.msra.mxu0 %v24_v13 }
  0x1b   :  { %197 = vmatprep.subr.mxu0 %v210_v0 }
  0x1c   :  { %198 = vmatpush3.msra.mxu0 %v23_v14 }
  0x1d   :  { %199 = vmatprep.subr.mxu0 %v210_v0 }
  0x1e   :  { %200 = vmatpush3.msra.mxu0 %v22_v15 }
  0x1f   :  { %201 = vmatprep.subr.mxu0 %v210_v0 }
  0x20   :  { %202 = vmatpush3.msra.mxu0 %v21_v16 }
  0x21   :  { %204 = vmatmul.mubr.f32.vlgmr.msra.gmra.mxu0 %v20_v17 }
  0xe1   :  { %v103_v18 = vpop.f32.mrf.mxu0 }
  0xe2   :  { %v107_v19 = vrot.slane %v103_v18, 4  ;;  %v113_v20 = vmul.f32 %v103_v18, %v103_v18 }
  0xe3   :  { %v205_v21 = vpop.f32.mrf.mxu0 }
  0xe4   :  { %v108_v22 = vadd.f32 %v107_v19, %v103_v18  ;;  %v114_v23 = vrot.slane %v113_v20, 4 }
  0xe6   :  { %v109_v24 = vrot.slane %v108_v22, 2  ;;  %v115_v25 = vadd.f32 %v114_v23, %v113_v20 }
  0xe8   :  { %v110_v26 = vadd.f32 %v109_v24, %v108_v22  ;;  %v116_v27 = vrot.slane %v115_v25, 2 }
  0xea   :  { %v111_v28 = vrot.slane %v110_v26, 1  ;;  %v117_v29 = vadd.f32 %v116_v27, %v115_v25 }
  0xec   :  { %v112_v30 = vadd.f32 %v111_v28, %v110_v26  ;;  %v118_v31 = vrot.slane %v117_v29, 1 }
  0xee   :  { %v119_v32 = vadd.f32 %v118_v31, %v117_v29  ;;  %v120_v33 = vmul.f32 0.125, %v112_v30 }
  0xf0   :  { %v121_v34 = vmul.f32 0.125, %v119_v32  ;;  %v122_v35 = vmul.f32 %v120_v33, %v120_v33 }
  0xf2   :  { %v123_v36 = vsub.f32 %v121_v34, %v122_v35 }
  0xf4   :  { %v124_v37 = vmax.f32 %v123_v36, 0.0 }
  0xf6   :  { %v125_v38 = vadd.f32 1e-05, %v124_v37 }
  0xf8   :  { %208 = vrsqrt.f32 %v125_v38 }
 0x105   :  { %v209_v43 = vpop.eup %208 }
 0x106   :  { %v128_v44 = vmul.f32 %v209_v43, %v127_v41 }
 0x108   :  { %v130_v46 = vmul.f32 %v128_v44, %v120_v33  ;;  %v136_v47 = vrot.slane %v128_v44, %v135_v42 }
 0x10a   :  { %v131_v48 = vsub.f32 %v129_v45, %v130_v46  ;;  %v138_v49 = vmul.f32 %v136_v47, %v103_v18 }
 0x10c   :  { %v143_v50 = vrot.slane %v131_v48, %v135_v42 }
 0x10e   :  { %v145_v52 = vadd.f32 %v143_v50, %v138_v49 }
 0x110   :  { %v147_v53 = vadd.f32 %v146_v51, %v145_v52 }
 0x112   :  { %v148_v54 = vmax.f32 %v147_v53, 0.0 }
 0x114   :  { %149 = vst [vmem:[%s310_s5] sm:$0xff] %v148_v54 }

// kernel: custom_network_q4_forward.69
= control target key start
LH: loop header
LB: loop body
LE: loop exit
PB: predicated region body
PF: predicated region fallthrough
CT: control target
= control target key end

     0   :  { %v205_v0 = vmov 0.0   ;;  %vm206_vm0 = vmmov 0   ;;  %v130_v39 = vlaneseq  ;;  %s292_s1 = inlined_call_operand.vmem [shape: f32[128,128], index: 1, kind: input, shape index: {}]   ;;  %s293_s0 = inlined_call_operand.vmem [shape: f32[8,128], index: 0, kind: input, shape index: {}]   ;;  %s294_s2 = inlined_call_operand.vmem [shape: f32[1,128], index: 2, kind: input, shape index: {}]   ;;  %s295_s3 = inlined_call_operand.vmem [shape: f32[1,128], index: 3, kind: input, shape index: {}]   ;;  %s296_s4 = inlined_call_operand.vmem [shape: f32[8,128], index: 4, kind: output, shape index: {}]  }
   0x1   :  { %166 = vmatprep.subr.mxu0 %v205_v0  ;;  %v33_v1 = vld [vmem:[%s292_s1 + $0x78] sm:$0xff]  ;;  %v32_v2 = vld [vmem:[%s292_s1 + $0x70] sm:$0xff]  ;;  %198 = vmatprep.mubr.msk.f32.mxu0 %vm206_vm0, %v205_v0  ;;  %v31_v3 = vld [vmem:[%s292_s1 + $0x68] sm:$0xff] }
   0x2   :  { %167 = vmatpush3.msra.mxu0 %v33_v1  ;;  %v30_v4 = vld [vmem:[%s292_s1 + $0x60] sm:$0xff]  ;;  %v29_v5 = vld [vmem:[%s292_s1 + $0x58] sm:$0xff]  ;;  %v28_v6 = vld [vmem:[%s292_s1 + $0x50] sm:$0xff]  ;;  %v131_v40 = vshrl.u32 %v130_v39, 7 }
   0x3   :  { %168 = vmatprep.subr.mxu0 %v205_v0  ;;  %v27_v7 = vld [vmem:[%s292_s1 + $0x48] sm:$0xff]  ;;  %v26_v8 = vld [vmem:[%s292_s1 + $0x40] sm:$0xff]  ;;  %v25_v9 = vld [vmem:[%s292_s1 + $0x38] sm:$0xff] }
   0x4   :  { %169 = vmatpush3.msra.mxu0 %v32_v2  ;;  %v24_v10 = vld [vmem:[%s292_s1 + $0x30] sm:$0xff]  ;;  %v23_v11 = vld [vmem:[%s292_s1 + $0x28] sm:$0xff]  ;;  %v22_v12 = vld [vmem:[%s292_s1 + $0x20] sm:$0xff]  ;;  %v132_v42 = vsub.s32 0, %v131_v40 }
   0x5   :  { %170 = vmatprep.subr.mxu0 %v205_v0  ;;  %v21_v13 = vld [vmem:[%s292_s1 + $0x18] sm:$0xff]  ;;  %v20_v14 = vld [vmem:[%s292_s1 + $0x10] sm:$0xff]  ;;  %v19_v15 = vld [vmem:[%s292_s1 + $0x8] sm:$0xff] }
   0x6   :  { %171 = vmatpush3.msra.mxu0 %v31_v3  ;;  %v18_v16 = vld [vmem:[%s292_s1] sm:$0xff] }
   0x7   :  { %172 = vmatprep.subr.mxu0 %v205_v0  ;;  %v17_v17 = vld [vmem:[%s293_s0] sm:$0xff] }
   0x8   :  { %173 = vmatpush3.msra.mxu0 %v30_v4  ;;  %v124_v41 = vld [vmem:[%s294_s2] sm:$0x1] }
   0x9   :  { %174 = vmatprep.subr.mxu0 %v205_v0  ;;  %v126_v45 = vld [vmem:[%s295_s3] sm:$0x1] }
   0xa   :  { %175 = vmatpush3.msra.mxu0 %v29_v5 }
   0xb   :  { %176 = vmatprep.subr.mxu0 %v205_v0 }
   0xc   :  { %177 = vmatpush3.msra.mxu0 %v28_v6 }
   0xd   :  { %178 = vmatprep.subr.mxu0 %v205_v0 }
   0xe   :  { %179 = vmatpush3.msra.mxu0 %v27_v7 }
   0xf   :  { %180 = vmatprep.subr.mxu0 %v205_v0 }
  0x10   :  { %181 = vmatpush3.msra.mxu0 %v26_v8 }
  0x11   :  { %182 = vmatprep.subr.mxu0 %v205_v0 }
  0x12   :  { %183 = vmatpush3.msra.mxu0 %v25_v9 }
  0x13   :  { %184 = vmatprep.subr.mxu0 %v205_v0 }
  0x14   :  { %185 = vmatpush3.msra.mxu0 %v24_v10 }
  0x15   :  { %186 = vmatprep.subr.mxu0 %v205_v0 }
  0x16   :  { %187 = vmatpush3.msra.mxu0 %v23_v11 }
  0x17   :  { %188 = vmatprep.subr.mxu0 %v205_v0 }
  0x18   :  { %189 = vmatpush3.msra.mxu0 %v22_v12 }
  0x19   :  { %190 = vmatprep.subr.mxu0 %v205_v0 }
  0x1a   :  { %191 = vmatpush3.msra.mxu0 %v21_v13 }
  0x1b   :  { %192 = vmatprep.subr.mxu0 %v205_v0 }
  0x1c   :  { %193 = vmatpush3.msra.mxu0 %v20_v14 }
  0x1d   :  { %194 = vmatprep.subr.mxu0 %v205_v0 }
  0x1e   :  { %195 = vmatpush3.msra.mxu0 %v19_v15 }
  0x1f   :  { %196 = vmatprep.subr.mxu0 %v205_v0 }
  0x20   :  { %197 = vmatpush3.msra.mxu0 %v18_v16 }
  0x21   :  { %199 = vmatmul.mubr.f32.vlgmr.msra.gmra.mxu0 %v17_v17 }
  0xe1   :  { %v100_v18 = vpop.f32.mrf.mxu0 }
  0xe2   :  { %v104_v19 = vrot.slane %v100_v18, 4  ;;  %v110_v20 = vmul.f32 %v100_v18, %v100_v18 }
  0xe3   :  { %v200_v21 = vpop.f32.mrf.mxu0 }
  0xe4   :  { %v105_v22 = vadd.f32 %v104_v19, %v100_v18  ;;  %v111_v23 = vrot.slane %v110_v20, 4 }
  0xe6   :  { %v106_v24 = vrot.slane %v105_v22, 2  ;;  %v112_v25 = vadd.f32 %v111_v23, %v110_v20 }
  0xe8   :  { %v107_v26 = vadd.f32 %v106_v24, %v105_v22  ;;  %v113_v27 = vrot.slane %v112_v25, 2 }
  0xea   :  { %v108_v28 = vrot.slane %v107_v26, 1  ;;  %v114_v29 = vadd.f32 %v113_v27, %v112_v25 }
  0xec   :  { %v109_v30 = vadd.f32 %v108_v28, %v107_v26  ;;  %v115_v31 = vrot.slane %v114_v29, 1 }
  0xee   :  { %v116_v32 = vadd.f32 %v115_v31, %v114_v29  ;;  %v117_v33 = vmul.f32 0.125, %v109_v30 }
  0xf0   :  { %v118_v34 = vmul.f32 0.125, %v116_v32  ;;  %v119_v35 = vmul.f32 %v117_v33, %v117_v33 }
  0xf2   :  { %v120_v36 = vsub.f32 %v118_v34, %v119_v35 }
  0xf4   :  { %v121_v37 = vmax.f32 %v120_v36, 0.0 }
  0xf6   :  { %v122_v38 = vadd.f32 1e-05, %v121_v37 }
  0xf8   :  { %203 = vrsqrt.f32 %v122_v38 }
 0x105   :  { %v204_v43 = vpop.eup %203 }
 0x106   :  { %v125_v44 = vmul.f32 %v204_v43, %v124_v41 }
 0x108   :  { %v127_v46 = vmul.f32 %v125_v44, %v117_v33  ;;  %v133_v47 = vrot.slane %v125_v44, %v132_v42 }
 0x10a   :  { %v128_v48 = vsub.f32 %v126_v45, %v127_v46  ;;  %v135_v49 = vmul.f32 %v133_v47, %v100_v18 }
 0x10c   :  { %v140_v50 = vrot.slane %v128_v48, %v132_v42 }
 0x10e   :  { %v142_v51 = vadd.f32 %v140_v50, %v135_v49 }
 0x110   :  { %v143_v52 = vmax.f32 %v142_v51, 0.0 }
 0x112   :  { %144 = vst [vmem:[%s296_s4] sm:$0xff] %v143_v52 }

// kernel: custom_network_q4_forward.72
= control target key start
LH: loop header
LB: loop body
LE: loop exit
PB: predicated region body
PF: predicated region fallthrough
CT: control target
= control target key end

     0   :  { %vm17_vm0 = vcmask 80896   ;;  %s90_s0 = inlined_call_operand.vmem [shape: f32[9,8,10], index: 0, kind: input, shape index: {}]   ;;  %s91_s1 = inlined_call_operand.vmem [shape: f32[8,10], index: 1, kind: output, shape index: {}]  }
   0x1   :  { %v8_v0 = vld [vmem:[%s90_s0] sm:$0xff]  ;;  %v9_v1 = vld [vmem:[%s90_s0 + $0x8] sm:$0xff]  ;;  %v10_v2 = vld [vmem:[%s90_s0 + $0x10] sm:$0xff] }
   0x2   :  { %v11_v3 = vld [vmem:[%s90_s0 + $0x18] sm:$0xff]  ;;  %v12_v4 = vld [vmem:[%s90_s0 + $0x20] sm:$0xff]  ;;  %v13_v5 = vld [vmem:[%s90_s0 + $0x28] sm:$0xff]  ;;  %v18_v6 = vsel %vm17_vm0, %v8_v0, -inf  ;;  %v19_v7 = vsel %vm17_vm0, %v9_v1, -inf  ;;  %v20_v8 = vsel %vm17_vm0, %v10_v2, -inf }
   0x3   :  { %v14_v9 = vld [vmem:[%s90_s0 + $0x30] sm:$0xff]  ;;  %v15_v10 = vld [vmem:[%s90_s0 + $0x38] sm:$0xff]  ;;  %v16_v11 = vld [vmem:[%s90_s0 + $0x40] sm:$0xff]  ;;  %v21_v12 = vsel %vm17_vm0, %v11_v3, -inf  ;;  %v22_v13 = vsel %vm17_vm0, %v12_v4, -inf  ;;  %v24_v14 = vsel %vm17_vm0, %v13_v5, -inf }
   0x4   :  { %v23_v15 = vmax.f32 %v18_v6, %v22_v13  ;;  %v25_v16 = vmax.f32 %v19_v7, %v24_v14  ;;  %v26_v17 = vsel %vm17_vm0, %v14_v9, -inf  ;;  %v28_v18 = vsel %vm17_vm0, %v15_v10, -inf }
   0x5   :  { %v27_v19 = vmax.f32 %v20_v8, %v26_v17  ;;  %v29_v20 = vmax.f32 %v21_v12, %v28_v18  ;;  %v30_v21 = vsel %vm17_vm0, %v16_v11, -inf }
   0x6   :  { %v31_v22 = vmax.f32 %v23_v15, %v30_v21 }
   0x7   :  { %v33_v23 = vmax.f32 %v27_v19, %v29_v20 }
   0x8   :  { %v32_v24 = vmax.f32 %v31_v22, %v25_v16 }
   0xa   :  { %v34_v25 = vmax.f32 %v32_v24, %v33_v23 }
   0xc   :  { %35 = vst.msk [vmem:[%s91_s1] sm:$0xff] %vm17_vm0, %v34_v25 }

// kernel: custom_network_q4_forward.73
= control target key start
LH: loop header
LB: loop body
LE: loop exit
PB: predicated region body
PF: predicated region fallthrough
CT: control target
= control target key end

     0   :  { %v147_v56 = vlaneseq  ;;  %s339_s1 = inlined_call_operand.vmem [shape: f32[256,128], index: 1, kind: input, shape index: {}]   ;;  %s340_s0 = inlined_call_operand.vmem [shape: f32[8,256], index: 0, kind: input, shape index: {}]   ;;  %s341_s2 = inlined_call_operand.vmem [shape: f32[1,128], index: 2, kind: input, shape index: {}]   ;;  %s342_s3 = inlined_call_operand.vmem [shape: f32[1,128], index: 3, kind: input, shape index: {}]   ;;  %s343_s4 = inlined_call_operand.vmem [shape: f32[8,128], index: 4, kind: output, shape index: {}]  }
   0x1   :  { %v50_v0 = vld [vmem:[%s339_s1 + $0xf8] sm:$0xff]  ;;  %v49_v2 = vld [vmem:[%s339_s1 + $0xf0] sm:$0xff]  ;;  %v48_v4 = vld [vmem:[%s339_s1 + $0xe8] sm:$0xff] }
   0x2   :  { %v34_v1 = vld [vmem:[%s339_s1 + $0x78] sm:$0xff]  ;;  %166 = vmatprep.subr.mxu0 %v50_v0  ;;  %v33_v3 = vld [vmem:[%s339_s1 + $0x70] sm:$0xff]  ;;  %v32_v5 = vld [vmem:[%s339_s1 + $0x68] sm:$0xff]  ;;  %v148_v57 = vshrl.u32 %v147_v56, 7 }
   0x3   :  { %167 = vmatpush3.msra.mxu0 %v34_v1  ;;  %v47_v6 = vld [vmem:[%s339_s1 + $0xe0] sm:$0xff]  ;;  %v46_v8 = vld [vmem:[%s339_s1 + $0xd8] sm:$0xff]  ;;  %v45_v10 = vld [vmem:[%s339_s1 + $0xd0] sm:$0xff] }
   0x4   :  { %168 = vmatprep.subr.mxu0 %v49_v2  ;;  %v31_v7 = vld [vmem:[%s339_s1 + $0x60] sm:$0xff]  ;;  %v30_v9 = vld [vmem:[%s339_s1 + $0x58] sm:$0xff]  ;;  %v29_v11 = vld [vmem:[%s339_s1 + $0x50] sm:$0xff]  ;;  %v149_v59 = vsub.s32 0, %v148_v57 }
   0x5   :  { %169 = vmatpush3.msra.mxu0 %v33_v3  ;;  %v44_v12 = vld [vmem:[%s339_s1 + $0xc8] sm:$0xff]  ;;  %v43_v15 = vld [vmem:[%s339_s1 + $0xc0] sm:$0xff]  ;;  %v42_v17 = vld [vmem:[%s339_s1 + $0xb8] sm:$0xff] }
   0x6   :  { %170 = vmatprep.subr.mxu0 %v48_v4  ;;  %v18_v13 = vld [vmem:[%s340_s0 + $0x8] sm:$0xff]  ;;  %v27_v16 = vld [vmem:[%s339_s1 + $0x40] sm:$0xff]  ;;  %v26_v18 = vld [vmem:[%s339_s1 + $0x38] sm:$0xff] }
   0x7   :  { %171 = vmatpush3.msra.mxu0 %v32_v5  ;;  %v28_v14 = vld [vmem:[%s339_s1 + $0x48] sm:$0xff]  ;;  %115 = vmatprep.mubr.f32.mxu0 %v18_v13  ;;  %v41_v19 = vld [vmem:[%s339_s1 + $0xb0] sm:$0xff]  ;;  %v39_v23 = vld [vmem:[%s339_s1 + $0xa0] sm:$0xff] }
   0x8   :  { %172 = vmatprep.subr.mxu0 %v47_v6  ;;  %v25_v20 = vld [vmem:[%s339_s1 + $0x30] sm:$0xff]  ;;  %v40_v21 = vld [vmem:[%s339_s1 + $0xa8] sm:$0xff]  ;;  %v23_v24 = vld [vmem:[%s339_s1 + $0x20] sm:$0xff] }
   0x9   :  { %173 = vmatpush3.msra.mxu0 %v31_v7  ;;  %v24_v22 = vld [vmem:[%s339_s1 + $0x28] sm:$0xff]  ;;  %v38_v25 = vld [vmem:[%s339_s1 + $0x98] sm:$0xff]  ;;  %v37_v27 = vld [vmem:[%s339_s1 + $0x90] sm:$0xff] }
   0xa   :  { %174 = vmatprep.subr.mxu0 %v46_v8  ;;  %v22_v26 = vld [vmem:[%s339_s1 + $0x18] sm:$0xff]  ;;  %v21_v28 = vld [vmem:[%s339_s1 + $0x10] sm:$0xff]  ;;  %v36_v29 = vld [vmem:[%s339_s1 + $0x88] sm:$0xff] }
   0xb   :  { %175 = vmatpush3.msra.mxu0 %v30_v9  ;;  %v20_v30 = vld [vmem:[%s339_s1 + $0x8] sm:$0xff]  ;;  %v35_v31 = vld [vmem:[%s339_s1 + $0x80] sm:$0xff] }
   0xc   :  { %176 = vmatprep.subr.mxu0 %v45_v10  ;;  %v19_v32 = vld [vmem:[%s339_s1] sm:$0xff] }
   0xd   :  { %177 = vmatpush3.msra.mxu0 %v29_v11  ;;  %v17_v33 = vld [vmem:[%s340_s0] sm:$0xff] }
   0xe   :  { %178 = vmatprep.subr.mxu0 %v44_v12  ;;  %v141_v58 = vld [vmem:[%s341_s2] sm:$0x1] }
   0xf   :  { %179 = vmatpush3.msra.mxu0 %v28_v14  ;;  %v143_v62 = vld [vmem:[%s342_s3] sm:$0x1] }
  0x10   :  { %180 = vmatprep.subr.mxu0 %v43_v15 }
  0x11   :  { %181 = vmatpush3.msra.mxu0 %v27_v16 }
  0x12   :  { %182 = vmatprep.subr.mxu0 %v42_v17 }
  0x13   :  { %183 = vmatpush3.msra.mxu0 %v26_v18 }
  0x14   :  { %184 = vmatprep.subr.mxu0 %v41_v19 }
  0x15   :  { %185 = vmatpush3.msra.mxu0 %v25_v20 }
  0x16   :  { %186 = vmatprep.subr.mxu0 %v40_v21 }
  0x17   :  { %187 = vmatpush3.msra.mxu0 %v24_v22 }
  0x18   :  { %188 = vmatprep.subr.mxu0 %v39_v23 }
  0x19   :  { %189 = vmatpush3.msra.mxu0 %v23_v24 }
  0x1a   :  { %190 = vmatprep.subr.mxu0 %v38_v25 }
  0x1b   :  { %191 = vmatpush3.msra.mxu0 %v22_v26 }
  0x1c   :  { %192 = vmatprep.subr.mxu0 %v37_v27 }
  0x1d   :  { %193 = vmatpush3.msra.mxu0 %v21_v28 }
  0x1e   :  { %194 = vmatprep.subr.mxu0 %v36_v29 }
  0x1f   :  { %195 = vmatpush3.msra.mxu0 %v20_v30 }
  0x20   :  { %196 = vmatprep.subr.mxu0 %v35_v31 }
  0x21   :  { %197 = vmatpush3.msra.mxu0 %v19_v32 }
  0x22   :  { %116 = vmatmul.mubr.f32.vlgmr.msra.gmra.mxu0 %v17_v33 }
  0xe2   :  { %v198_v34 = vpop.f32.mrf.mxu0 }
  0xe4   :  { %v199_v35 = vpop.f32.mrf.mxu0 }
  0xe5   :  { %v200_v36 = vadd.f32 %v199_v35, %v198_v34 }
  0xe7   :  { %v121_v37 = vrot.slane %v200_v36, 4  ;;  %v127_v38 = vmul.f32 %v200_v36, %v200_v36 }
  0xe9   :  { %v122_v39 = vadd.f32 %v200_v36, %v121_v37  ;;  %v128_v40 = vrot.slane %v127_v38, 4 }
  0xeb   :  { %v123_v41 = vrot.slane %v122_v39, 2  ;;  %v129_v42 = vadd.f32 %v128_v40, %v127_v38 }
  0xed   :  { %v124_v43 = vadd.f32 %v123_v41, %v122_v39  ;;  %v130_v44 = vrot.slane %v129_v42, 2 }
  0xef   :  { %v125_v45 = vrot.slane %v124_v43, 1  ;;  %v131_v46 = vadd.f32 %v130_v44, %v129_v42 }
  0xf1   :  { %v126_v47 = vadd.f32 %v125_v45, %v124_v43  ;;  %v132_v48 = vrot.slane %v131_v46, 1 }
  0xf3   :  { %v133_v49 = vadd.f32 %v132_v48, %v131_v46  ;;  %v134_v50 = vmul.f32 0.5, %v126_v47 }
  0xf5   :  { %v135_v51 = vmul.f32 0.5, %v133_v49  ;;  %v136_v52 = vmul.f32 %v134_v50, %v134_v50 }
  0xf7   :  { %v137_v53 = vsub.f32 %v135_v51, %v136_v52 }
  0xf9   :  { %v138_v54 = vmax.f32 %v137_v53, 0.0 }
  0xfb   :  { %v139_v55 = vadd.f32 1e-05, %v138_v54 }
  0xfd   :  { %201 = vrsqrt.f32 %v139_v55 }
 0x10a   :  { %v202_v60 = vpop.eup %201 }
 0x10b   :  { %v142_v61 = vmul.f32 %v202_v60, %v141_v58 }
 0x10d   :  { %v144_v63 = vmul.f32 %v142_v61, %v134_v50  ;;  %v150_v0 = vrot.slane %v142_v61, %v149_v59 }
 0x10f   :  { %v145_v1 = vsub.f32 %v143_v62, %v144_v63  ;;  %v152_v2 = vmul.f32 %v200_v36, %v150_v0 }
 0x111   :  { %v157_v3 = vrot.slane %v145_v1, %v149_v59 }
 0x113   :  { %v159_v4 = vadd.f32 %v157_v3, %v152_v2 }
 0x115   :  { %v160_v5 = vmax.f32 %v159_v4, 0.0 }
 0x117   :  { %161 = vst [vmem:[%s343_s4] sm:$0xff] %v160_v5 }

// kernel: custom_network_q4_forward.74
= control target key start
LH: loop header
LB: loop body
LE: loop exit
PB: predicated region body
PF: predicated region fallthrough
CT: control target
= control target key end

     0   :  { %v204_v0 = vmov 0.0   ;;  %vm205_vm0 = vmmov 0   ;;  %v130_v39 = vlaneseq  ;;  %s291_s1 = inlined_call_operand.vmem [shape: f32[128,128], index: 1, kind: input, shape index: {}]   ;;  %s292_s0 = inlined_call_operand.vmem [shape: f32[8,128], index: 0, kind: input, shape index: {}]   ;;  %s293_s2 = inlined_call_operand.vmem [shape: f32[1,128], index: 2, kind: input, shape index: {}]   ;;  %s294_s3 = inlined_call_operand.vmem [shape: f32[1,128], index: 3, kind: input, shape index: {}]   ;;  %s295_s4 = inlined_call_operand.vmem [shape: f32[8,128], index: 4, kind: output, shape index: {}]  }
   0x1   :  { %165 = vmatprep.subr.mxu0 %v204_v0  ;;  %v33_v1 = vld [vmem:[%s291_s1 + $0x78] sm:$0xff]  ;;  %v32_v2 = vld [vmem:[%s291_s1 + $0x70] sm:$0xff]  ;;  %197 = vmatprep.mubr.msk.f32.mxu0 %vm205_vm0, %v204_v0  ;;  %v31_v3 = vld [vmem:[%s291_s1 + $0x68] sm:$0xff] }
   0x2   :  { %166 = vmatpush3.msra.mxu0 %v33_v1  ;;  %v30_v4 = vld [vmem:[%s291_s1 + $0x60] sm:$0xff]  ;;  %v29_v5 = vld [vmem:[%s291_s1 + $0x58] sm:$0xff]  ;;  %v28_v6 = vld [vmem:[%s291_s1 + $0x50] sm:$0xff]  ;;  %v131_v40 = vshrl.u32 %v130_v39, 7 }
   0x3   :  { %167 = vmatprep.subr.mxu0 %v204_v0  ;;  %v27_v7 = vld [vmem:[%s291_s1 + $0x48] sm:$0xff]  ;;  %v26_v8 = vld [vmem:[%s291_s1 + $0x40] sm:$0xff]  ;;  %v25_v9 = vld [vmem:[%s291_s1 + $0x38] sm:$0xff] }
   0x4   :  { %168 = vmatpush3.msra.mxu0 %v32_v2  ;;  %v24_v10 = vld [vmem:[%s291_s1 + $0x30] sm:$0xff]  ;;  %v23_v11 = vld [vmem:[%s291_s1 + $0x28] sm:$0xff]  ;;  %v22_v12 = vld [vmem:[%s291_s1 + $0x20] sm:$0xff]  ;;  %v132_v42 = vsub.s32 0, %v131_v40 }
   0x5   :  { %169 = vmatprep.subr.mxu0 %v204_v0  ;;  %v21_v13 = vld [vmem:[%s291_s1 + $0x18] sm:$0xff]  ;;  %v20_v14 = vld [vmem:[%s291_s1 + $0x10] sm:$0xff]  ;;  %v19_v15 = vld [vmem:[%s291_s1 + $0x8] sm:$0xff] }
   0x6   :  { %170 = vmatpush3.msra.mxu0 %v31_v3  ;;  %v18_v16 = vld [vmem:[%s291_s1] sm:$0xff] }
   0x7   :  { %171 = vmatprep.subr.mxu0 %v204_v0  ;;  %v17_v17 = vld [vmem:[%s292_s0] sm:$0xff] }
   0x8   :  { %172 = vmatpush3.msra.mxu0 %v30_v4  ;;  %v124_v41 = vld [vmem:[%s293_s2] sm:$0x1] }
   0x9   :  { %173 = vmatprep.subr.mxu0 %v204_v0  ;;  %v126_v45 = vld [vmem:[%s294_s3] sm:$0x1] }
   0xa   :  { %174 = vmatpush3.msra.mxu0 %v29_v5 }
   0xb   :  { %175 = vmatprep.subr.mxu0 %v204_v0 }
   0xc   :  { %176 = vmatpush3.msra.mxu0 %v28_v6 }
   0xd   :  { %177 = vmatprep.subr.mxu0 %v204_v0 }
   0xe   :  { %178 = vmatpush3.msra.mxu0 %v27_v7 }
   0xf   :  { %179 = vmatprep.subr.mxu0 %v204_v0 }
  0x10   :  { %180 = vmatpush3.msra.mxu0 %v26_v8 }
  0x11   :  { %181 = vmatprep.subr.mxu0 %v204_v0 }
  0x12   :  { %182 = vmatpush3.msra.mxu0 %v25_v9 }
  0x13   :  { %183 = vmatprep.subr.mxu0 %v204_v0 }
  0x14   :  { %184 = vmatpush3.msra.mxu0 %v24_v10 }
  0x15   :  { %185 = vmatprep.subr.mxu0 %v204_v0 }
  0x16   :  { %186 = vmatpush3.msra.mxu0 %v23_v11 }
  0x17   :  { %187 = vmatprep.subr.mxu0 %v204_v0 }
  0x18   :  { %188 = vmatpush3.msra.mxu0 %v22_v12 }
  0x19   :  { %189 = vmatprep.subr.mxu0 %v204_v0 }
  0x1a   :  { %190 = vmatpush3.msra.mxu0 %v21_v13 }
  0x1b   :  { %191 = vmatprep.subr.mxu0 %v204_v0 }
  0x1c   :  { %192 = vmatpush3.msra.mxu0 %v20_v14 }
  0x1d   :  { %193 = vmatprep.subr.mxu0 %v204_v0 }
  0x1e   :  { %194 = vmatpush3.msra.mxu0 %v19_v15 }
  0x1f   :  { %195 = vmatprep.subr.mxu0 %v204_v0 }
  0x20   :  { %196 = vmatpush3.msra.mxu0 %v18_v16 }
  0x21   :  { %198 = vmatmul.mubr.f32.vlgmr.msra.gmra.mxu0 %v17_v17 }
  0xe1   :  { %v100_v18 = vpop.f32.mrf.mxu0 }
  0xe2   :  { %v104_v19 = vrot.slane %v100_v18, 4  ;;  %v110_v20 = vmul.f32 %v100_v18, %v100_v18 }
  0xe3   :  { %v199_v21 = vpop.f32.mrf.mxu0 }
  0xe4   :  { %v105_v22 = vadd.f32 %v104_v19, %v100_v18  ;;  %v111_v23 = vrot.slane %v110_v20, 4 }
  0xe6   :  { %v106_v24 = vrot.slane %v105_v22, 2  ;;  %v112_v25 = vadd.f32 %v111_v23, %v110_v20 }
  0xe8   :  { %v107_v26 = vadd.f32 %v106_v24, %v105_v22  ;;  %v113_v27 = vrot.slane %v112_v25, 2 }
  0xea   :  { %v108_v28 = vrot.slane %v107_v26, 1  ;;  %v114_v29 = vadd.f32 %v113_v27, %v112_v25 }
  0xec   :  { %v109_v30 = vadd.f32 %v108_v28, %v107_v26  ;;  %v115_v31 = vrot.slane %v114_v29, 1 }
  0xee   :  { %v116_v32 = vadd.f32 %v115_v31, %v114_v29  ;;  %v117_v33 = vmul.f32 0.5, %v109_v30 }
  0xf0   :  { %v118_v34 = vmul.f32 0.5, %v116_v32  ;;  %v119_v35 = vmul.f32 %v117_v33, %v117_v33 }
  0xf2   :  { %v120_v36 = vsub.f32 %v118_v34, %v119_v35 }
  0xf4   :  { %v121_v37 = vmax.f32 %v120_v36, 0.0 }
  0xf6   :  { %v122_v38 = vadd.f32 1e-05, %v121_v37 }
  0xf8   :  { %202 = vrsqrt.f32 %v122_v38 }
 0x105   :  { %v203_v43 = vpop.eup %202 }
 0x106   :  { %v125_v44 = vmul.f32 %v203_v43, %v124_v41 }
 0x108   :  { %v127_v46 = vmul.f32 %v125_v44, %v117_v33  ;;  %v133_v47 = vrot.slane %v125_v44, %v132_v42 }
 0x10a   :  { %v128_v48 = vsub.f32 %v126_v45, %v127_v46  ;;  %v135_v49 = vmul.f32 %v133_v47, %v100_v18 }
 0x10c   :  { %v140_v50 = vrot.slane %v128_v48, %v132_v42 }
 0x10e   :  { %v142_v51 = vadd.f32 %v140_v50, %v135_v49 }
 0x110   :  { %143 = vst [vmem:[%s295_s4] sm:$0xff] %v142_v51 }

// kernel: custom_network_q4_forward.75
= control target key start
LH: loop header
LB: loop body
LE: loop exit
PB: predicated region body
PF: predicated region fallthrough
CT: control target
= control target key end

     0   :  { %v210_v0 = vmov 0.0   ;;  %vm211_vm0 = vmmov 0   ;;  %v133_v39 = vlaneseq  ;;  %s305_s1 = inlined_call_operand.vmem [shape: f32[128,128], index: 1, kind: input, shape index: {}]   ;;  %s306_s0 = inlined_call_operand.vmem [shape: f32[8,128], index: 0, kind: input, shape index: {}]   ;;  %s307_s2 = inlined_call_operand.vmem [shape: f32[1,128], index: 2, kind: input, shape index: {}]   ;;  %s308_s3 = inlined_call_operand.vmem [shape: f32[1,128], index: 3, kind: input, shape index: {}]   ;;  %s309_s4 = inlined_call_operand.vmem [shape: f32[8,128], index: 4, kind: input, shape index: {}]   ;;  %s310_s5 = inlined_call_operand.vmem [shape: f32[8,128], index: 5, kind: output, shape index: {}]  }
   0x1   :  { %171 = vmatprep.subr.mxu0 %v210_v0  ;;  %v36_v1 = vld [vmem:[%s305_s1 + $0x78] sm:$0xff]  ;;  %v35_v2 = vld [vmem:[%s305_s1 + $0x70] sm:$0xff]  ;;  %203 = vmatprep.mubr.msk.f32.mxu0 %vm211_vm0, %v210_v0  ;;  %v34_v3 = vld [vmem:[%s305_s1 + $0x68] sm:$0xff] }
   0x2   :  { %172 = vmatpush3.msra.mxu0 %v36_v1  ;;  %v33_v4 = vld [vmem:[%s305_s1 + $0x60] sm:$0xff]  ;;  %v32_v5 = vld [vmem:[%s305_s1 + $0x58] sm:$0xff]  ;;  %v31_v6 = vld [vmem:[%s305_s1 + $0x50] sm:$0xff]  ;;  %v134_v40 = vshrl.u32 %v133_v39, 7 }
   0x3   :  { %173 = vmatprep.subr.mxu0 %v210_v0  ;;  %v30_v7 = vld [vmem:[%s305_s1 + $0x48] sm:$0xff]  ;;  %v29_v8 = vld [vmem:[%s305_s1 + $0x40] sm:$0xff]  ;;  %v28_v9 = vld [vmem:[%s305_s1 + $0x38] sm:$0xff] }
   0x4   :  { %174 = vmatpush3.msra.mxu0 %v35_v2  ;;  %v27_v10 = vld [vmem:[%s305_s1 + $0x30] sm:$0xff]  ;;  %v26_v11 = vld [vmem:[%s305_s1 + $0x28] sm:$0xff]  ;;  %v25_v12 = vld [vmem:[%s305_s1 + $0x20] sm:$0xff]  ;;  %v135_v42 = vsub.s32 0, %v134_v40 }
   0x5   :  { %175 = vmatprep.subr.mxu0 %v210_v0  ;;  %v24_v13 = vld [vmem:[%s305_s1 + $0x18] sm:$0xff]  ;;  %v23_v14 = vld [vmem:[%s305_s1 + $0x10] sm:$0xff]  ;;  %v22_v15 = vld [vmem:[%s305_s1 + $0x8] sm:$0xff] }
   0x6   :  { %176 = vmatpush3.msra.mxu0 %v34_v3  ;;  %v21_v16 = vld [vmem:[%s305_s1] sm:$0xff] }
   0x7   :  { %177 = vmatprep.subr.mxu0 %v210_v0  ;;  %v20_v17 = vld [vmem:[%s306_s0] sm:$0xff] }
   0x8   :  { %178 = vmatpush3.msra.mxu0 %v33_v4  ;;  %v127_v41 = vld [vmem:[%s307_s2] sm:$0x1] }
   0x9   :  { %179 = vmatprep.subr.mxu0 %v210_v0  ;;  %v129_v45 = vld [vmem:[%s308_s3] sm:$0x1] }
   0xa   :  { %180 = vmatpush3.msra.mxu0 %v32_v5  ;;  %v146_v51 = vld [vmem:[%s309_s4] sm:$0xff] }
   0xb   :  { %181 = vmatprep.subr.mxu0 %v210_v0 }
   0xc   :  { %182 = vmatpush3.msra.mxu0 %v31_v6 }
   0xd   :  { %183 = vmatprep.subr.mxu0 %v210_v0 }
   0xe   :  { %184 = vmatpush3.msra.mxu0 %v30_v7 }
   0xf   :  { %185 = vmatprep.subr.mxu0 %v210_v0 }
  0x10   :  { %186 = vmatpush3.msra.mxu0 %v29_v8 }
  0x11   :  { %187 = vmatprep.subr.mxu0 %v210_v0 }
  0x12   :  { %188 = vmatpush3.msra.mxu0 %v28_v9 }
  0x13   :  { %189 = vmatprep.subr.mxu0 %v210_v0 }
  0x14   :  { %190 = vmatpush3.msra.mxu0 %v27_v10 }
  0x15   :  { %191 = vmatprep.subr.mxu0 %v210_v0 }
  0x16   :  { %192 = vmatpush3.msra.mxu0 %v26_v11 }
  0x17   :  { %193 = vmatprep.subr.mxu0 %v210_v0 }
  0x18   :  { %194 = vmatpush3.msra.mxu0 %v25_v12 }
  0x19   :  { %195 = vmatprep.subr.mxu0 %v210_v0 }
  0x1a   :  { %196 = vmatpush3.msra.mxu0 %v24_v13 }
  0x1b   :  { %197 = vmatprep.subr.mxu0 %v210_v0 }
  0x1c   :  { %198 = vmatpush3.msra.mxu0 %v23_v14 }
  0x1d   :  { %199 = vmatprep.subr.mxu0 %v210_v0 }
  0x1e   :  { %200 = vmatpush3.msra.mxu0 %v22_v15 }
  0x1f   :  { %201 = vmatprep.subr.mxu0 %v210_v0 }
  0x20   :  { %202 = vmatpush3.msra.mxu0 %v21_v16 }
  0x21   :  { %204 = vmatmul.mubr.f32.vlgmr.msra.gmra.mxu0 %v20_v17 }
  0xe1   :  { %v103_v18 = vpop.f32.mrf.mxu0 }
  0xe2   :  { %v107_v19 = vrot.slane %v103_v18, 4  ;;  %v113_v20 = vmul.f32 %v103_v18, %v103_v18 }
  0xe3   :  { %v205_v21 = vpop.f32.mrf.mxu0 }
  0xe4   :  { %v108_v22 = vadd.f32 %v107_v19, %v103_v18  ;;  %v114_v23 = vrot.slane %v113_v20, 4 }
  0xe6   :  { %v109_v24 = vrot.slane %v108_v22, 2  ;;  %v115_v25 = vadd.f32 %v114_v23, %v113_v20 }
  0xe8   :  { %v110_v26 = vadd.f32 %v109_v24, %v108_v22  ;;  %v116_v27 = vrot.slane %v115_v25, 2 }
  0xea   :  { %v111_v28 = vrot.slane %v110_v26, 1  ;;  %v117_v29 = vadd.f32 %v116_v27, %v115_v25 }
  0xec   :  { %v112_v30 = vadd.f32 %v111_v28, %v110_v26  ;;  %v118_v31 = vrot.slane %v117_v29, 1 }
  0xee   :  { %v119_v32 = vadd.f32 %v118_v31, %v117_v29  ;;  %v120_v33 = vmul.f32 0.5, %v112_v30 }
  0xf0   :  { %v121_v34 = vmul.f32 0.5, %v119_v32  ;;  %v122_v35 = vmul.f32 %v120_v33, %v120_v33 }
  0xf2   :  { %v123_v36 = vsub.f32 %v121_v34, %v122_v35 }
  0xf4   :  { %v124_v37 = vmax.f32 %v123_v36, 0.0 }
  0xf6   :  { %v125_v38 = vadd.f32 1e-05, %v124_v37 }
  0xf8   :  { %208 = vrsqrt.f32 %v125_v38 }
 0x105   :  { %v209_v43 = vpop.eup %208 }
 0x106   :  { %v128_v44 = vmul.f32 %v209_v43, %v127_v41 }
 0x108   :  { %v130_v46 = vmul.f32 %v128_v44, %v120_v33  ;;  %v136_v47 = vrot.slane %v128_v44, %v135_v42 }
 0x10a   :  { %v131_v48 = vsub.f32 %v129_v45, %v130_v46  ;;  %v138_v49 = vmul.f32 %v136_v47, %v103_v18 }
 0x10c   :  { %v143_v50 = vrot.slane %v131_v48, %v135_v42 }
 0x10e   :  { %v145_v52 = vadd.f32 %v143_v50, %v138_v49 }
 0x110   :  { %v147_v53 = vadd.f32 %v146_v51, %v145_v52 }
 0x112   :  { %v148_v54 = vmax.f32 %v147_v53, 0.0 }
 0x114   :  { %149 = vst [vmem:[%s310_s5] sm:$0xff] %v148_v54 }

// kernel: custom_network_q4_forward.79
= control target key start
LH: loop header
LB: loop body
LE: loop exit
PB: predicated region body
PF: predicated region fallthrough
CT: control target
= control target key end

     0   :  { %v271_v0 = vmov 0.0   ;;  %vm272_vm0 = vmmov 0   ;;  %v148_v51 = vlaneseq  ;;  %s405_s1 = inlined_call_operand.vmem [shape: f32[128,128], index: 1, kind: input, shape index: {}]   ;;  %s406_s0 = inlined_call_operand.vmem [shape: f32[24,128], index: 0, kind: input, shape index: {}]   ;;  %s407_s2 = inlined_call_operand.vmem [shape: f32[1,128], index: 2, kind: input, shape index: {}]   ;;  %s408_s3 = inlined_call_operand.vmem [shape: f32[1,128], index: 3, kind: input, shape index: {}]   ;;  %s409_s4 = inlined_call_operand.vmem [shape: f32[24,128], index: 4, kind: output, shape index: {}]  }
   0x1   :  { %194 = vmatprep.subr.mxu0 %v271_v0  ;;  %235 = vmatprep.subr.mxu1 %v271_v0  ;;  %v35_v1 = vld [vmem:[%s405_s1 + $0x78] sm:$0xff]  ;;  %v34_v2 = vld [vmem:[%s405_s1 + $0x70] sm:$0xff]  ;;  %v33_v3 = vld [vmem:[%s405_s1 + $0x68] sm:$0xff] }
   0x2   :  { %195 = vmatpush3.msra.mxu0 %v35_v1  ;;  %251 = vmatpush3.msra.mxu1 %v35_v1  ;;  %v32_v4 = vld [vmem:[%s405_s1 + $0x60] sm:$0xff]  ;;  %v31_v5 = vld [vmem:[%s405_s1 + $0x58] sm:$0xff]  ;;  %v30_v6 = vld [vmem:[%s405_s1 + $0x50] sm:$0xff]  ;;  %v149_v52 = vshrl.u32 %v148_v51, 7 }
   0x3   :  { %196 = vmatprep.subr.mxu0 %v271_v0  ;;  %236 = vmatprep.subr.mxu1 %v271_v0  ;;  %v29_v7 = vld [vmem:[%s405_s1 + $0x48] sm:$0xff]  ;;  %v28_v8 = vld [vmem:[%s405_s1 + $0x40] sm:$0xff]  ;;  %v27_v9 = vld [vmem:[%s405_s1 + $0x38] sm:$0xff] }
   0x4   :  { %197 = vmatpush3.msra.mxu0 %v34_v2  ;;  %252 = vmatpush3.msra.mxu1 %v34_v2  ;;  %v26_v10 = vld [vmem:[%s405_s1 + $0x30] sm:$0xff]  ;;  %v25_v11 = vld [vmem:[%s405_s1 + $0x28] sm:$0xff]  ;;  %v24_v12 = vld [vmem:[%s405_s1 + $0x20] sm:$0xff]  ;;  %v150_v54 = vsub.s32 0, %v149_v52 }
   0x5   :  { %198 = vmatprep.subr.mxu0 %v271_v0  ;;  %237 = vmatprep.subr.mxu1 %v271_v0  ;;  %v23_v13 = vld [vmem:[%s405_s1 + $0x18] sm:$0xff]  ;;  %v22_v14 = vld [vmem:[%s405_s1 + $0x10] sm:$0xff]  ;;  %v21_v15 = vld [vmem:[%s405_s1 + $0x8] sm:$0xff] }
   0x6   :  { %199 = vmatpush3.msra.mxu0 %v33_v3  ;;  %253 = vmatpush3.msra.mxu1 %v33_v3  ;;  %v20_v16 = vld [vmem:[%s405_s1] sm:$0xff]  ;;  %v18_v18 = vld [vmem:[%s406_s0 + $0x8] sm:$0xff]  ;;  %v19_v19 = vld [vmem:[%s406_s0 + $0x10] sm:$0xff] }
   0x7   :  { %200 = vmatprep.subr.mxu0 %v271_v0  ;;  %238 = vmatprep.subr.mxu1 %v271_v0  ;;  %v17_v17 = vld [vmem:[%s406_s0] sm:$0xff] }
   0x8   :  { %201 = vmatpush3.msra.mxu0 %v32_v4  ;;  %254 = vmatpush3.msra.mxu1 %v32_v4  ;;  %v142_v53 = vld [vmem:[%s407_s2] sm:$0x1] }
   0x9   :  { %202 = vmatprep.subr.mxu0 %v271_v0  ;;  %239 = vmatprep.subr.mxu1 %v271_v0  ;;  %v144_v57 = vld [vmem:[%s408_s3] sm:$0x1] }
   0xa   :  { %203 = vmatpush3.msra.mxu0 %v31_v5  ;;  %255 = vmatpush3.msra.mxu1 %v31_v5 }
   0xb   :  { %204 = vmatprep.subr.mxu0 %v271_v0  ;;  %240 = vmatprep.subr.mxu1 %v271_v0 }
   0xc   :  { %205 = vmatpush3.msra.mxu0 %v30_v6  ;;  %256 = vmatpush3.msra.mxu1 %v30_v6 }
   0xd   :  { %206 = vmatprep.subr.mxu0 %v271_v0  ;;  %241 = vmatprep.subr.mxu1 %v271_v0 }
   0xe   :  { %207 = vmatpush3.msra.mxu0 %v29_v7  ;;  %257 = vmatpush3.msra.mxu1 %v29_v7 }
   0xf   :  { %208 = vmatprep.subr.mxu0 %v271_v0  ;;  %242 = vmatprep.subr.mxu1 %v271_v0 }
  0x10   :  { %209 = vmatpush3.msra.mxu0 %v28_v8  ;;  %258 = vmatpush3.msra.mxu1 %v28_v8 }
  0x11   :  { %210 = vmatprep.subr.mxu0 %v271_v0  ;;  %243 = vmatprep.subr.mxu1 %v271_v0 }
  0x12   :  { %211 = vmatpush3.msra.mxu0 %v27_v9  ;;  %259 = vmatpush3.msra.mxu1 %v27_v9 }
  0x13   :  { %212 = vmatprep.subr.mxu0 %v271_v0  ;;  %244 = vmatprep.subr.mxu1 %v271_v0 }
  0x14   :  { %213 = vmatpush3.msra.mxu0 %v26_v10  ;;  %260 = vmatpush3.msra.mxu1 %v26_v10 }
  0x15   :  { %214 = vmatprep.subr.mxu0 %v271_v0  ;;  %245 = vmatprep.subr.mxu1 %v271_v0 }
  0x16   :  { %215 = vmatpush3.msra.mxu0 %v25_v11  ;;  %261 = vmatpush3.msra.mxu1 %v25_v11 }
  0x17   :  { %216 = vmatprep.subr.mxu0 %v271_v0  ;;  %246 = vmatprep.subr.mxu1 %v271_v0 }
  0x18   :  { %217 = vmatpush3.msra.mxu0 %v24_v12  ;;  %262 = vmatpush3.msra.mxu1 %v24_v12 }
  0x19   :  { %218 = vmatprep.subr.mxu0 %v271_v0  ;;  %247 = vmatprep.subr.mxu1 %v271_v0 }
  0x1a   :  { %219 = vmatpush3.msra.mxu0 %v23_v13  ;;  %263 = vmatpush3.msra.mxu1 %v23_v13 }
  0x1b   :  { %220 = vmatprep.subr.mxu0 %v271_v0  ;;  %248 = vmatprep.subr.mxu1 %v271_v0 }
  0x1c   :  { %221 = vmatpush3.msra.mxu0 %v22_v14  ;;  %264 = vmatpush3.msra.mxu1 %v22_v14 }
  0x1d   :  { %222 = vmatprep.subr.mxu0 %v271_v0  ;;  %249 = vmatprep.subr.mxu1 %v271_v0 }
  0x1e   :  { %223 = vmatpush3.msra.mxu0 %v21_v15  ;;  %265 = vmatpush3.msra.mxu1 %v21_v15 }
  0x1f   :  { %224 = vmatprep.subr.mxu0 %v271_v0  ;;  %250 = vmatprep.subr.mxu1 %v271_v0 }
  0x20   :  { %225 = vmatpush3.msra.mxu0 %v20_v16  ;;  %266 = vmatpush3.msra.mxu1 %v20_v16 }
  0x21   :  { %226 = vmatprep.mubr.msk.f32.mxu0 %vm272_vm0, %v271_v0  ;;  %229 = vmatprep.mubr.msk.f32.mxu1 %vm272_vm0, %v271_v0 }
  0x22   :  { %227 = vmatmul.mubr.f32.vlgmr.msra.gmra.mxu0 %v17_v17  ;;  %230 = vmatmul.mubr.f32.vlgmr.msra.gmra.mxu1 %v18_v18 }
  0x23   :  { %232 = vmatprep.mubr.msk.f32.mxu1 %vm272_vm0, %v271_v0 }
  0x26   :  { %233 = vmatmul.mubr.f32.gmra.mxu1 %v19_v19 }
  0xe2   :  { %v102_v20 = vpop.f32.mrf.mxu0  ;;  %v107_v21 = vpop.f32.mrf.mxu1 }
  0xe3   :  { %v124_v22 = vmul.f32 %v102_v20, %v102_v20  ;;  %v125_v23 = vmul.f32 %v107_v21, %v107_v21  ;;  %v116_v26 = vadd.f32 %v107_v21, %v102_v20 }
  0xe4   :  { %v228_v24 = vpop.f32.mrf.mxu0  ;;  %v231_v25 = vpop.f32.mrf.mxu1 }
  0xe5   :  { %v127_v28 = vadd.f32 %v125_v23, %v124_v22 }
  0xe6   :  { %v112_v27 = vpop.f32.mrf.mxu1 }
  0xe7   :  { %v117_v29 = vadd.f32 %v116_v26, %v112_v27  ;;  %v126_v30 = vmul.f32 %v112_v27, %v112_v27 }
  0xe8   :  { %v234_v31 = vpop.f32.mrf.mxu1 }
  0xe9   :  { %v118_v32 = vrot.slane %v117_v29, 4  ;;  %v128_v33 = vadd.f32 %v127_v28, %v126_v30 }
  0xeb   :  { %v119_v34 = vadd.f32 %v118_v32, %v117_v29  ;;  %v129_v35 = vrot.slane %v128_v33, 4 }
  0xed   :  { %v120_v36 = vrot.slane %v119_v34, 2  ;;  %v130_v37 = vadd.f32 %v129_v35, %v128_v33 }
  0xef   :  { %v121_v38 = vadd.f32 %v120_v36, %v119_v34  ;;  %v131_v39 = vrot.slane %v130_v37, 2 }
  0xf1   :  { %v122_v40 = vrot.slane %v121_v38, 1  ;;  %v132_v41 = vadd.f32 %v131_v39, %v130_v37 }
  0xf3   :  { %v123_v42 = vadd.f32 %v122_v40, %v121_v38  ;;  %v133_v43 = vrot.slane %v132_v41, 1 }
  0xf5   :  { %v134_v44 = vadd.f32 %v133_v43, %v132_v41  ;;  %v135_v45 = vmul.f32 0.055555556, %v123_v42 }
  0xf7   :  { %v136_v46 = vmul.f32 0.055555556, %v134_v44  ;;  %v137_v47 = vmul.f32 %v135_v45, %v135_v45 }
  0xf9   :  { %v138_v48 = vsub.f32 %v136_v46, %v137_v47 }
  0xfb   :  { %v139_v49 = vmax.f32 %v138_v48, 0.0 }
  0xfd   :  { %v140_v50 = vadd.f32 1e-05, %v139_v49 }
  0xff   :  { %269 = vrsqrt.f32 %v140_v50 }
 0x10c   :  { %v270_v55 = vpop.eup %269 }
 0x10d   :  { %v143_v56 = vmul.f32 %v270_v55, %v142_v53 }
 0x10f   :  { %v145_v58 = vmul.f32 %v143_v56, %v135_v45  ;;  %v151_v59 = vrot.slane %v143_v56, %v150_v54 }
 0x111   :  { %v146_v60 = vsub.f32 %v144_v57, %v145_v58  ;;  %v153_v61 = vmul.f32 %v151_v59, %v102_v20  ;;  %v154_v62 = vmul.f32 %v151_v59, %v107_v21  ;;  %v155_v63 = vmul.f32 %v151_v59, %v112_v27 }
 0x113   :  { %v160_v0 = vrot.slane %v146_v60, %v150_v54 }
 0x115   :  { %v162_v1 = vadd.f32 %v160_v0, %v153_v61  ;;  %v163_v2 = vadd.f32 %v160_v0, %v154_v62  ;;  %v164_v3 = vadd.f32 %v160_v0, %v155_v63 }
 0x117   :  { %v165_v4 = vmax.f32 %v162_v1, 0.0  ;;  %v166_v5 = vmax.f32 %v163_v2, 0.0  ;;  %v167_v6 = vmax.f32 %v164_v3, 0.0 }
 0x119   :  { %168 = vst [vmem:[%s409_s4] sm:$0xff] %v165_v4  ;;  %169 = vst [vmem:[%s409_s4 + $0x8] sm:$0xff] %v166_v5 }
 0x11a   :  { %170 = vst [vmem:[%s409_s4 + $0x10] sm:$0xff] %v167_v6 }

// kernel: custom_network_q4_forward.80
= control target key start
LH: loop header
LB: loop body
LE: loop exit
PB: predicated region body
PF: predicated region fallthrough
CT: control target
= control target key end

     0   :  { %v205_v0 = vmov 0.0   ;;  %vm206_vm0 = vmmov 0   ;;  %v130_v39 = vlaneseq  ;;  %s292_s1 = inlined_call_operand.vmem [shape: f32[128,128], index: 1, kind: input, shape index: {}]   ;;  %s293_s0 = inlined_call_operand.vmem [shape: f32[8,128], index: 0, kind: input, shape index: {}]   ;;  %s294_s2 = inlined_call_operand.vmem [shape: f32[1,128], index: 2, kind: input, shape index: {}]   ;;  %s295_s3 = inlined_call_operand.vmem [shape: f32[1,128], index: 3, kind: input, shape index: {}]   ;;  %s296_s4 = inlined_call_operand.vmem [shape: f32[8,128], index: 4, kind: output, shape index: {}]  }
   0x1   :  { %166 = vmatprep.subr.mxu0 %v205_v0  ;;  %v33_v1 = vld [vmem:[%s292_s1 + $0x78] sm:$0xff]  ;;  %v32_v2 = vld [vmem:[%s292_s1 + $0x70] sm:$0xff]  ;;  %198 = vmatprep.mubr.msk.f32.mxu0 %vm206_vm0, %v205_v0  ;;  %v31_v3 = vld [vmem:[%s292_s1 + $0x68] sm:$0xff] }
   0x2   :  { %167 = vmatpush3.msra.mxu0 %v33_v1  ;;  %v30_v4 = vld [vmem:[%s292_s1 + $0x60] sm:$0xff]  ;;  %v29_v5 = vld [vmem:[%s292_s1 + $0x58] sm:$0xff]  ;;  %v28_v6 = vld [vmem:[%s292_s1 + $0x50] sm:$0xff]  ;;  %v131_v40 = vshrl.u32 %v130_v39, 7 }
   0x3   :  { %168 = vmatprep.subr.mxu0 %v205_v0  ;;  %v27_v7 = vld [vmem:[%s292_s1 + $0x48] sm:$0xff]  ;;  %v26_v8 = vld [vmem:[%s292_s1 + $0x40] sm:$0xff]  ;;  %v25_v9 = vld [vmem:[%s292_s1 + $0x38] sm:$0xff] }
   0x4   :  { %169 = vmatpush3.msra.mxu0 %v32_v2  ;;  %v24_v10 = vld [vmem:[%s292_s1 + $0x30] sm:$0xff]  ;;  %v23_v11 = vld [vmem:[%s292_s1 + $0x28] sm:$0xff]  ;;  %v22_v12 = vld [vmem:[%s292_s1 + $0x20] sm:$0xff]  ;;  %v132_v42 = vsub.s32 0, %v131_v40 }
   0x5   :  { %170 = vmatprep.subr.mxu0 %v205_v0  ;;  %v21_v13 = vld [vmem:[%s292_s1 + $0x18] sm:$0xff]  ;;  %v20_v14 = vld [vmem:[%s292_s1 + $0x10] sm:$0xff]  ;;  %v19_v15 = vld [vmem:[%s292_s1 + $0x8] sm:$0xff] }
   0x6   :  { %171 = vmatpush3.msra.mxu0 %v31_v3  ;;  %v18_v16 = vld [vmem:[%s292_s1] sm:$0xff] }
   0x7   :  { %172 = vmatprep.subr.mxu0 %v205_v0  ;;  %v17_v17 = vld [vmem:[%s293_s0] sm:$0xff] }
   0x8   :  { %173 = vmatpush3.msra.mxu0 %v30_v4  ;;  %v124_v41 = vld [vmem:[%s294_s2] sm:$0x1] }
   0x9   :  { %174 = vmatprep.subr.mxu0 %v205_v0  ;;  %v126_v45 = vld [vmem:[%s295_s3] sm:$0x1] }
   0xa   :  { %175 = vmatpush3.msra.mxu0 %v29_v5 }
   0xb   :  { %176 = vmatprep.subr.mxu0 %v205_v0 }
   0xc   :  { %177 = vmatpush3.msra.mxu0 %v28_v6 }
   0xd   :  { %178 = vmatprep.subr.mxu0 %v205_v0 }
   0xe   :  { %179 = vmatpush3.msra.mxu0 %v27_v7 }
   0xf   :  { %180 = vmatprep.subr.mxu0 %v205_v0 }
  0x10   :  { %181 = vmatpush3.msra.mxu0 %v26_v8 }
  0x11   :  { %182 = vmatprep.subr.mxu0 %v205_v0 }
  0x12   :  { %183 = vmatpush3.msra.mxu0 %v25_v9 }
  0x13   :  { %184 = vmatprep.subr.mxu0 %v205_v0 }
  0x14   :  { %185 = vmatpush3.msra.mxu0 %v24_v10 }
  0x15   :  { %186 = vmatprep.subr.mxu0 %v205_v0 }
  0x16   :  { %187 = vmatpush3.msra.mxu0 %v23_v11 }
  0x17   :  { %188 = vmatprep.subr.mxu0 %v205_v0 }
  0x18   :  { %189 = vmatpush3.msra.mxu0 %v22_v12 }
  0x19   :  { %190 = vmatprep.subr.mxu0 %v205_v0 }
  0x1a   :  { %191 = vmatpush3.msra.mxu0 %v21_v13 }
  0x1b   :  { %192 = vmatprep.subr.mxu0 %v205_v0 }
  0x1c   :  { %193 = vmatpush3.msra.mxu0 %v20_v14 }
  0x1d   :  { %194 = vmatprep.subr.mxu0 %v205_v0 }
  0x1e   :  { %195 = vmatpush3.msra.mxu0 %v19_v15 }
  0x1f   :  { %196 = vmatprep.subr.mxu0 %v205_v0 }
  0x20   :  { %197 = vmatpush3.msra.mxu0 %v18_v16 }
  0x21   :  { %199 = vmatmul.mubr.f32.vlgmr.msra.gmra.mxu0 %v17_v17 }
  0xe1   :  { %v100_v18 = vpop.f32.mrf.mxu0 }
  0xe2   :  { %v104_v19 = vrot.slane %v100_v18, 4  ;;  %v110_v20 = vmul.f32 %v100_v18, %v100_v18 }
  0xe3   :  { %v200_v21 = vpop.f32.mrf.mxu0 }
  0xe4   :  { %v105_v22 = vadd.f32 %v104_v19, %v100_v18  ;;  %v111_v23 = vrot.slane %v110_v20, 4 }
  0xe6   :  { %v106_v24 = vrot.slane %v105_v22, 2  ;;  %v112_v25 = vadd.f32 %v111_v23, %v110_v20 }
  0xe8   :  { %v107_v26 = vadd.f32 %v106_v24, %v105_v22  ;;  %v113_v27 = vrot.slane %v112_v25, 2 }
  0xea   :  { %v108_v28 = vrot.slane %v107_v26, 1  ;;  %v114_v29 = vadd.f32 %v113_v27, %v112_v25 }
  0xec   :  { %v109_v30 = vadd.f32 %v108_v28, %v107_v26  ;;  %v115_v31 = vrot.slane %v114_v29, 1 }
  0xee   :  { %v116_v32 = vadd.f32 %v115_v31, %v114_v29  ;;  %v117_v33 = vmul.f32 0.5, %v109_v30 }
  0xf0   :  { %v118_v34 = vmul.f32 0.5, %v116_v32  ;;  %v119_v35 = vmul.f32 %v117_v33, %v117_v33 }
  0xf2   :  { %v120_v36 = vsub.f32 %v118_v34, %v119_v35 }
  0xf4   :  { %v121_v37 = vmax.f32 %v120_v36, 0.0 }
  0xf6   :  { %v122_v38 = vadd.f32 1e-05, %v121_v37 }
  0xf8   :  { %203 = vrsqrt.f32 %v122_v38 }
 0x105   :  { %v204_v43 = vpop.eup %203 }
 0x106   :  { %v125_v44 = vmul.f32 %v204_v43, %v124_v41 }
 0x108   :  { %v127_v46 = vmul.f32 %v125_v44, %v117_v33  ;;  %v133_v47 = vrot.slane %v125_v44, %v132_v42 }
 0x10a   :  { %v128_v48 = vsub.f32 %v126_v45, %v127_v46  ;;  %v135_v49 = vmul.f32 %v133_v47, %v100_v18 }
 0x10c   :  { %v140_v50 = vrot.slane %v128_v48, %v132_v42 }
 0x10e   :  { %v142_v51 = vadd.f32 %v140_v50, %v135_v49 }
 0x110   :  { %v143_v52 = vmax.f32 %v142_v51, 0.0 }
 0x112   :  { %144 = vst [vmem:[%s296_s4] sm:$0xff] %v143_v52 }

// kernel: custom_network_q4_forward.81
= control target key start
LH: loop header
LB: loop body
LE: loop exit
PB: predicated region body
PF: predicated region fallthrough
CT: control target
= control target key end

     0   :  { %vm17_vm0 = vcmask 74752   ;;  %s90_s0 = inlined_call_operand.vmem [shape: f32[9,2,10], index: 0, kind: input, shape index: {}]   ;;  %s91_s1 = inlined_call_operand.vmem [shape: f32[2,10], index: 1, kind: output, shape index: {}]  }
   0x1   :  { %v8_v0 = vld [vmem:[%s90_s0] sm:$0x3]  ;;  %v9_v1 = vld [vmem:[%s90_s0 + $0x2] sm:$0x3]  ;;  %v10_v2 = vld [vmem:[%s90_s0 + $0x4] sm:$0x3] }
   0x2   :  { %v11_v3 = vld [vmem:[%s90_s0 + $0x6] sm:$0x3]  ;;  %v12_v4 = vld [vmem:[%s90_s0 + $0x8] sm:$0x3]  ;;  %v13_v5 = vld [vmem:[%s90_s0 + $0xa] sm:$0x3] }
   0x3   :  { %v14_v6 = vld [vmem:[%s90_s0 + $0xc] sm:$0x3]  ;;  %v15_v7 = vld [vmem:[%s90_s0 + $0xe] sm:$0x3]  ;;  %v16_v8 = vld [vmem:[%s90_s0 + $0x10] sm:$0x3] }
   0x4   :  { %v18_v9 = vsel %vm17_vm0, %v8_v0, -inf  ;;  %v19_v10 = vsel %vm17_vm0, %v9_v1, -inf  ;;  %v20_v11 = vsel %vm17_vm0, %v10_v2, -inf  ;;  %v21_v12 = vsel %vm17_vm0, %v11_v3, -inf }
   0x5   :  { %v22_v13 = vsel %vm17_vm0, %v12_v4, -inf  ;;  %v24_v14 = vsel %vm17_vm0, %v13_v5, -inf  ;;  %v26_v15 = vsel %vm17_vm0, %v14_v6, -inf  ;;  %v28_v16 = vsel %vm17_vm0, %v15_v7, -inf }
   0x6   :  { %v23_v17 = vmax.f32 %v18_v9, %v22_v13  ;;  %v25_v18 = vmax.f32 %v19_v10, %v24_v14  ;;  %v27_v19 = vmax.f32 %v20_v11, %v26_v15  ;;  %v29_v20 = vmax.f32 %v21_v12, %v28_v16 }
   0x7   :  { %v30_v21 = vsel %vm17_vm0, %v16_v8, -inf }
   0x8   :  { %v31_v22 = vmax.f32 %v23_v17, %v30_v21  ;;  %v33_v23 = vmax.f32 %v27_v19, %v29_v20 }
   0xa   :  { %v32_v24 = vmax.f32 %v31_v22, %v25_v18 }
   0xc   :  { %v34_v25 = vmax.f32 %v32_v24, %v33_v23 }
   0xe   :  { %35 = vst.msk [vmem:[%s91_s1] sm:$0x3] %vm17_vm0, %v34_v25 }

// kernel: custom_network_q4_forward.91
= control target key start
LH: loop header
LB: loop body
LE: loop exit
PB: predicated region body
PF: predicated region fallthrough
CT: control target
= control target key end

     0   :  { %vm29_vm0 = vcmask 1046528   ;;  %v157_v1 = vmov 0.0   ;;  %vm158_vm1 = vmmov 0   ;;  %vm25_vm2 = vcmask 121856   ;;  %s195_s0 = inlined_call_operand.vmem [shape: f32[2,15], index: 0, kind: input, shape index: {}]   ;;  %s196_s1 = inlined_call_operand.vmem [shape: f32[15,10], index: 1, kind: input, shape index: {}]   ;;  %s197_s2 = inlined_call_operand.vmem [shape: f32[1,10], index: 2, kind: input, shape index: {}]   ;;  %s198_s3 = inlined_call_operand.hbm [shape: f32[2,10], index: 3, kind: output, shape index: {}]  }
   0x1   :  { %v17_v0 = vld [vmem:[%s196_s1 + $0x8] sm:$0x7f]  ;;  %125 = vmatprep.subr.mxu0 %v157_v1  ;;  %v16_v2 = vld [vmem:[%s196_s1] sm:$0xff]  ;;  %129 = vmatprep.mubr.msk.f32.mxu0 %vm158_vm1, %v157_v1 }
   0x2   :  { %126 = vmatpush3.msk.msra.mxu0 %vm29_vm0, %v17_v0  ;;  %v15_v3 = vld [vmem:[%s195_s0] sm:$0x3] }
   0x3   :  { %8 = vsyncpa [#allocation3], 0  ;;  %127 = vmatprep.subr.mxu0 %v157_v1  ;;  %v119_v4 = vld [vmem:[%s197_s2] ss:$0 sm:$0xff]  ;;  %s159_s20 = smov [#allocation2]   ;;  %vm103_vm3 = vcmask 74752  }
   0x4   :  { %128 = vmatpush3.msra.mxu0 %v16_v2  ;;  %s111_s21 = sshll.u32 %s159_s20, 4  ;;  %s112_s21 = int_to_ptr.vmem [resolvable:$true] %s111_s21 }
   0x5   :  { %130 = vmatmul.mubr.msk.f32.vlgmr.msra.gmra.mxu0 %vm25_vm2, %v15_v3  ;;  %s135_s1 = scalar_lea.vmem %s112_s21, 32  ;;  %p140_p1 = scmp.lt.s32.totalorder %s112_s21, %s112_s21 }
   0x6   :  { %p136_p0 = scmp.ne.s32.totalorder %s112_s21, %s135_s1  ;;  %p141_p2 = scmp.lt.s32.totalorder %s135_s1, %s135_s1 }
   0x8   :  { %p142_p3 = por %p141_p2, %p140_p1 }
   0xa   :  { %p143_p4 = pnand %p142_p3, %p136_p0 }
  0xc5   :  { %v99_v5 = vpop.f32.mrf.mxu0 }
  0xc6   :  { %v100_v6 = vadd.f32 %v119_v4, %v99_v5 }
  0xc7   :  { %v131_v7 = vpop.f32.mrf.mxu0 }
  0xc8   :  { %104 = vst.msk [vmem:[#allocation2] sm:$0x3] %vm103_vm3, %v100_v6 }
  0xc9   :  { %146 = shalt.err (!%p143_p4)
}
  0xca   :  { %114 = dma.vmem_to_hbm [thread:$0]  %s112_s21, 32, %s198_s3, [#allocation3]  }
  0xcb   :  { %155 = dma.done.wait [#allocation3], 32  }
  0xcc   :  { %156 = vsyncadd [#allocation3], 4294967264 }
  0xcd   :  { %118 = vsyncpa [#allocation3], 1 }

</bundles_post_ra>
